<compile_context>
chip_gen: v6e
topology: v6e:2x2x1
jax: 0.10.0
libtpu: 0.0.40
codegen_flags: <defaults>
</compile_context>

<pallas_src>
import functools

import jax
import jax.numpy as jnp
import numpy as np
from jax.experimental import pallas as pl
from jax.experimental.pallas import tpu as pltpu


# ----------------------------------------------------------------------------
# Fused kernel: conv1 -> conv2 -> conv3 -> act_conv1 -> fc -> softmax.
# One grid step processes NB images = NB*P activation rows (P = 80 per image,
# row pitch Wa = 8 so every image starts on a sublane boundary).
# ----------------------------------------------------------------------------
def _actor_kernel(x_ref, w1_ref, b1_ref, w2_ref, b2_ref, w3_ref, b3_ref,
                  w4_ref, b4_ref, wfc0_ref, wfc1_ref, bfc_ref, mask_ref,
                  out_ref, buf1, buf2, tap2, tap3, *, NB, P, GP, Wa):
    Pnb = NB * P
    mask = mask_ref[...]                      # (Pnb, 1): 1.0 on valid pixels

    # Guard rows are only read by masked halo outputs; they just need to be
    # finite.  The interior [GP, GP+Pnb) is fully overwritten every step, so
    # only the two guard bands are zeroed (per review: no full-buffer zero).
    for buf in (buf1, buf2):
        zer = jnp.zeros((GP, buf.shape[1]), jnp.float32)
        buf[pl.ds(0, GP), :] = zer
        buf[pl.ds(GP + Pnb, GP), :] = zer

    # conv1 (1 -> 32): single matmul over the wrapper-built 9-tap im2col.
    y1 = jnp.dot(x_ref[...], w1_ref[...], preferred_element_type=jnp.float32)
    y1 = jnp.maximum(y1 + b1_ref[...], 0.0) * mask
    buf1[pl.ds(GP, Pnb), :] = y1

    def tap_stack(src_ref, dst_ref, cin):
        # 3x3 pad=1 conv taps as 9 statically-shifted row windows of the
        # padded activation buffer, stacked along lanes (tap-major, cin inner).
        # GP and the per-image pitch Wa=8 are sublane-aligned, so the three
        # center-column taps (shift in {-8, 0, 8}) are aligned loads.
        for dh in range(3):
            for dw in range(3):
                tap = dh * 3 + dw
                shift = (dh - 1) * Wa + (dw - 1)
                dst_ref[:, pl.ds(tap * cin, cin)] = \
                    src_ref[pl.ds(GP + shift, Pnb), :]

    # conv2 (32 -> 64): tap-stack to (Pnb, 288), one K=288 MXU matmul.
    tap_stack(buf1, tap2, 32)
    y2 = jnp.dot(tap2[...], w2_ref[...], preferred_element_type=jnp.float32)
    y2 = jnp.maximum(y2 + b2_ref[...], 0.0) * mask
    buf2[pl.ds(GP, Pnb), :] = y2

    # conv3 (64 -> 128): tap-stack to (Pnb, 576), one K=576 MXU matmul.
    tap_stack(buf2, tap3, 64)
    y3 = jnp.dot(tap3[...], w3_ref[...], preferred_element_type=jnp.float32)
    y3 = jnp.maximum(y3 + b3_ref[...], 0.0)   # halo rows handled via xa mask

    # act_conv1 (1x1, 128 -> 2): one MXU matmul, then mask halo rows.
    xa = jnp.dot(y3, w4_ref[...], preferred_element_type=jnp.float32)
    xa = jnp.maximum(xa + b4_ref[...], 0.0) * mask                 # (Pnb, 2)

    # act_fc1: channel-major flatten absorbed into per-pixel (P, a_dim)
    # weights (zero at halo pixels); per-image segment sum (sublane reduce),
    # no O(n^2) selector and no batch-tiled FC weights.
    z = xa[:, 0:1] * wfc0_ref[...] + xa[:, 1:2] * wfc1_ref[...]    # (Pnb, a)
    rows = [jnp.sum(z[b * P:(b + 1) * P, :], axis=0, keepdims=True)
            for b in range(NB)]
    logits = jnp.concatenate(rows, axis=0) + bfc_ref[...]          # (NB, a)

    m = jnp.max(logits, axis=-1, keepdims=True)
    e = jnp.exp(logits - m)
    out_ref[...] = (e / jnp.sum(e, axis=-1, keepdims=True)).astype(out_ref.dtype)


# ----------------------------------------------------------------------------
# One-time parameter packing (hoisted out of the per-call path).
# ----------------------------------------------------------------------------
def pick_block_n(n, cap=8):
    """Images per grid step (keeps the (block_n, a_dim) output tile legal)."""
    if n <= cap:
        return n
    if n % cap == 0:
        return cap
    return n                                   # fall back to one big step


def prepare_actor_weights(params, *, s_dim, a_dim, block_n):
    h, w = s_dim, 5
    Hp, Wa = h + 2, 8                  # padded extents (Wa padded to 8 rows/pitch)
    P = Hp * Wa                        # rows per image (multiple of 8)

    def pack_w(wgt):                   # (cout,cin,3,3) -> (9*cin, cout) tap-major
        co, ci, kh, kw = wgt.shape
        return jnp.transpose(wgt, (2, 3, 1, 0)).reshape(kh * kw * ci, co)

    # act_fc1 weight re-laid-out on the padded pixel grid (zeros on halo
    # pixels), one (P, a_dim) slab per act_conv1 channel, tiled block_n times
    # (NOT n times — reused for every batch block).
    wfc = jnp.zeros((2, Hp, Wa, a_dim), jnp.float32)
    wfc = wfc.at[:, 1:h + 1, 1:w + 1, :].set(
        params["act_fc1_w"].T.reshape(2, h, w, a_dim))
    wfc = wfc.reshape(2, P, a_dim)

    mask_np = np.zeros((Hp, Wa, 1), np.float32)
    mask_np[1:h + 1, 1:w + 1, :] = 1.0

    return {
        "w1p": pack_w(params["conv1_w"]), "b1": params["conv1_b"].reshape(1, 32),
        "w2p": pack_w(params["conv2_w"]), "b2": params["conv2_b"].reshape(1, 64),
        "w3p": pack_w(params["conv3_w"]), "b3": params["conv3_b"].reshape(1, 128),
        "w4": params["act_conv1_w"].reshape(2, 128).T,        # (128, 2)
        "b4": params["act_conv1_b"].reshape(1, 2),
        "wfc0": jnp.tile(wfc[0], (block_n, 1)),               # (block_n*P, a)
        "wfc1": jnp.tile(wfc[1], (block_n, 1)),
        "bfc": params["act_fc1_b"].reshape(1, a_dim),
        "mask": jnp.asarray(np.tile(mask_np.reshape(P, 1), (block_n, 1))),
    }


# ----------------------------------------------------------------------------
# Per-call wrapper: tiny input im2col + pallas_call.
# ----------------------------------------------------------------------------
def actor_forward(weights, x, *, s_dim, a_dim, block_n):
    n, c, h, w = x.shape
    assert c == 1 and h == s_dim and w == 5 and n % block_n == 0
    Hp, Wa = h + 2, 8
    P = Hp * Wa
    GP = 16                                    # guard rows (>= Wa+1, 8-aligned)
    Pnb = block_n * P

    # Padded pixel (i, j) in [0,Hp)x[0,Wa); conv tap (dh, dw) reads original
    # pixel (i+dh-2, j+dw-2), so double-pad the raw image and take 9 slices.
    xpp = jnp.pad(x[:, 0], ((0, 0), (2, 2), (2, 3)))           # (n, Hp+2, Wa+2)
    taps = [xpp[:, dh:dh + Hp, dw:dw + Wa]
            for dh in range(3) for dw in range(3)]
    x_cols = jnp.stack(taps, axis=-1).reshape(n * P, 9)        # (n*P, 9)

    inputs = [x_cols, weights["w1p"], weights["b1"], weights["w2p"],
              weights["b2"], weights["w3p"], weights["b3"], weights["w4"],
              weights["b4"], weights["wfc0"], weights["wfc1"],
              weights["bfc"], weights["mask"]]

    def full_spec(shape):
        nd = len(shape)
        return pl.BlockSpec(tuple(shape), lambda i, _nd=nd: (0,) * _nd)

    in_specs = ([pl.BlockSpec((Pnb, 9), lambda i: (i, 0))]
                + [full_spec(tuple(a.shape)) for a in inputs[1:]])

    kern = functools.partial(_actor_kernel, NB=block_n, P=P, GP=GP, Wa=Wa)
    return pl.pallas_call(
        kern,
        out_shape=jax.ShapeDtypeStruct((n, a_dim), jnp.float32),
        grid=(n // block_n,),
        in_specs=in_specs,
        out_specs=pl.BlockSpec((block_n, a_dim), lambda i: (i, 0)),
        scratch_shapes=[pltpu.VMEM((Pnb + 2 * GP, 32), jnp.float32),
                        pltpu.VMEM((Pnb + 2 * GP, 64), jnp.float32),
                        pltpu.VMEM((Pnb, 9 * 32), jnp.float32),
                        pltpu.VMEM((Pnb, 9 * 64), jnp.float32)],
        compiler_params=pltpu.CompilerParams(
            dimension_semantics=("parallel",)),
    )(*inputs)


# ----------------------------------------------------------------------------
# Pure-JAX reference (mirrors the PyTorch forward exactly)
# ----------------------------------------------------------------------------
def actor_reference(params, x, *, s_dim, a_dim):
    def conv(inp, wgt, bias, pad):
        y = jax.lax.conv_general_dilated(
            inp, wgt, window_strides=(1, 1),
            padding=[(pad, pad), (pad, pad)],
            dimension_numbers=("NCHW", "OIHW", "NCHW"))
        return jax.nn.relu(y + bias.reshape(1, -1, 1, 1))

    hdn = conv(x, params["conv1_w"], params["conv1_b"], 1)
    hdn = conv(hdn, params["conv2_w"], params["conv2_b"], 1)
    hdn = conv(hdn, params["conv3_w"], params["conv3_b"], 1)
    ha = conv(hdn, params["act_conv1_w"], params["act_conv1_b"], 0)
    ha = ha.reshape(x.shape[0], 2 * s_dim * 5)    # == torch .view (c,h,w major)
    logits = ha @ params["act_fc1_w"].T + params["act_fc1_b"]
    return jax.nn.softmax(logits, axis=1)


# ----------------------------------------------------------------------------
# Deterministic synthetic parameters (shapes from Actor.__init__)
# ----------------------------------------------------------------------------
def init_params(key, s_dim, a_dim):
    ks = jax.random.split(key, 10)

    def conv_w(k, co, ci, kh, kw):
        fan_in = ci * kh * kw
        return jax.random.normal(k, (co, ci, kh, kw), jnp.float32) / np.sqrt(fan_in)

    def bias(k, m):
        return 0.01 * jax.random.normal(k, (m,), jnp.float32)

    fc_in = 2 * s_dim * 5
    return {
        "conv1_w": conv_w(ks[0], 32, 1, 3, 3),   "conv1_b": bias(ks[1], 32),
        "conv2_w": conv_w(ks[2], 64, 32, 3, 3),  "conv2_b": bias(ks[3], 64),
        "conv3_w": conv_w(ks[4], 128, 64, 3, 3), "conv3_b": bias(ks[5], 128),
        "act_conv1_w": conv_w(ks[6], 2, 128, 1, 1), "act_conv1_b": bias(ks[7], 2),
        "act_fc1_w": jax.random.normal(ks[8], (a_dim, fc_in), jnp.float32)
                     / np.sqrt(fc_in),
        "act_fc1_b": bias(ks[9], a_dim),
    }


if __name__ == "__main__":
    s_dim, a_dim, batch = 8, 10, 2            # board is s_dim x 5 (from the view())
    key = jax.random.PRNGKey(0)
    kp, kx = jax.random.split(key)
    params = init_params(kp, s_dim, a_dim)
    x = jax.random.normal(kx, (batch, 1, s_dim, 5), jnp.float32)   # NCHW

    # One-time packing (hoisted out of the per-call path), then the jitted
    # per-call path only builds the tiny im2col and runs the fused kernel.
    block_n = pick_block_n(batch)
    weights = prepare_actor_weights(params, s_dim=s_dim, a_dim=a_dim,
                                    block_n=block_n)
    fwd = jax.jit(functools.partial(actor_forward, s_dim=s_dim, a_dim=a_dim,
                                    block_n=block_n))
    out = jax.block_until_ready(fwd(weights, x))

    ref_fn = jax.jit(functools.partial(actor_reference, s_dim=s_dim, a_dim=a_dim))
    ref = jax.block_until_ready(ref_fn(params, x))

    out_np, ref_np = np.asarray(out), np.asarray(ref)
    assert out_np.shape == (batch, a_dim)
    assert np.all(np.isfinite(out_np))
    assert np.allclose(out_np.sum(axis=1), 1.0, atol=1e-5)     # softmax rows sum to 1
    assert np.allclose(out_np, ref_np, rtol=5e-3, atol=1e-3), \
        float(np.max(np.abs(out_np - ref_np)))
    print("KERNEL_OK")
</pallas_src>

<mosaic_0001>
module attributes {stable_mosaic.version = 11 : i64} {
  func.func @_actor_kernel(%arg0: i32, %arg1: memref<160x9xf32, #tpu.memory_space<vmem>>, %arg2: memref<9x32xf32, #tpu.memory_space<vmem>>, %arg3: memref<1x32xf32, #tpu.memory_space<vmem>>, %arg4: memref<288x64xf32, #tpu.memory_space<vmem>>, %arg5: memref<1x64xf32, #tpu.memory_space<vmem>>, %arg6: memref<576x128xf32, #tpu.memory_space<vmem>>, %arg7: memref<1x128xf32, #tpu.memory_space<vmem>>, %arg8: memref<128x2xf32, #tpu.memory_space<vmem>>, %arg9: memref<1x2xf32, #tpu.memory_space<vmem>>, %arg10: memref<160x10xf32, #tpu.memory_space<vmem>>, %arg11: memref<160x10xf32, #tpu.memory_space<vmem>>, %arg12: memref<1x10xf32, #tpu.memory_space<vmem>>, %arg13: memref<160x1xf32, #tpu.memory_space<vmem>>, %arg14: memref<2x10xf32, #tpu.memory_space<vmem>>, %arg15: memref<192x32xf32, #tpu.memory_space<vmem>>, %arg16: memref<192x64xf32, #tpu.memory_space<vmem>>, %arg17: memref<160x288xf32, #tpu.memory_space<vmem>>, %arg18: memref<160x576xf32, #tpu.memory_space<vmem>>) attributes {dimension_semantics = [#tpu.dimension_semantics<parallel>], iteration_bounds = array<i64: 1>, scalar_prefetch = 0 : i64, scratch_operands = 4 : i64, tpu.core_type = #tpu.core_type<tc>, window_params = [{transform_indices = @transform_0, window_bounds = array<i64: 160, 9>}, {pipeline_mode = #tpu.pipeline_mode<synchronous>, transform_indices = @transform_1, window_bounds = array<i64: 9, 32>}, {pipeline_mode = #tpu.pipeline_mode<synchronous>, transform_indices = @transform_2, window_bounds = array<i64: 1, 32>}, {pipeline_mode = #tpu.pipeline_mode<synchronous>, transform_indices = @transform_3, window_bounds = array<i64: 288, 64>}, {pipeline_mode = #tpu.pipeline_mode<synchronous>, transform_indices = @transform_4, window_bounds = array<i64: 1, 64>}, {pipeline_mode = #tpu.pipeline_mode<synchronous>, transform_indices = @transform_5, window_bounds = array<i64: 576, 128>}, {pipeline_mode = #tpu.pipeline_mode<synchronous>, transform_indices = @transform_6, window_bounds = array<i64: 1, 128>}, {pipeline_mode = #tpu.pipeline_mode<synchronous>, transform_indices = @transform_7, window_bounds = array<i64: 128, 2>}, {pipeline_mode = #tpu.pipeline_mode<synchronous>, transform_indices = @transform_8, window_bounds = array<i64: 1, 2>}, {pipeline_mode = #tpu.pipeline_mode<synchronous>, transform_indices = @transform_9, window_bounds = array<i64: 160, 10>}, {pipeline_mode = #tpu.pipeline_mode<synchronous>, transform_indices = @transform_10, window_bounds = array<i64: 160, 10>}, {pipeline_mode = #tpu.pipeline_mode<synchronous>, transform_indices = @transform_11, window_bounds = array<i64: 1, 10>}, {pipeline_mode = #tpu.pipeline_mode<synchronous>, transform_indices = @transform_12, window_bounds = array<i64: 160, 1>}, {transform_indices = @transform_13, window_bounds = array<i64: 2, 10>}]} {
    %c0 = arith.constant 0 : index
    %c0_0 = arith.constant 0 : index
    %0 = vector.load %arg13[%c0, %c0_0] : memref<160x1xf32, #tpu.memory_space<vmem>>, vector<160x1xf32>
    %cst = arith.constant 0.000000e+00 : f32
    %1 = vector.broadcast %cst : f32 to vector<16x32xf32>
    %c0_1 = arith.constant 0 : index
    %c0_2 = arith.constant 0 : index
    %2 = vector.load %arg15[%c0_1, %c0_2] : memref<192x32xf32, #tpu.memory_space<vmem>>, vector<16x32xf32>
    tpu.vector_store %arg15[%c0_1, %c0_2], %1 {strides = array<i32>} : memref<192x32xf32, #tpu.memory_space<vmem>>, vector<16x32xf32>,
    %c176 = arith.constant 176 : index
    %c0_3 = arith.constant 0 : index
    %3 = vector.load %arg15[%c176, %c0_3] : memref<192x32xf32, #tpu.memory_space<vmem>>, vector<16x32xf32>
    tpu.vector_store %arg15[%c176, %c0_3], %1 {strides = array<i32>} : memref<192x32xf32, #tpu.memory_space<vmem>>, vector<16x32xf32>,
    %cst_4 = arith.constant 0.000000e+00 : f32
    %4 = vector.broadcast %cst_4 : f32 to vector<16x64xf32>
    %c0_5 = arith.constant 0 : index
    %c0_6 = arith.constant 0 : index
    %5 = vector.load %arg16[%c0_5, %c0_6] : memref<192x64xf32, #tpu.memory_space<vmem>>, vector<16x64xf32>
    tpu.vector_store %arg16[%c0_5, %c0_6], %4 {strides = array<i32>} : memref<192x64xf32, #tpu.memory_space<vmem>>, vector<16x64xf32>,
    %c176_7 = arith.constant 176 : index
    %c0_8 = arith.constant 0 : index
    %6 = vector.load %arg16[%c176_7, %c0_8] : memref<192x64xf32, #tpu.memory_space<vmem>>, vector<16x64xf32>
    tpu.vector_store %arg16[%c176_7, %c0_8], %4 {strides = array<i32>} : memref<192x64xf32, #tpu.memory_space<vmem>>, vector<16x64xf32>,
    %c0_9 = arith.constant 0 : index
    %c0_10 = arith.constant 0 : index
    %7 = vector.load %arg1[%c0_9, %c0_10] : memref<160x9xf32, #tpu.memory_space<vmem>>, vector<160x9xf32>
    %c0_11 = arith.constant 0 : index
    %c0_12 = arith.constant 0 : index
    %8 = vector.load %arg2[%c0_11, %c0_12] : memref<9x32xf32, #tpu.memory_space<vmem>>, vector<9x32xf32>
    %cst_13 = arith.constant dense<0.000000e+00> : vector<160x32xf32>
    %9 = tpu.matmul %7, %8, %cst_13 {dimension_numbers = #tpu.dot_dimension_numbers<[1], [0], [0], [1], [0, 0, 1, 1], [], []>} : vector<160x9xf32>, vector<9x32xf32>, vector<160x32xf32> -> vector<160x32xf32>
    %c0_14 = arith.constant 0 : index
    %c0_15 = arith.constant 0 : index
    %10 = vector.load %arg3[%c0_14, %c0_15] : memref<1x32xf32, #tpu.memory_space<vmem>>, vector<1x32xf32>
    %11 = vector.broadcast %10 : vector<1x32xf32> to vector<160x32xf32>
    %12 = arith.addf %9, %11 : vector<160x32xf32>
    %cst_16 = arith.constant 0.000000e+00 : f32
    %13 = vector.broadcast %cst_16 : f32 to vector<160x32xf32>
    %14 = arith.maximumf %12, %13 : vector<160x32xf32>
    %15 = vector.broadcast %0 : vector<160x1xf32> to vector<160x32xf32>
    %16 = arith.mulf %14, %15 : vector<160x32xf32>
    %c16 = arith.constant 16 : index
    %c0_17 = arith.constant 0 : index
    %17 = vector.load %arg15[%c16, %c0_17] : memref<192x32xf32, #tpu.memory_space<vmem>>, vector<160x32xf32>
    tpu.vector_store %arg15[%c16, %c0_17], %16 {strides = array<i32>} : memref<192x32xf32, #tpu.memory_space<vmem>>, vector<160x32xf32>,
    %c7 = arith.constant 7 : index
    %c0_18 = arith.constant 0 : index
    %18 = vector.load %arg15[%c7, %c0_18] : memref<192x32xf32, #tpu.memory_space<vmem>>, vector<160x32xf32>
    %c0_19 = arith.constant 0 : index
    %c0_20 = arith.constant 0 : index
    %19 = vector.load %arg17[%c0_19, %c0_20] : memref<160x288xf32, #tpu.memory_space<vmem>>, vector<160x32xf32>
    tpu.vector_store %arg17[%c0_19, %c0_20], %18 {strides = array<i32>} : memref<160x288xf32, #tpu.memory_space<vmem>>, vector<160x32xf32>,
    %c8 = arith.constant 8 : index
    %c0_21 = arith.constant 0 : index
    %20 = vector.load %arg15[%c8, %c0_21] : memref<192x32xf32, #tpu.memory_space<vmem>>, vector<160x32xf32>
    %c0_22 = arith.constant 0 : index
    %c32 = arith.constant 32 : index
    %21 = vector.load %arg17[%c0_22, %c32] : memref<160x288xf32, #tpu.memory_space<vmem>>, vector<160x32xf32>
    tpu.vector_store %arg17[%c0_22, %c32], %20 {strides = array<i32>} : memref<160x288xf32, #tpu.memory_space<vmem>>, vector<160x32xf32>,
    %c9 = arith.constant 9 : index
    %c0_23 = arith.constant 0 : index
    %22 = vector.load %arg15[%c9, %c0_23] : memref<192x32xf32, #tpu.memory_space<vmem>>, vector<160x32xf32>
    %c0_24 = arith.constant 0 : index
    %c64 = arith.constant 64 : index
    %23 = vector.load %arg17[%c0_24, %c64] : memref<160x288xf32, #tpu.memory_space<vmem>>, vector<160x32xf32>
    tpu.vector_store %arg17[%c0_24, %c64], %22 {strides = array<i32>} : memref<160x288xf32, #tpu.memory_space<vmem>>, vector<160x32xf32>,
    %c15 = arith.constant 15 : index
    %c0_25 = arith.constant 0 : index
    %24 = vector.load %arg15[%c15, %c0_25] : memref<192x32xf32, #tpu.memory_space<vmem>>, vector<160x32xf32>
    %c0_26 = arith.constant 0 : index
    %c96 = arith.constant 96 : index
    %25 = vector.load %arg17[%c0_26, %c96] : memref<160x288xf32, #tpu.memory_space<vmem>>, vector<160x32xf32>
    tpu.vector_store %arg17[%c0_26, %c96], %24 {strides = array<i32>} : memref<160x288xf32, #tpu.memory_space<vmem>>, vector<160x32xf32>,
    %c16_27 = arith.constant 16 : index
    %c0_28 = arith.constant 0 : index
    %26 = vector.load %arg15[%c16_27, %c0_28] : memref<192x32xf32, #tpu.memory_space<vmem>>, vector<160x32xf32>
    %c0_29 = arith.constant 0 : index
    %c128 = arith.constant 128 : index
    %27 = vector.load %arg17[%c0_29, %c128] : memref<160x288xf32, #tpu.memory_space<vmem>>, vector<160x32xf32>
    tpu.vector_store %arg17[%c0_29, %c128], %26 {strides = array<i32>} : memref<160x288xf32, #tpu.memory_space<vmem>>, vector<160x32xf32>,
    %c17 = arith.constant 17 : index
    %c0_30 = arith.constant 0 : index
    %28 = vector.load %arg15[%c17, %c0_30] : memref<192x32xf32, #tpu.memory_space<vmem>>, vector<160x32xf32>
    %c0_31 = arith.constant 0 : index
    %c160 = arith.constant 160 : index
    %29 = vector.load %arg17[%c0_31, %c160] : memref<160x288xf32, #tpu.memory_space<vmem>>, vector<160x32xf32>
    tpu.vector_store %arg17[%c0_31, %c160], %28 {strides = array<i32>} : memref<160x288xf32, #tpu.memory_space<vmem>>, vector<160x32xf32>,
    %c23 = arith.constant 23 : index
    %c0_32 = arith.constant 0 : index
    %30 = vector.load %arg15[%c23, %c0_32] : memref<192x32xf32, #tpu.memory_space<vmem>>, vector<160x32xf32>
    %c0_33 = arith.constant 0 : index
    %c192 = arith.constant 192 : index
    %31 = vector.load %arg17[%c0_33, %c192] : memref<160x288xf32, #tpu.memory_space<vmem>>, vector<160x32xf32>
    tpu.vector_store %arg17[%c0_33, %c192], %30 {strides = array<i32>} : memref<160x288xf32, #tpu.memory_space<vmem>>, vector<160x32xf32>,
    %c24 = arith.constant 24 : index
    %c0_34 = arith.constant 0 : index
    %32 = vector.load %arg15[%c24, %c0_34] : memref<192x32xf32, #tpu.memory_space<vmem>>, vector<160x32xf32>
    %c0_35 = arith.constant 0 : index
    %c224 = arith.constant 224 : index
    %33 = vector.load %arg17[%c0_35, %c224] : memref<160x288xf32, #tpu.memory_space<vmem>>, vector<160x32xf32>
    tpu.vector_store %arg17[%c0_35, %c224], %32 {strides = array<i32>} : memref<160x288xf32, #tpu.memory_space<vmem>>, vector<160x32xf32>,
    %c25 = arith.constant 25 : index
    %c0_36 = arith.constant 0 : index
    %34 = vector.load %arg15[%c25, %c0_36] : memref<192x32xf32, #tpu.memory_space<vmem>>, vector<160x32xf32>
    %c0_37 = arith.constant 0 : index
    %c256 = arith.constant 256 : index
    %35 = vector.load %arg17[%c0_37, %c256] : memref<160x288xf32, #tpu.memory_space<vmem>>, vector<160x32xf32>
    tpu.vector_store %arg17[%c0_37, %c256], %34 {strides = array<i32>} : memref<160x288xf32, #tpu.memory_space<vmem>>, vector<160x32xf32>,
    %c0_38 = arith.constant 0 : index
    %c0_39 = arith.constant 0 : index
    %36 = vector.load %arg17[%c0_38, %c0_39] : memref<160x288xf32, #tpu.memory_space<vmem>>, vector<160x288xf32>
    %c0_40 = arith.constant 0 : index
    %c0_41 = arith.constant 0 : index
    %37 = vector.load %arg4[%c0_40, %c0_41] : memref<288x64xf32, #tpu.memory_space<vmem>>, vector<288x64xf32>
    %cst_42 = arith.constant dense<0.000000e+00> : vector<160x64xf32>
    %38 = tpu.matmul %36, %37, %cst_42 {dimension_numbers = #tpu.dot_dimension_numbers<[1], [0], [0], [1], [0, 0, 1, 1], [], []>} : vector<160x288xf32>, vector<288x64xf32>, vector<160x64xf32> -> vector<160x64xf32>
    %c0_43 = arith.constant 0 : index
    %c0_44 = arith.constant 0 : index
    %39 = vector.load %arg5[%c0_43, %c0_44] : memref<1x64xf32, #tpu.memory_space<vmem>>, vector<1x64xf32>
    %40 = vector.broadcast %39 : vector<1x64xf32> to vector<160x64xf32>
    %41 = arith.addf %38, %40 : vector<160x64xf32>
    %cst_45 = arith.constant 0.000000e+00 : f32
    %42 = vector.broadcast %cst_45 : f32 to vector<160x64xf32>
    %43 = arith.maximumf %41, %42 : vector<160x64xf32>
    %44 = vector.broadcast %0 : vector<160x1xf32> to vector<160x64xf32>
    %45 = arith.mulf %43, %44 : vector<160x64xf32>
    %c16_46 = arith.constant 16 : index
    %c0_47 = arith.constant 0 : index
    %46 = vector.load %arg16[%c16_46, %c0_47] : memref<192x64xf32, #tpu.memory_space<vmem>>, vector<160x64xf32>
    tpu.vector_store %arg16[%c16_46, %c0_47], %45 {strides = array<i32>} : memref<192x64xf32, #tpu.memory_space<vmem>>, vector<160x64xf32>,
    %c7_48 = arith.constant 7 : index
    %c0_49 = arith.constant 0 : index
    %47 = vector.load %arg16[%c7_48, %c0_49] : memref<192x64xf32, #tpu.memory_space<vmem>>, vector<160x64xf32>
    %c0_50 = arith.constant 0 : index
    %c0_51 = arith.constant 0 : index
    %48 = vector.load %arg18[%c0_50, %c0_51] : memref<160x576xf32, #tpu.memory_space<vmem>>, vector<160x64xf32>
    tpu.vector_store %arg18[%c0_50, %c0_51], %47 {strides = array<i32>} : memref<160x576xf32, #tpu.memory_space<vmem>>, vector<160x64xf32>,
    %c8_52 = arith.constant 8 : index
    %c0_53 = arith.constant 0 : index
    %49 = vector.load %arg16[%c8_52, %c0_53] : memref<192x64xf32, #tpu.memory_space<vmem>>, vector<160x64xf32>
    %c0_54 = arith.constant 0 : index
    %c64_55 = arith.constant 64 : index
    %50 = vector.load %arg18[%c0_54, %c64_55] : memref<160x576xf32, #tpu.memory_space<vmem>>, vector<160x64xf32>
    tpu.vector_store %arg18[%c0_54, %c64_55], %49 {strides = array<i32>} : memref<160x576xf32, #tpu.memory_space<vmem>>, vector<160x64xf32>,
    %c9_56 = arith.constant 9 : index
    %c0_57 = arith.constant 0 : index
    %51 = vector.load %arg16[%c9_56, %c0_57] : memref<192x64xf32, #tpu.memory_space<vmem>>, vector<160x64xf32>
    %c0_58 = arith.constant 0 : index
    %c128_59 = arith.constant 128 : index
    %52 = vector.load %arg18[%c0_58, %c128_59] : memref<160x576xf32, #tpu.memory_space<vmem>>, vector<160x64xf32>
    tpu.vector_store %arg18[%c0_58, %c128_59], %51 {strides = array<i32>} : memref<160x576xf32, #tpu.memory_space<vmem>>, vector<160x64xf32>,
    %c15_60 = arith.constant 15 : index
    %c0_61 = arith.constant 0 : index
    %53 = vector.load %arg16[%c15_60, %c0_61] : memref<192x64xf32, #tpu.memory_space<vmem>>, vector<160x64xf32>
    %c0_62 = arith.constant 0 : index
    %c192_63 = arith.constant 192 : index
    %54 = vector.load %arg18[%c0_62, %c192_63] : memref<160x576xf32, #tpu.memory_space<vmem>>, vector<160x64xf32>
    tpu.vector_store %arg18[%c0_62, %c192_63], %53 {strides = array<i32>} : memref<160x576xf32, #tpu.memory_space<vmem>>, vector<160x64xf32>,
    %c16_64 = arith.constant 16 : index
    %c0_65 = arith.constant 0 : index
    %55 = vector.load %arg16[%c16_64, %c0_65] : memref<192x64xf32, #tpu.memory_space<vmem>>, vector<160x64xf32>
    %c0_66 = arith.constant 0 : index
    %c256_67 = arith.constant 256 : index
    %56 = vector.load %arg18[%c0_66, %c256_67] : memref<160x576xf32, #tpu.memory_space<vmem>>, vector<160x64xf32>
    tpu.vector_store %arg18[%c0_66, %c256_67], %55 {strides = array<i32>} : memref<160x576xf32, #tpu.memory_space<vmem>>, vector<160x64xf32>,
    %c17_68 = arith.constant 17 : index
    %c0_69 = arith.constant 0 : index
    %57 = vector.load %arg16[%c17_68, %c0_69] : memref<192x64xf32, #tpu.memory_space<vmem>>, vector<160x64xf32>
    %c0_70 = arith.constant 0 : index
    %c320 = arith.constant 320 : index
    %58 = vector.load %arg18[%c0_70, %c320] : memref<160x576xf32, #tpu.memory_space<vmem>>, vector<160x64xf32>
    tpu.vector_store %arg18[%c0_70, %c320], %57 {strides = array<i32>} : memref<160x576xf32, #tpu.memory_space<vmem>>, vector<160x64xf32>,
    %c23_71 = arith.constant 23 : index
    %c0_72 = arith.constant 0 : index
    %59 = vector.load %arg16[%c23_71, %c0_72] : memref<192x64xf32, #tpu.memory_space<vmem>>, vector<160x64xf32>
    %c0_73 = arith.constant 0 : index
    %c384 = arith.constant 384 : index
    %60 = vector.load %arg18[%c0_73, %c384] : memref<160x576xf32, #tpu.memory_space<vmem>>, vector<160x64xf32>
    tpu.vector_store %arg18[%c0_73, %c384], %59 {strides = array<i32>} : memref<160x576xf32, #tpu.memory_space<vmem>>, vector<160x64xf32>,
    %c24_74 = arith.constant 24 : index
    %c0_75 = arith.constant 0 : index
    %61 = vector.load %arg16[%c24_74, %c0_75] : memref<192x64xf32, #tpu.memory_space<vmem>>, vector<160x64xf32>
    %c0_76 = arith.constant 0 : index
    %c448 = arith.constant 448 : index
    %62 = vector.load %arg18[%c0_76, %c448] : memref<160x576xf32, #tpu.memory_space<vmem>>, vector<160x64xf32>
    tpu.vector_store %arg18[%c0_76, %c448], %61 {strides = array<i32>} : memref<160x576xf32, #tpu.memory_space<vmem>>, vector<160x64xf32>,
    %c25_77 = arith.constant 25 : index
    %c0_78 = arith.constant 0 : index
    %63 = vector.load %arg16[%c25_77, %c0_78] : memref<192x64xf32, #tpu.memory_space<vmem>>, vector<160x64xf32>
    %c0_79 = arith.constant 0 : index
    %c512 = arith.constant 512 : index
    %64 = vector.load %arg18[%c0_79, %c512] : memref<160x576xf32, #tpu.memory_space<vmem>>, vector<160x64xf32>
    tpu.vector_store %arg18[%c0_79, %c512], %63 {strides = array<i32>} : memref<160x576xf32, #tpu.memory_space<vmem>>, vector<160x64xf32>,
    %c0_80 = arith.constant 0 : index
    %c0_81 = arith.constant 0 : index
    %65 = vector.load %arg18[%c0_80, %c0_81] : memref<160x576xf32, #tpu.memory_space<vmem>>, vector<160x576xf32>
    %c0_82 = arith.constant 0 : index
    %c0_83 = arith.constant 0 : index
    %66 = vector.load %arg6[%c0_82, %c0_83] : memref<576x128xf32, #tpu.memory_space<vmem>>, vector<576x128xf32>
    %cst_84 = arith.constant dense<0.000000e+00> : vector<160x128xf32>
    %67 = tpu.matmul %65, %66, %cst_84 {dimension_numbers = #tpu.dot_dimension_numbers<[1], [0], [0], [1], [0, 0, 1, 1], [], []>} : vector<160x576xf32>, vector<576x128xf32>, vector<160x128xf32> -> vector<160x128xf32>
    %c0_85 = arith.constant 0 : index
    %c0_86 = arith.constant 0 : index
    %68 = vector.load %arg7[%c0_85, %c0_86] : memref<1x128xf32, #tpu.memory_space<vmem>>, vector<1x128xf32>
    %69 = vector.broadcast %68 : vector<1x128xf32> to vector<160x128xf32>
    %70 = arith.addf %67, %69 : vector<160x128xf32>
    %cst_87 = arith.constant 0.000000e+00 : f32
    %71 = vector.broadcast %cst_87 : f32 to vector<160x128xf32>
    %72 = arith.maximumf %70, %71 : vector<160x128xf32>
    %c0_88 = arith.constant 0 : index
    %c0_89 = arith.constant 0 : index
    %73 = vector.load %arg8[%c0_88, %c0_89] : memref<128x2xf32, #tpu.memory_space<vmem>>, vector<128x2xf32>
    %cst_90 = arith.constant dense<0.000000e+00> : vector<160x2xf32>
    %74 = tpu.matmul %72, %73, %cst_90 {dimension_numbers = #tpu.dot_dimension_numbers<[1], [0], [0], [1], [0, 0, 1, 1], [], []>} : vector<160x128xf32>, vector<128x2xf32>, vector<160x2xf32> -> vector<160x2xf32>
    %c0_91 = arith.constant 0 : index
    %c0_92 = arith.constant 0 : index
    %75 = vector.load %arg9[%c0_91, %c0_92] : memref<1x2xf32, #tpu.memory_space<vmem>>, vector<1x2xf32>
    %76 = vector.broadcast %75 : vector<1x2xf32> to vector<160x2xf32>
    %77 = arith.addf %74, %76 : vector<160x2xf32>
    %cst_93 = arith.constant 0.000000e+00 : f32
    %78 = vector.broadcast %cst_93 : f32 to vector<160x2xf32>
    %79 = arith.maximumf %77, %78 : vector<160x2xf32>
    %80 = vector.broadcast %0 : vector<160x1xf32> to vector<160x2xf32>
    %81 = arith.mulf %79, %80 : vector<160x2xf32>
    %82 = vector.extract_strided_slice %81 {offsets = [0, 0], sizes = [160, 1], strides = [1, 1]} : vector<160x2xf32> to vector<160x1xf32>
    %c0_94 = arith.constant 0 : index
    %c0_95 = arith.constant 0 : index
    %83 = vector.load %arg10[%c0_94, %c0_95] : memref<160x10xf32, #tpu.memory_space<vmem>>, vector<160x10xf32>
    %84 = vector.broadcast %82 : vector<160x1xf32> to vector<160x10xf32>
    %85 = arith.mulf %84, %83 : vector<160x10xf32>
    %86 = vector.extract_strided_slice %81 {offsets = [0, 1], sizes = [160, 1], strides = [1, 1]} : vector<160x2xf32> to vector<160x1xf32>
    %c0_96 = arith.constant 0 : index
    %c0_97 = arith.constant 0 : index
    %87 = vector.load %arg11[%c0_96, %c0_97] : memref<160x10xf32, #tpu.memory_space<vmem>>, vector<160x10xf32>
    %88 = vector.broadcast %86 : vector<160x1xf32> to vector<160x10xf32>
    %89 = arith.mulf %88, %87 : vector<160x10xf32>
    %90 = arith.addf %85, %89 : vector<160x10xf32>
    %91 = vector.extract_strided_slice %90 {offsets = [0, 0], sizes = [80, 10], strides = [1, 1]} : vector<160x10xf32> to vector<80x10xf32>
    %cst_98 = arith.constant dense<0.000000e+00> : vector<10xf32>
    %92 = vector.multi_reduction <add>, %91, %cst_98 [0] : vector<80x10xf32> to vector<10xf32>
    %93 = vector.shape_cast %92 : vector<10xf32> to vector<1x10xf32>
    %94 = vector.extract_strided_slice %90 {offsets = [80, 0], sizes = [80, 10], strides = [1, 1]} : vector<160x10xf32> to vector<80x10xf32>
    %cst_99 = arith.constant dense<0.000000e+00> : vector<10xf32>
    %95 = vector.multi_reduction <add>, %94, %cst_99 [0] : vector<80x10xf32> to vector<10xf32>
    %96 = vector.shape_cast %95 : vector<10xf32> to vector<1x10xf32>
    %97 = tpu.concatenate %93, %96 in 0 : vector<1x10xf32>, vector<1x10xf32> -> vector<2x10xf32>
    %c0_100 = arith.constant 0 : index
    %c0_101 = arith.constant 0 : index
    %98 = vector.load %arg12[%c0_100, %c0_101] : memref<1x10xf32, #tpu.memory_space<vmem>>, vector<1x10xf32>
    %99 = vector.broadcast %98 : vector<1x10xf32> to vector<2x10xf32>
    %100 = arith.addf %97, %99 : vector<2x10xf32>
    %cst_102 = arith.constant dense<0xFF800000> : vector<2xf32>
    %101 = vector.multi_reduction <maximumf>, %100, %cst_102 [1] : vector<2x10xf32> to vector<2xf32>
    %102 = vector.shape_cast %101 : vector<2xf32> to vector<2x1xf32>
    %103 = vector.broadcast %102 : vector<2x1xf32> to vector<2x10xf32>
    %104 = arith.subf %100, %103 : vector<2x10xf32>
    %105 = math.exp %104 : vector<2x10xf32>
    %cst_103 = arith.constant dense<0.000000e+00> : vector<2xf32>
    %106 = vector.multi_reduction <add>, %105, %cst_103 [1] : vector<2x10xf32> to vector<2xf32>
    %107 = vector.shape_cast %106 : vector<2xf32> to vector<2x1xf32>
    %108 = vector.broadcast %107 : vector<2x1xf32> to vector<2x10xf32>
    %109 = arith.divf %105, %108 : vector<2x10xf32>
    %c0_104 = arith.constant 0 : index
    %c0_105 = arith.constant 0 : index
    %110 = vector.load %arg14[%c0_104, %c0_105] : memref<2x10xf32, #tpu.memory_space<vmem>>, vector<2x10xf32>
    tpu.vector_store %arg14[%c0_104, %c0_105], %109 {strides = array<i32>} : memref<2x10xf32, #tpu.memory_space<vmem>>, vector<2x10xf32>,
    return
  }
  func.func @transform_0(%arg0: i32) -> (i32, i32) {
    %c0_i32 = arith.constant 0 : i32
    %c0_i32_0 = arith.constant 0 : i32
    return %arg0, %c0_i32 : i32, i32
  }
  func.func @transform_1(%arg0: i32) -> (i32, i32) {
    %c0_i32 = arith.constant 0 : i32
    %c0_i32_0 = arith.constant 0 : i32
    %c0_i32_1 = arith.constant 0 : i32
    return %c0_i32, %c0_i32_0 : i32, i32
  }
  func.func @transform_2(%arg0: i32) -> (i32, i32) {
    %c0_i32 = arith.constant 0 : i32
    %c0_i32_0 = arith.constant 0 : i32
    %c0_i32_1 = arith.constant 0 : i32
    return %c0_i32, %c0_i32_0 : i32, i32
  }
  func.func @transform_3(%arg0: i32) -> (i32, i32) {
    %c0_i32 = arith.constant 0 : i32
    %c0_i32_0 = arith.constant 0 : i32
    %c0_i32_1 = arith.constant 0 : i32
    return %c0_i32, %c0_i32_0 : i32, i32
  }
  func.func @transform_4(%arg0: i32) -> (i32, i32) {
    %c0_i32 = arith.constant 0 : i32
    %c0_i32_0 = arith.constant 0 : i32
    %c0_i32_1 = arith.constant 0 : i32
    return %c0_i32, %c0_i32_0 : i32, i32
  }
  func.func @transform_5(%arg0: i32) -> (i32, i32) {
    %c0_i32 = arith.constant 0 : i32
    %c0_i32_0 = arith.constant 0 : i32
    %c0_i32_1 = arith.constant 0 : i32
    return %c0_i32, %c0_i32_0 : i32, i32
  }
  func.func @transform_6(%arg0: i32) -> (i32, i32) {
    %c0_i32 = arith.constant 0 : i32
    %c0_i32_0 = arith.constant 0 : i32
    %c0_i32_1 = arith.constant 0 : i32
    return %c0_i32, %c0_i32_0 : i32, i32
  }
  func.func @transform_7(%arg0: i32) -> (i32, i32) {
    %c0_i32 = arith.constant 0 : i32
    %c0_i32_0 = arith.constant 0 : i32
    %c0_i32_1 = arith.constant 0 : i32
    return %c0_i32, %c0_i32_0 : i32, i32
  }
  func.func @transform_8(%arg0: i32) -> (i32, i32) {
    %c0_i32 = arith.constant 0 : i32
    %c0_i32_0 = arith.constant 0 : i32
    %c0_i32_1 = arith.constant 0 : i32
    return %c0_i32, %c0_i32_0 : i32, i32
  }
  func.func @transform_9(%arg0: i32) -> (i32, i32) {
    %c0_i32 = arith.constant 0 : i32
    %c0_i32_0 = arith.constant 0 : i32
    %c0_i32_1 = arith.constant 0 : i32
    return %c0_i32, %c0_i32_0 : i32, i32
  }
  func.func @transform_10(%arg0: i32) -> (i32, i32) {
    %c0_i32 = arith.constant 0 : i32
    %c0_i32_0 = arith.constant 0 : i32
    %c0_i32_1 = arith.constant 0 : i32
    return %c0_i32, %c0_i32_0 : i32, i32
  }
  func.func @transform_11(%arg0: i32) -> (i32, i32) {
    %c0_i32 = arith.constant 0 : i32
    %c0_i32_0 = arith.constant 0 : i32
    %c0_i32_1 = arith.constant 0 : i32
    return %c0_i32, %c0_i32_0 : i32, i32
  }
  func.func @transform_12(%arg0: i32) -> (i32, i32) {
    %c0_i32 = arith.constant 0 : i32
    %c0_i32_0 = arith.constant 0 : i32
    %c0_i32_1 = arith.constant 0 : i32
    return %c0_i32, %c0_i32_0 : i32, i32
  }
  func.func @transform_13(%arg0: i32) -> (i32, i32) {
    %c0_i32 = arith.constant 0 : i32
    %c0_i32_0 = arith.constant 0 : i32
    return %arg0, %c0_i32 : i32, i32
  }
}

</mosaic_0001>

<bundles_post_ra>
// kernel: actor_forward.1
= control target key start
LH: loop header
LB: loop body
LE: loop exit
PB: predicated region body
PF: predicated region fallthrough
CT: control target
= control target key end

     0   :  { %vm165_vm0 = vcmask 1040384   ;;  %vm104_vm1 = vcmask 72704   ;;  %v6829_v4 = vmov 0   ;;  %s6815_s0 = inlined_call_operand.vmem [shape: f32[160,9], index: 0, kind: input, shape index: {}]   ;;  %s6816_s1 = inlined_call_operand.vmem [shape: f32[9,32], index: 1, kind: input, shape index: {}]   ;;  %s6817_s2 = inlined_call_operand.vmem [shape: f32[1,32], index: 2, kind: input, shape index: {}]   ;;  %s6818_s3 = inlined_call_operand.vmem [shape: f32[288,64], index: 3, kind: input, shape index: {}]   ;;  %s6819_s4 = inlined_call_operand.vmem [shape: f32[1,64], index: 4, kind: input, shape index: {}]   ;;  %s6820_s5 = inlined_call_operand.vmem [shape: f32[576,128], index: 5, kind: input, shape index: {}]   ;;  %s6821_s6 = inlined_call_operand.vmem [shape: f32[1,128], index: 6, kind: input, shape index: {}]   ;;  %s6822_s7 = inlined_call_operand.vmem [shape: f32[128,2], index: 7, kind: input, shape index: {}]   ;;  %s6823_s8 = inlined_call_operand.vmem [shape: f32[1,2], index: 8, kind: input, shape index: {}]   ;;  %s6824_s9 = inlined_call_operand.vmem [shape: f32[160,10], index: 9, kind: input, shape index: {}]   ;;  %s6825_s10 = inlined_call_operand.vmem [shape: f32[160,10], index: 10, kind: input, shape index: {}]   ;;  %s6826_s11 = inlined_call_operand.vmem [shape: f32[1,10], index: 11, kind: input, shape index: {}]   ;;  %s6827_s12 = inlined_call_operand.vmem [shape: f32[160,1], index: 12, kind: input, shape index: {}]   ;;  %s6828_s13 = inlined_call_operand.hbm [shape: f32[2,10], index: 13, kind: output, shape index: {}]  }
   0x1   :  { %v96_v0 = vld [vmem:[%s6816_s1 + $0x8] sm:$0x1]  ;;  %v95_v1 = vld [vmem:[%s6816_s1] sm:$0xff]  ;;  %4347 = vset.pattern.permute.xlu0 %v6829_v4  ;;  %v77_v5 = vld [vmem:[%s6815_s0 + $0x10] sm:$0xff]  ;;  %4348 = vset.pattern.permute.xlu1 %v6829_v4 }
   0x2   :  { %v75_v2 = vld [vmem:[%s6815_s0] sm:$0xff]  ;;  %4096 = vmatprep.subr.msk.mxu0 %vm165_vm0, %v96_v0  ;;  %v76_v3 = vld [vmem:[%s6815_s0 + $0x8] sm:$0xff]  ;;  %v78_v6 = vld [vmem:[%s6815_s0 + $0x18] sm:$0xff] }
   0x3   :  { %4100 = vmatprep.mubr.msk.f32.mxu0 %vm104_vm1, %v75_v2  ;;  %4097 = vmatpush3.msk.msra.mxu0 %vm165_vm0, %v96_v0  ;;  %v45_v7 = vld [vmem:[%s6827_s12] sm:$0xff]  ;;  %v46_v9 = vld [vmem:[%s6827_s12 + $0x8] sm:$0xff]  ;;  %v47_v10 = vld [vmem:[%s6827_s12 + $0x10] sm:$0xff] }
   0x4   :  { %4098 = vmatprep.subr.mxu0 %v95_v1  ;;  %v79_v8 = vld [vmem:[%s6815_s0 + $0x20] sm:$0xff]  ;;  %356 = vperm.xlu0 %4347, %v45_v7   ;;  %v80_v11 = vld [vmem:[%s6815_s0 + $0x28] sm:$0xff]  ;;  %v48_v12 = vld [vmem:[%s6827_s12 + $0x18] sm:$0xff] }
   0x5   :  { %4099 = vmatpush3.msra.mxu0 %v95_v1  ;;  %366 = vperm.xlu1 %4348, %v47_v10   ;;  %v81_v13 = vld [vmem:[%s6815_s0 + $0x30] sm:$0xff]  ;;  %v49_v14 = vld [vmem:[%s6827_s12 + $0x20] sm:$0xff]  ;;  %v82_v15 = vld [vmem:[%s6815_s0 + $0x38] sm:$0xff] }
   0x6   :  { %4101 = vmatmul.mubr.msk.f32.vlgmr.msra.gmra.mxu0 %vm104_vm1, %v76_v3  ;;  %v50_v16 = vld [vmem:[%s6827_s12 + $0x28] sm:$0xff] }
   0x7   :  { %4103 = vmatprep.mubr.msk.f32.mxu0 %vm104_vm1, %v77_v5 }
   0x8   :  { %361 = vperm.xlu0 %4347, %v46_v9  }
   0x9   :  { %371 = vperm.xlu1 %4348, %v48_v12  }
   0xa   :  { %4104 = vmatmul.mubr.msk.f32.gmra.mxu0 %vm104_vm1, %v78_v6 }
   0xb   :  { %4106 = vmatprep.mubr.msk.f32.mxu0 %vm104_vm1, %v79_v8 }
   0xe   :  { %4107 = vmatmul.mubr.msk.f32.gmra.mxu0 %vm104_vm1, %v80_v11 }
   0xf   :  { %4109 = vmatprep.mubr.msk.f32.mxu0 %vm104_vm1, %v81_v13 }
  0x10   :  { %18 = vsyncpa [#allocation7], 0  ;;  %v83_v17 = vld [vmem:[%s6815_s0 + $0x40] sm:$0xff]  ;;  %376 = vperm.xlu0 %4347, %v49_v14   ;;  %v51_v18 = vld [vmem:[%s6827_s12 + $0x30] sm:$0xff]  ;;  %381 = vperm.xlu1 %4348, %v50_v16   ;;  %vm65_vm2 = vcmask 261120   ;;  %v6831_v43 = vmov 0.0  }
  0x11   :  { %v84_v19 = vld [vmem:[%s6815_s0 + $0x48] sm:$0xff]  ;;  %v52_v20 = vld [vmem:[%s6827_s12 + $0x38] sm:$0xff]  ;;  %v85_v21 = vld [vmem:[%s6815_s0 + $0x50] sm:$0xff]  ;;  %67 = vst.msk [vmem:[#allocation2 + $0x8] sm:$0xff] %vm65_vm2, %v6831_v43  ;;  %1500 = vmatprep.subr.mxu1 %v6831_v43  ;;  %vm634_vm3 = vcmask 523520   ;;  %s4409_s30 = smov 96  }
  0x12   :  { %4110 = vmatmul.mubr.msk.f32.gmra.mxu0 %vm104_vm1, %v82_v15  ;;  %v53_v22 = vld [vmem:[%s6827_s12 + $0x40] sm:$0xff]  ;;  %v86_v23 = vld [vmem:[%s6815_s0 + $0x58] sm:$0xff]  ;;  %v54_v24 = vld [vmem:[%s6827_s12 + $0x48] sm:$0xff]  ;;  %66 = vst.msk [vmem:[#allocation2] sm:$0xff] %vm65_vm2, %v6831_v43  ;;  %s4410_s1 = smov 64   ;;  %vm755_vm4 = vcmask 785920  }
  0x13   :  { %4112 = vmatprep.mubr.msk.f32.mxu0 %vm104_vm1, %v83_v17  ;;  %v87_v25 = vld [vmem:[%s6815_s0 + $0x60] sm:$0xff]  ;;  %v55_v26 = vld [vmem:[%s6827_s12 + $0x50] sm:$0xff]  ;;  %v88_v27 = vld [vmem:[%s6815_s0 + $0x68] sm:$0xff]  ;;  %68 = vst.msk [vmem:[#allocation2 + $0xb0] sm:$0xff] %vm65_vm2, %v6831_v43  ;;  %vm876_vm5 = vcmask 1048320   ;;  %vm70_vm6 = vcmask 523264  }
  0x14   :  { %386 = vperm.xlu0 %4347, %v51_v18   ;;  %391 = vperm.xlu1 %4348, %v52_v20   ;;  %v56_v28 = vld [vmem:[%s6827_s12 + $0x58] sm:$0xff]  ;;  %v89_v29 = vld [vmem:[%s6815_s0 + $0x70] sm:$0xff]  ;;  %v57_v30 = vld [vmem:[%s6827_s12 + $0x60] sm:$0xff]  ;;  %69 = vst.msk [vmem:[#allocation2 + $0xb8] sm:$0xff] %vm65_vm2, %v6831_v43  ;;  %vm2030_vm7 = vcmask 1048064   ;;  %vm3833_vm8 = vcmask 80896  }
  0x15   :  { %v90_v31 = vld [vmem:[%s6815_s0 + $0x78] sm:$0xff]  ;;  %v58_v32 = vld [vmem:[%s6827_s12 + $0x68] sm:$0xff]  ;;  %v91_v33 = vld [vmem:[%s6815_s0 + $0x80] sm:$0xff]  ;;  %vm3893_vm9 = vcmask 74752  }
  0x16   :  { %4113 = vmatmul.mubr.msk.f32.gmra.mxu0 %vm104_vm1, %v84_v19  ;;  %v59_v34 = vld [vmem:[%s6827_s12 + $0x70] sm:$0xff]  ;;  %v92_v35 = vld [vmem:[%s6815_s0 + $0x88] sm:$0xff]  ;;  %v60_v36 = vld [vmem:[%s6827_s12 + $0x78] sm:$0xff] }
  0x17   :  { %4115 = vmatprep.mubr.msk.f32.mxu0 %vm104_vm1, %v85_v21  ;;  %v93_v37 = vld [vmem:[%s6815_s0 + $0x90] sm:$0xff]  ;;  %v61_v38 = vld [vmem:[%s6827_s12 + $0x80] sm:$0xff]  ;;  %v94_v39 = vld [vmem:[%s6815_s0 + $0x98] sm:$0xff]  ;;  %s4408_s0 = smov 32  }
  0x18   :  { %396 = vperm.xlu0 %4347, %v53_v22   ;;  %401 = vperm.xlu1 %4348, %v54_v24   ;;  %v62_v40 = vld [vmem:[%s6827_s12 + $0x88] sm:$0xff]  ;;  %v63_v41 = vld [vmem:[%s6827_s12 + $0x90] sm:$0xff]  ;;  %v64_v42 = vld [vmem:[%s6827_s12 + $0x98] sm:$0xff] }
  0x19   :  { %v534_v44 = vld [vmem:[#allocation2 + $0x8] sm:$0xff]  ;;  %v1432_v45 = vld [vmem:[%s6818_s3 + $0x118] sm:$0xff]  ;;  %v1431_v46 = vld [vmem:[%s6818_s3 + $0x110] sm:$0xff] }
  0x1a   :  { %4116 = vmatmul.mubr.msk.f32.gmra.mxu0 %vm104_vm1, %v86_v23  ;;  %4130 = vmatprep.subr.mxu0 %v1432_v45  ;;  %v1430_v47 = vld [vmem:[%s6818_s3 + $0x108] sm:$0xff]  ;;  %v1429_v48 = vld [vmem:[%s6818_s3 + $0x100] sm:$0xff]  ;;  %v1412_v52 = vld [vmem:[%s6818_s3 + $0x78] sm:$0xff] }
  0x1b   :  { %4118 = vmatprep.mubr.msk.f32.mxu0 %vm104_vm1, %v87_v25  ;;  %4131 = vmatpush3.msra.mxu0 %v1432_v45  ;;  %v1411_v53 = vld [vmem:[%s6818_s3 + $0x70] sm:$0xff]  ;;  %v1410_v55 = vld [vmem:[%s6818_s3 + $0x68] sm:$0xff]  ;;  %v1409_v56 = vld [vmem:[%s6818_s3 + $0x60] sm:$0xff] }
  0x1c   :  { %406 = vperm.xlu0 %4347, %v55_v26   ;;  %411 = vperm.xlu1 %4348, %v56_v28   ;;  %v1408_v58 = vld [vmem:[%s6818_s3 + $0x58] sm:$0xff]  ;;  %v1407_v59 = vld [vmem:[%s6818_s3 + $0x50] sm:$0xff]  ;;  %v1406_v60 = vld [vmem:[%s6818_s3 + $0x48] sm:$0xff] }
  0x1d   :  { %4132 = vmatprep.subr.mxu0 %v1431_v46  ;;  %1501 = vmatpush1.msra.mxu1 %v1412_v52  ;;  %v1405_v61 = vld [vmem:[%s6818_s3 + $0x40] sm:$0xff]  ;;  %v1404_v63 = vld [vmem:[%s6818_s3 + $0x38] sm:$0xff]  ;;  %v1403_v0 = vld [vmem:[%s6818_s3 + $0x30] sm:$0xff] }
  0x1e   :  { %4119 = vmatmul.mubr.msk.f32.gmra.mxu0 %vm104_vm1, %v88_v27  ;;  %1502 = vmatprep.subr.mxu1 %v6831_v43  ;;  %v1402_v2 = vld [vmem:[%s6818_s3 + $0x28] sm:$0xff]  ;;  %v1401_v3 = vld [vmem:[%s6818_s3 + $0x20] sm:$0xff]  ;;  %v1400_v5 = vld [vmem:[%s6818_s3 + $0x18] sm:$0xff] }
  0x1f   :  { %4121 = vmatprep.mubr.msk.f32.mxu0 %vm104_vm1, %v89_v29  ;;  %4133 = vmatpush3.msra.mxu0 %v1431_v46  ;;  %v1399_v6 = vld [vmem:[%s6818_s3 + $0x10] sm:$0xff]  ;;  %v1398_v8 = vld [vmem:[%s6818_s3 + $0x8] sm:$0xff]  ;;  %v1397_v9 = vld [vmem:[%s6818_s3] sm:$0xff] }
  0x20   :  { %416 = vperm.xlu0 %4347, %v57_v30   ;;  %421 = vperm.xlu1 %4348, %v58_v32   ;;  %v1428_v11 = vld [vmem:[%s6818_s3 + $0xf8] sm:$0xff]  ;;  %v1427_v12 = vld [vmem:[%s6818_s3 + $0xf0] sm:$0xff]  ;;  %v1426_v14 = vld [vmem:[%s6818_s3 + $0xe8] sm:$0xff] }
  0x21   :  { %4134 = vmatprep.subr.mxu0 %v1430_v47  ;;  %1503 = vmatpush1.msra.mxu1 %v1411_v53  ;;  %v1425_v15 = vld [vmem:[%s6818_s3 + $0xe0] sm:$0xff]  ;;  %v1424_v18 = vld [vmem:[%s6818_s3 + $0xd8] sm:$0xff]  ;;  %v1423_v20 = vld [vmem:[%s6818_s3 + $0xd0] sm:$0xff] }
  0x22   :  { %4122 = vmatmul.mubr.msk.f32.gmra.mxu0 %vm104_vm1, %v90_v31  ;;  %1504 = vmatprep.subr.mxu1 %v6831_v43  ;;  %v494_v19 = vld [vmem:[#allocation2 + $0x7] sm:$0xff]  ;;  %v4771_v22 = vld [vmem:[%s6817_s2] ss:$0 sm:$0xff]  ;;  %v1420_v31 = vld [vmem:[%s6818_s3 + $0xb8] sm:$0xff] }
  0x23   :  { %4124 = vmatprep.mubr.msk.f32.mxu0 %vm104_vm1, %v91_v33  ;;  %4135 = vmatpush3.msra.mxu0 %v1430_v47  ;;  %514 = vst.msk [vmem:[#allocation4] sm:$0xff] %vm65_vm2, %v494_v19  ;;  %v1422_v23 = vld [vmem:[%s6818_s3 + $0xc8] sm:$0xff]  ;;  %v1421_v28 = vld [vmem:[%s6818_s3 + $0xc0] sm:$0xff] }
  0x24   :  { %426 = vperm.xlu0 %4347, %v59_v34   ;;  %431 = vperm.xlu1 %4348, %v60_v36  }
  0x25   :  { %4136 = vmatprep.subr.mxu0 %v1429_v48  ;;  %1505 = vmatpush1.msra.mxu1 %v1410_v55 }
  0x26   :  { %4125 = vmatmul.mubr.msk.f32.gmra.mxu0 %vm104_vm1, %v92_v35  ;;  %1506 = vmatprep.subr.mxu1 %v6831_v43 }
  0x27   :  { %4127 = vmatprep.mubr.msk.f32.mxu0 %vm104_vm1, %v93_v37  ;;  %4137 = vmatpush3.msra.mxu0 %v1429_v48 }
  0x28   :  { %436 = vperm.xlu0 %4347, %v61_v38   ;;  %441 = vperm.xlu1 %4348, %v62_v40   ;;  %v1419_v38 = vld [vmem:[%s6818_s3 + $0xb0] sm:$0xff] }
  0x29   :  { %2810 = vmatprep.subr.mxu0 %v6831_v43  ;;  %1507 = vmatpush1.msra.mxu1 %v1409_v56  ;;  %v1417_v56 = vld [vmem:[%s6818_s3 + $0xa0] sm:$0xff] }
  0x2a   :  { %4128 = vmatmul.mubr.msk.f32.gmra.mxu0 %vm104_vm1, %v94_v39  ;;  %1508 = vmatprep.subr.mxu1 %v6831_v43 }
  0x2b   :  { %1509 = vmatpush1.msra.mxu1 %v1408_v58  ;;  %v1416_v58 = vld [vmem:[%s6818_s3 + $0x98] sm:$0xff] }
  0x2c   :  { %446 = vperm.xlu0 %4347, %v63_v41   ;;  %451 = vperm.xlu1 %4348, %v64_v42   ;;  %v1418_v42 = vld [vmem:[%s6818_s3 + $0xa8] sm:$0xff] }
  0x2d   :  { %1510 = vmatprep.subr.mxu1 %v6831_v43 }
  0x2e   :  { %1511 = vmatpush1.msra.mxu1 %v1407_v59 }
  0x2f   :  { %1512 = vmatprep.subr.mxu1 %v6831_v43 }
  0x30   :  { %574 = vrot.lane.b32.xlu1 %v534_v44, %s4408_s0  ;;  %1513 = vmatpush1.msra.mxu1 %v1406_v60 }
  0x31   :  { %1514 = vmatprep.subr.mxu1 %v6831_v43 }
  0x32   :  { %1515 = vmatpush1.msra.mxu1 %v1405_v61 }
  0x33   :  { %1516 = vmatprep.subr.mxu1 %v6831_v43 }
  0x34   :  { %1517 = vmatpush1.msra.mxu1 %v1404_v63 }
  0x35   :  { %1518 = vmatprep.subr.mxu1 %v6831_v43 }
  0x36   :  { %1519 = vmatpush1.msra.mxu1 %v1403_v0 }
  0x37   :  { %1520 = vmatprep.subr.mxu1 %v6831_v43 }
  0x38   :  { %1521 = vmatpush1.msra.mxu1 %v1402_v2 }
  0x39   :  { %1522 = vmatprep.subr.mxu1 %v6831_v43 }
  0x3a   :  { %1523 = vmatpush1.msra.mxu1 %v1401_v3 }
  0x3b   :  { %1524 = vmatprep.subr.mxu1 %v6831_v43 }
  0x3c   :  { %1525 = vmatpush1.msra.mxu1 %v1400_v5  ;;  %v1415_v5 = vld [vmem:[%s6818_s3 + $0x90] sm:$0xff] }
  0x3d   :  { %1526 = vmatprep.subr.mxu1 %v6831_v43 }
  0x3e   :  { %1527 = vmatpush1.msra.mxu1 %v1399_v6 }
  0x3f   :  { %1528 = vmatprep.subr.mxu1 %v6831_v43 }
  0x40   :  { %1529 = vmatpush1.msra.mxu1 %v1398_v8 }
  0x41   :  { %1530 = vmatprep.subr.mxu1 %v6831_v43 }
  0x42   :  { %1531 = vmatpush1.msra.mxu1 %v1397_v9 }
  0x43   :  { %1532 = vmatprep.subr.mxu1 %v6831_v43 }
  0x44   :  { %1533 = vmatpush2.msra.mxu1 %v1428_v11 }
  0x45   :  { %1534 = vmatprep.subr.mxu1 %v6831_v43 }
  0x46   :  { %1535 = vmatpush2.msra.mxu1 %v1427_v12 }
  0x47   :  { %1536 = vmatprep.subr.mxu1 %v6831_v43 }
  0x48   :  { %1537 = vmatpush2.msra.mxu1 %v1426_v14 }
  0x49   :  { %1538 = vmatprep.subr.mxu1 %v6831_v43 }
  0x4a   :  { %1539 = vmatpush2.msra.mxu1 %v1425_v15 }
  0x4b   :  { %1540 = vmatprep.subr.mxu1 %v6831_v43 }
  0x4c   :  { %1541 = vmatpush2.msra.mxu1 %v1424_v18 }
  0x4d   :  { %1542 = vmatprep.subr.mxu1 %v6831_v43 }
  0x4e   :  { %1543 = vmatpush2.msra.mxu1 %v1423_v20 }
  0x4f   :  { %1544 = vmatprep.subr.mxu1 %v6831_v43 }
  0x50   :  { %1545 = vmatpush2.msra.mxu1 %v1422_v23 }
  0x51   :  { %1546 = vmatprep.subr.mxu1 %v6831_v43 }
  0x52   :  { %1547 = vmatpush2.msra.mxu1 %v1421_v28 }
  0x53   :  { %1548 = vmatprep.subr.mxu1 %v6831_v43 }
  0x54   :  { %1549 = vmatpush2.msra.mxu1 %v1420_v31 }
  0x55   :  { %1550 = vmatprep.subr.mxu1 %v6831_v43 }
  0x56   :  { %1551 = vmatpush2.msra.mxu1 %v1419_v38 }
  0x57   :  { %1552 = vmatprep.subr.mxu1 %v6831_v43 }
  0x58   :  { %1553 = vmatpush2.msra.mxu1 %v1418_v42 }
  0x59   :  { %1554 = vmatprep.subr.mxu1 %v6831_v43 }
  0x5a   :  { %1555 = vmatpush2.msra.mxu1 %v1417_v56 }
  0x5b   :  { %1556 = vmatprep.subr.mxu1 %v6831_v43 }
  0x5c   :  { %1557 = vmatpush2.msra.mxu1 %v1416_v58 }
  0x5d   :  { %1558 = vmatprep.subr.mxu1 %v6831_v43 }
  0x5e   :  { %1559 = vmatpush2.msra.mxu1 %v1415_v5 }
  0x5f   :  { %1560 = vmatprep.subr.mxu1 %v6831_v43 }
  0x7f   :  { %v4744_v13 = vpop.permute.xlu0 %356 }
  0x80   :  { %v4656_v49 = vpop.permute.xlu1 %366 }
  0x83   :  { %v4757_v17 = vpop.permute.xlu0 %361 }
  0x84   :  { %v4658_v50 = vpop.permute.xlu1 %371 }
  0x8b   :  { %v4660_v51 = vpop.permute.xlu1 %381  ;;  %v4778_v24 = vpop.permute.xlu0 %376 }
  0x8f   :  { %v4668_v54 = vpop.permute.xlu1 %391  ;;  %v4792_v36 = vpop.permute.xlu0 %386 }
  0x93   :  { %v4679_v57 = vpop.permute.xlu1 %401  ;;  %v4818_v59 = vpop.permute.xlu0 %396 }
  0x97   :  { %v4696_v62 = vpop.permute.xlu1 %411  ;;  %v4846_v23 = vpop.permute.xlu0 %406 }
  0x98   :  { %6853 = vst [vmem:[#allocation9_spill] sm:$0xff] %v4696_v62  ;;  %6858 = vst [vmem:[#allocation14_spill] sm:$0xff] %v4846_v23 }
  0x9b   :  { %v4707_v1 = vpop.permute.xlu1 %421 }
  0x9c   :  { %6854 = vst [vmem:[#allocation10_spill] sm:$0xff] %v4707_v1 }
  0x9f   :  { %v4724_v7 = vpop.permute.xlu1 %431 }
  0xa0   :  { %6855 = vst [vmem:[#allocation11_spill] sm:$0xff] %v4724_v7 }
  0xa3   :  { %v4735_v10 = vpop.permute.xlu1 %441 }
  0xa4   :  { %6856 = vst [vmem:[#allocation12_spill] sm:$0xff] %v4735_v10 }
  0xa7   :  { %v4754_v16 = vpop.permute.xlu1 %451 }
  0xa8   :  { %6857 = vst [vmem:[#allocation13_spill] sm:$0xff] %v4754_v16 }
  0xab   :  { %v575_v21 = vpop.permute.xlu1 %574 }
  0xac   :  { %635 = vst.msk [vmem:[#allocation4] sm:$0xff] %vm634_vm3, %v575_v21  ;;  %v1414_v21 = vld [vmem:[%s6818_s3 + $0x88] sm:$0xff] }
  0xad   :  { %1561 = vmatpush2.msra.mxu1 %v1414_v21 }
  0xae   :  { %1562 = vmatprep.subr.mxu1 %v6831_v43 }
  0xc6   :  { %v4102_v25 = vpop.f32.mrf.mxu0 }
  0xc7   :  { %v241_v26 = vadd.f32 %v4102_v25, %v4771_v22 }
  0xc8   :  { %v235_v27 = vpop.f32.mrf.mxu0 }
  0xc9   :  { %v335_v29 = vmax.f32 %v241_v26, 0.0  ;;  %v236_v30 = vadd.f32 %v4771_v22, %v235_v27 }
  0xca   :  { %v4105_v32 = vpop.f32.mrf.mxu0 }
  0xcb   :  { %v455_v33 = vmul.f32 %v4757_v17, %v335_v29  ;;  %v334_v34 = vmax.f32 %v236_v30, 0.0  ;;  %v251_v35 = vadd.f32 %v4105_v32, %v4771_v22  ;;  %v1413_v32 = vld [vmem:[%s6818_s3 + $0x80] sm:$0xff] }
  0xcc   :  { %v245_v37 = vpop.f32.mrf.mxu0  ;;  %1563 = vmatpush2.msra.mxu1 %v1413_v32 }
  0xcd   :  { %475 = vst.msk [vmem:[#allocation2 + $0x18] sm:$0xff] %vm65_vm2, %v455_v33  ;;  %v454_v39 = vmul.f32 %v4744_v13, %v334_v34  ;;  %v337_v40 = vmax.f32 %v251_v35, 0.0  ;;  %v246_v41 = vadd.f32 %v4771_v22, %v245_v37  ;;  %4276 = vmatprep.subr.mxu1 %v6831_v43 }
  0xce   :  { %v4108_v44 = vpop.f32.mrf.mxu0 }
  0xcf   :  { %474 = vst.msk [vmem:[#allocation2 + $0x10] sm:$0xff] %vm65_vm2, %v454_v39  ;;  %v457_v45 = vmul.f32 %v4658_v50, %v337_v40  ;;  %v336_v46 = vmax.f32 %v246_v41, 0.0  ;;  %v261_v47 = vadd.f32 %v4108_v44, %v4771_v22 }
  0xd0   :  { %v255_v48 = vpop.f32.mrf.mxu0 }
  0xd1   :  { %477 = vst.msk [vmem:[#allocation2 + $0x28] sm:$0xff] %vm65_vm2, %v457_v45  ;;  %v456_v52 = vmul.f32 %v4656_v49, %v336_v46  ;;  %v339_v53 = vmax.f32 %v261_v47, 0.0  ;;  %v256_v55 = vadd.f32 %v4771_v22, %v255_v48 }
  0xd2   :  { %v4111_v60 = vpop.f32.mrf.mxu0 }
  0xd3   :  { %476 = vst.msk [vmem:[#allocation2 + $0x20] sm:$0xff] %vm65_vm2, %v456_v52  ;;  %v459_v61 = vmul.f32 %v4660_v51, %v339_v53  ;;  %v338_v63 = vmax.f32 %v256_v55, 0.0  ;;  %v271_v0 = vadd.f32 %v4111_v60, %v4771_v22  ;;  %v4901_v52 = vpop.permute.xlu0 %416 }
  0xd4   :  { %v265_v2 = vpop.f32.mrf.mxu0  ;;  %v1177_v3 = vld [vmem:[#allocation2 + $0x18] sm:$0xff]  ;;  %6859 = vst [vmem:[#allocation15_spill] sm:$0xff] %v4901_v52 }
  0xd5   :  { %479 = vst.msk [vmem:[#allocation2 + $0x38] sm:$0xff] %vm65_vm2, %v459_v61  ;;  %v458_v6 = vmul.f32 %v4778_v24, %v338_v63  ;;  %v341_v8 = vmax.f32 %v271_v0, 0.0  ;;  %v266_v9 = vadd.f32 %v4771_v22, %v265_v2  ;;  %1217 = vrot.lane.b32.xlu0 %v1177_v3, %s4409_s30  ;;  %578 = vrot.lane.b32.xlu1 %v1177_v3, %s4408_s0  ;;  %918 = vst.msk [vmem:[#allocation4 + $0x20] sm:$0xff] %vm65_vm2, %v1177_v3 }
  0xd6   :  { %v4114_v11 = vpop.f32.mrf.mxu0  ;;  %v4833_v12 = vld [vmem:[#allocation2 + $0x17] sm:$0xff]  ;;  %v776_v19 = vld [vmem:[#allocation2 + $0xf] sm:$0xff] }
  0xd7   :  { %478 = vst.msk [vmem:[#allocation2 + $0x30] sm:$0xff] %vm65_vm2, %v458_v6  ;;  %v461_v14 = vmul.f32 %v4668_v54, %v341_v8  ;;  %v340_v15 = vmax.f32 %v266_v9, 0.0  ;;  %v281_v18 = vadd.f32 %v4114_v11, %v4771_v22  ;;  %v4839_v20 = vld [vmem:[#allocation2 + $0x10] sm:$0xff]  ;;  %516 = vst.msk [vmem:[#allocation4 + $0x30] sm:$0xff] %vm65_vm2, %v4833_v12 }
  0xd8   :  { %v275_v25 = vpop.f32.mrf.mxu0  ;;  %v4848_v26 = vld [vmem:[#allocation2 + $0x11] sm:$0xff]  ;;  %v655_v27 = vld [vmem:[#allocation2 + $0x9] sm:$0xff]  ;;  %917 = vst.msk [vmem:[#allocation4 + $0x8] sm:$0xff] %vm65_vm2, %v4839_v20  ;;  %515 = vst.msk [vmem:[#allocation4 + $0x18] sm:$0xff] %vm65_vm2, %v776_v19 }
  0xd9   :  { %v4850_v28 = vld [vmem:[#allocation2 + $0x28] sm:$0xff]  ;;  %481 = vst.msk [vmem:[#allocation2 + $0x48] sm:$0xff] %vm65_vm2, %v461_v14  ;;  %v460_v29 = vmul.f32 %v4792_v36, %v340_v15  ;;  %v343_v30 = vmax.f32 %v281_v18, 0.0  ;;  %v276_v31 = vadd.f32 %v4771_v22, %v275_v25  ;;  %977 = vrot.lane.b32.xlu0 %v4848_v26, %s4408_s0  ;;  %695 = vrot.lane.b32.xlu1 %v655_v27, %s4410_s1 }
  0xda   :  { %920 = vst.msk [vmem:[#allocation4 + $0x50] sm:$0xff] %vm65_vm2, %v4850_v28  ;;  %v4867_v33 = vld [vmem:[#allocation2 + $0x21] sm:$0xff]  ;;  %v4117_v34 = vpop.f32.mrf.mxu0  ;;  %v4869_v35 = vld [vmem:[#allocation2 + $0x19] sm:$0xff] }
  0xdb   :  { %v4871_v37 = vld [vmem:[#allocation2 + $0x1f] sm:$0xff]  ;;  %1318 = vst.msk [vmem:[#allocation4 + $0x28] sm:$0xff] %vm65_vm2, %v4867_v33  ;;  %480 = vst.msk [vmem:[#allocation2 + $0x40] sm:$0xff] %vm65_vm2, %v460_v29  ;;  %v463_v38 = vmul.f32 %v4679_v57, %v343_v30  ;;  %v342_v39 = vmax.f32 %v276_v31, 0.0  ;;  %v291_v40 = vadd.f32 %v4117_v34, %v4771_v22  ;;  %v4882_v42 = vld [vmem:[#allocation2 + $0x27] sm:$0xff]  ;;  %v4952_v30 = vpop.permute.xlu0 %426 }
  0xdc   :  { %1317 = vst.msk [vmem:[#allocation4 + $0x10] sm:$0xff] %vm65_vm2, %v4869_v35  ;;  %v4880_v41 = vld [vmem:[#allocation2 + $0x20] sm:$0xff]  ;;  %517 = vst.msk [vmem:[#allocation4 + $0x48] sm:$0xff] %vm65_vm2, %v4871_v37  ;;  %v285_v44 = vpop.f32.mrf.mxu0  ;;  %v4887_v45 = vld [vmem:[#allocation2 + $0x38] sm:$0xff] }
  0xdd   :  { %518 = vst.msk [vmem:[#allocation4 + $0x60] sm:$0xff] %vm65_vm2, %v4882_v42  ;;  %919 = vst.msk [vmem:[#allocation4 + $0x38] sm:$0xff] %vm65_vm2, %v4880_v41  ;;  %v462_v46 = vmul.f32 %v4818_v59, %v342_v39  ;;  %v345_v47 = vmax.f32 %v291_v40, 0.0  ;;  %v286_v48 = vadd.f32 %v4771_v22, %v285_v44  ;;  %1097 = vrot.lane.b32.xlu0 %v4833_v12, %s4410_s1  ;;  %816 = vrot.lane.b32.xlu1 %v776_v19, %s4409_s30 }
  0xde   :  { %483 = vst.msk [vmem:[#allocation2 + $0x58] sm:$0xff] %vm65_vm2, %v463_v38  ;;  %922 = vst.msk [vmem:[#allocation4 + $0x80] sm:$0xff] %vm65_vm2, %v4887_v45  ;;  %v4120_v53 = vpop.f32.mrf.mxu0  ;;  %v4903_v55 = vld [vmem:[#allocation2 + $0x29] sm:$0xff]  ;;  %v4905_v56 = vld [vmem:[#allocation2 + $0x31] sm:$0xff] }
  0xdf   :  { %v4907_v58 = vld [vmem:[#allocation2 + $0x2f] sm:$0xff]  ;;  %482 = vst.msk [vmem:[#allocation2 + $0x50] sm:$0xff] %vm65_vm2, %v462_v46  ;;  %v465_v60 = vmul.f32 %v4696_v62, %v345_v47  ;;  %v344_v61 = vmax.f32 %v286_v48, 0.0  ;;  %v301_v63 = vadd.f32 %v4120_v53, %v4771_v22  ;;  %1319 = vst.msk [vmem:[#allocation4 + $0x40] sm:$0xff] %vm65_vm2, %v4903_v55  ;;  %v4919_v2 = vld [vmem:[#allocation2 + $0x37] sm:$0xff] }
  0xe0   :  { %1320 = vst.msk [vmem:[#allocation4 + $0x58] sm:$0xff] %vm65_vm2, %v4905_v56  ;;  %v4917_v0 = vld [vmem:[#allocation2 + $0x30] sm:$0xff]  ;;  %519 = vst.msk [vmem:[#allocation4 + $0x78] sm:$0xff] %vm65_vm2, %v4907_v58  ;;  %v295_v3 = vpop.f32.mrf.mxu0  ;;  %v4923_v5 = vld [vmem:[#allocation2 + $0x48] sm:$0xff] }
  0xe1   :  { %520 = vst.msk [vmem:[#allocation4 + $0x90] sm:$0xff] %vm65_vm2, %v4919_v2  ;;  %921 = vst.msk [vmem:[#allocation4 + $0x68] sm:$0xff] %vm65_vm2, %v4917_v0  ;;  %v464_v6 = vmul.f32 %v4846_v23, %v344_v61  ;;  %v347_v8 = vmax.f32 %v301_v63, 0.0  ;;  %v296_v9 = vadd.f32 %v4771_v22, %v295_v3  ;;  %1221 = vrot.lane.b32.xlu0 %v4850_v28, %s4409_s30  ;;  %576 = vrot.lane.b32.xlu1 %v4839_v20, %s4408_s0 }
  0xe2   :  { %485 = vst.msk [vmem:[#allocation2 + $0x68] sm:$0xff] %vm65_vm2, %v465_v60  ;;  %924 = vst.msk [vmem:[#allocation4 + $0xb0] sm:$0xff] %vm65_vm2, %v4923_v5  ;;  %v4123_v11 = vpop.f32.mrf.mxu0  ;;  %v1342_v15 = vld [vmem:[#allocation4 + $0x28] sm:$0xff]  ;;  %v4938_v18 = vld [vmem:[#allocation2 + $0x39] sm:$0xff] }
  0xe3   :  { %v1339_v14 = vld [vmem:[#allocation4 + $0x10] sm:$0xff]  ;;  %484 = vst.msk [vmem:[#allocation2 + $0x60] sm:$0xff] %vm65_vm2, %v464_v6  ;;  %v467_v19 = vmul.f32 %v4707_v1, %v347_v8  ;;  %v346_v21 = vmax.f32 %v296_v9, 0.0  ;;  %v311_v25 = vadd.f32 %v4123_v11, %v4771_v22  ;;  %1321 = vst.msk [vmem:[#allocation4 + $0x70] sm:$0xff] %vm65_vm2, %v4938_v18  ;;  %v4946_v20 = vld [vmem:[#allocation2 + $0x41] sm:$0xff] }
  0xe4   :  { %4138 = vmatprep.mubr.msk.f32.mxu0 %vm65_vm2, %v1339_v14  ;;  %v4948_v27 = vld [vmem:[#allocation2 + $0x3f] sm:$0xff]  ;;  %6860 = vst [vmem:[#allocation16_spill] sm:$0xff] %v4952_v30  ;;  %v305_v31 = vpop.f32.mrf.mxu0  ;;  %1322 = vst.msk [vmem:[#allocation4 + $0x88] sm:$0xff] %vm65_vm2, %v4946_v20  ;;  %v4957_v32 = vld [vmem:[#allocation2 + $0x47] sm:$0xff] }
  0xe5   :  { %v4950_v29 = vld [vmem:[#allocation2 + $0x40] sm:$0xff]  ;;  %4139 = vmatmul.mubr.msk.f32.vlgmr.msra.gmra.mxu0 %vm65_vm2, %v1342_v15  ;;  %v4959_v34 = vld [vmem:[#allocation2 + $0x58] sm:$0xff]  ;;  %521 = vst.msk [vmem:[#allocation4 + $0xa8] sm:$0xff] %vm65_vm2, %v4948_v27  ;;  %487 = vst.msk [vmem:[#allocation2 + $0x78] sm:$0xff] %vm65_vm2, %v467_v19  ;;  %v466_v38 = vmul.f32 %v4901_v52, %v346_v21  ;;  %v349_v39 = vmax.f32 %v311_v25, 0.0  ;;  %v306_v40 = vadd.f32 %v4771_v22, %v305_v31  ;;  %979 = vrot.lane.b32.xlu0 %v4869_v35, %s4408_s0  ;;  %v5012_v19 = vpop.permute.xlu0 %436 }
  0xe6   :  { %923 = vst.msk [vmem:[#allocation4 + $0x98] sm:$0xff] %vm65_vm2, %v4950_v29  ;;  %697 = vrot.lane.b32.xlu1 %v4848_v26, %s4410_s1  ;;  %522 = vst.msk [vmem:[#allocation4 + $0xc0] sm:$0xff] %vm65_vm2, %v4957_v32  ;;  %v4126_v44 = vpop.f32.mrf.mxu0  ;;  %v1345_v46 = vld [vmem:[#allocation4 + $0x40] sm:$0xff]  ;;  %v4976_v48 = vld [vmem:[#allocation2 + $0x49] sm:$0xff] }
  0xe7   :  { %926 = vst.msk [vmem:[#allocation4 + $0xe0] sm:$0xff] %vm65_vm2, %v4959_v34  ;;  %v1348_v47 = vld [vmem:[#allocation4 + $0x58] sm:$0xff]  ;;  %486 = vst.msk [vmem:[#allocation2 + $0x70] sm:$0xff] %vm65_vm2, %v466_v38  ;;  %v469_v53 = vmul.f32 %v4724_v7, %v349_v39  ;;  %v348_v60 = vmax.f32 %v306_v40, 0.0  ;;  %v321_v61 = vadd.f32 %v4126_v44, %v4771_v22  ;;  %4141 = vmatprep.mubr.msk.f32.mxu0 %vm65_vm2, %v1345_v46  ;;  %v4986_v63 = vld [vmem:[#allocation2 + $0x4f] sm:$0xff] }
  0xe8   :  { %1323 = vst.msk [vmem:[#allocation4 + $0xa0] sm:$0xff] %vm65_vm2, %v4976_v48  ;;  %v4984_v26 = vld [vmem:[#allocation2 + $0x51] sm:$0xff]  ;;  %v315_v6 = vpop.f32.mrf.mxu0  ;;  %523 = vst.msk [vmem:[#allocation4 + $0xd8] sm:$0xff] %vm65_vm2, %v4986_v63 }
  0xe9   :  { %v4988_v3 = vld [vmem:[#allocation2 + $0x50] sm:$0xff]  ;;  %4142 = vmatmul.mubr.msk.f32.gmra.mxu0 %vm65_vm2, %v1348_v47  ;;  %1324 = vst.msk [vmem:[#allocation4 + $0xb8] sm:$0xff] %vm65_vm2, %v4984_v26  ;;  %v4995_v9 = vld [vmem:[#allocation2 + $0x68] sm:$0xff]  ;;  %489 = vst.msk [vmem:[#allocation2 + $0x88] sm:$0xff] %vm65_vm2, %v469_v53  ;;  %v468_v11 = vmul.f32 %v4952_v30, %v348_v60  ;;  %v351_v14 = vmax.f32 %v321_v61, 0.0  ;;  %v316_v15 = vadd.f32 %v4771_v22, %v315_v6  ;;  %1099 = vrot.lane.b32.xlu0 %v4871_v37, %s4410_s1 }
  0xea   :  { %v4993_v8 = vld [vmem:[#allocation2 + $0x57] sm:$0xff]  ;;  %925 = vst.msk [vmem:[#allocation4 + $0xc8] sm:$0xff] %vm65_vm2, %v4988_v3  ;;  %818 = vrot.lane.b32.xlu1 %v4833_v12, %s4409_s30  ;;  %928 = vst.msk [vmem:[#allocation4 + $0x110] sm:$0xff] %vm65_vm2, %v4995_v9  ;;  %v4129_v21 = vpop.f32.mrf.mxu0  ;;  %v5016_v38 = vld [vmem:[#allocation2 + $0x61] sm:$0xff] }
  0xeb   :  { %524 = vst.msk [vmem:[#allocation4 + $0xf0] sm:$0xff] %vm65_vm2, %v4993_v8  ;;  %6861 = vst [vmem:[#allocation17_spill] sm:$0xff] %v5012_v19  ;;  %v1351_v25 = vld [vmem:[#allocation4 + $0x70] sm:$0xff]  ;;  %v5014_v31 = vld [vmem:[#allocation2 + $0x59] sm:$0xff]  ;;  %v471_v39 = vmul.f32 %v4735_v10, %v351_v14  ;;  %v350_v40 = vmax.f32 %v316_v15, 0.0  ;;  %v331_v12 = vadd.f32 %v4129_v21, %v4771_v22 }
  0xec   :  { %488 = vst.msk [vmem:[#allocation2 + $0x80] sm:$0xff] %vm65_vm2, %v468_v11  ;;  %4144 = vmatprep.mubr.msk.f32.mxu0 %vm65_vm2, %v1351_v25  ;;  %v1354_v44 = vld [vmem:[#allocation4 + $0x88] sm:$0xff]  ;;  %1325 = vst.msk [vmem:[#allocation4 + $0xd0] sm:$0xff] %vm65_vm2, %v5014_v31  ;;  %v5026_v46 = vld [vmem:[#allocation2 + $0x5f] sm:$0xff]  ;;  %v325_v53 = vpop.f32.mrf.mxu0 }
  0xed   :  { %1326 = vst.msk [vmem:[#allocation4 + $0xe8] sm:$0xff] %vm65_vm2, %v5016_v38  ;;  %v5028_v47 = vld [vmem:[#allocation2 + $0x60] sm:$0xff]  ;;  %4145 = vmatmul.mubr.msk.f32.gmra.mxu0 %vm65_vm2, %v1354_v44  ;;  %v5033_v61 = vld [vmem:[#allocation2 + $0x78] sm:$0xff]  ;;  %525 = vst.msk [vmem:[#allocation4 + $0x108] sm:$0xff] %vm65_vm2, %v5026_v46  ;;  %v470_v6 = vmul.f32 %v5012_v19, %v350_v40  ;;  %v353_v11 = vmax.f32 %v331_v12, 0.0  ;;  %v326_v14 = vadd.f32 %v4771_v22, %v325_v53  ;;  %1219 = vrot.lane.b32.xlu0 %v4880_v41, %s4409_s30  ;;  %v5065_v44 = vpop.permute.xlu0 %446 }
  0xee   :  { %v5031_v60 = vld [vmem:[#allocation2 + $0x67] sm:$0xff]  ;;  %927 = vst.msk [vmem:[#allocation4 + $0xf8] sm:$0xff] %vm65_vm2, %v5028_v47  ;;  %491 = vst.msk [vmem:[#allocation2 + $0x98] sm:$0xff] %vm65_vm2, %v471_v39  ;;  %582 = vrot.lane.b32.xlu1 %v4850_v28, %s4408_s0  ;;  %v5052_v25 = vld [vmem:[#allocation2 + $0x71] sm:$0xff] }
  0xef   :  { %526 = vst.msk [vmem:[#allocation4 + $0x120] sm:$0xff] %vm65_vm2, %v5031_v60  ;;  %930 = vst.msk [vmem:[#allocation4 + $0x140] sm:$0xff] %vm65_vm2, %v5033_v61  ;;  %v1357_v15 = vld [vmem:[#allocation4 + $0xa0] sm:$0xff]  ;;  %v5050_v21 = vld [vmem:[#allocation2 + $0x69] sm:$0xff]  ;;  %v473_v22 = vmul.f32 %v4754_v16, %v353_v11  ;;  %v352_v39 = vmax.f32 %v326_v14, 0.0 }
  0xf0   :  { %490 = vst.msk [vmem:[#allocation2 + $0x90] sm:$0xff] %vm65_vm2, %v470_v6  ;;  %4147 = vmatprep.mubr.msk.f32.mxu0 %vm65_vm2, %v1357_v15  ;;  %v1360_v40 = vld [vmem:[#allocation4 + $0xb8] sm:$0xff]  ;;  %1327 = vst.msk [vmem:[#allocation4 + $0x100] sm:$0xff] %vm65_vm2, %v5050_v21  ;;  %v5061_v28 = vld [vmem:[#allocation2 + $0x6f] sm:$0xff] }
  0xf1   :  { %1328 = vst.msk [vmem:[#allocation4 + $0x118] sm:$0xff] %vm65_vm2, %v5052_v25  ;;  %v5063_v12 = vld [vmem:[#allocation2 + $0x70] sm:$0xff]  ;;  %6862 = vst [vmem:[#allocation18_spill] sm:$0xff] %v5065_v44  ;;  %4148 = vmatmul.mubr.msk.f32.gmra.mxu0 %vm65_vm2, %v1360_v40  ;;  %v5070_v6 = vld [vmem:[#allocation2 + $0x88] sm:$0xff]  ;;  %v472_v11 = vmul.f32 %v5065_v44, %v352_v39  ;;  %981 = vrot.lane.b32.xlu0 %v4867_v33, %s4408_s0 }
  0xf2   :  { %v5068_v53 = vld [vmem:[#allocation2 + $0x77] sm:$0xff]  ;;  %929 = vst.msk [vmem:[#allocation4 + $0x128] sm:$0xff] %vm65_vm2, %v5063_v12  ;;  %527 = vst.msk [vmem:[#allocation4 + $0x138] sm:$0xff] %vm65_vm2, %v5061_v28  ;;  %699 = vrot.lane.b32.xlu1 %v4869_v35, %s4410_s1 }
  0xf3   :  { %493 = vst.msk [vmem:[#allocation2 + $0xa8] sm:$0xff] %vm65_vm2, %v473_v22  ;;  %528 = vst.msk [vmem:[#allocation4 + $0x150] sm:$0xff] %vm65_vm2, %v5068_v53  ;;  %v1363_v14 = vld [vmem:[#allocation4 + $0xd0] sm:$0xff]  ;;  %v5086_v40 = vld [vmem:[#allocation2 + $0x79] sm:$0xff] }
  0xf4   :  { %932 = vst.msk [vmem:[#allocation4 + $0x170] sm:$0xff] %vm65_vm2, %v5070_v6  ;;  %v1366_v15 = vld [vmem:[#allocation4 + $0xe8] sm:$0xff]  ;;  %492 = vst.msk [vmem:[#allocation2 + $0xa0] sm:$0xff] %vm65_vm2, %v472_v11  ;;  %4150 = vmatprep.mubr.msk.f32.mxu0 %vm65_vm2, %v1363_v14  ;;  %v5094_v35 = vld [vmem:[#allocation2 + $0x7f] sm:$0xff] }
  0xf5   :  { %1329 = vst.msk [vmem:[#allocation4 + $0x130] sm:$0xff] %vm65_vm2, %v5086_v40  ;;  %v5092_v22 = vld [vmem:[#allocation2 + $0x81] sm:$0xff]  ;;  %4151 = vmatmul.mubr.msk.f32.gmra.mxu0 %vm65_vm2, %v1366_v15  ;;  %v5103_v43 = vld [vmem:[#allocation2 + $0x98] sm:$0xff]  ;;  %529 = vst.msk [vmem:[#allocation4 + $0x168] sm:$0xff] %vm65_vm2, %v5094_v35  ;;  %1101 = vrot.lane.b32.xlu0 %v4882_v42, %s4410_s1 }
  0xf6   :  { %v5096_v39 = vld [vmem:[#allocation2 + $0x80] sm:$0xff]  ;;  %1330 = vst.msk [vmem:[#allocation4 + $0x148] sm:$0xff] %vm65_vm2, %v5092_v22  ;;  %820 = vrot.lane.b32.xlu1 %v4871_v37, %s4409_s30  ;;  %934 = vst.msk [vmem:[#allocation4 + $0x1a0] sm:$0xff] %vm65_vm2, %v5103_v43 }
  0xf7   :  { %v5101_v4 = vld [vmem:[#allocation2 + $0x87] sm:$0xff]  ;;  %931 = vst.msk [vmem:[#allocation4 + $0x158] sm:$0xff] %vm65_vm2, %v5096_v39  ;;  %v5122_v16 = vld [vmem:[#allocation2 + $0x91] sm:$0xff] }
  0xf8   :  { %530 = vst.msk [vmem:[#allocation4 + $0x180] sm:$0xff] %vm65_vm2, %v5101_v4  ;;  %v1369_v11 = vld [vmem:[#allocation4 + $0x100] sm:$0xff]  ;;  %v1372_v14 = vld [vmem:[#allocation4 + $0x118] sm:$0xff]  ;;  %v5117_v15 = vld [vmem:[#allocation2 + $0x89] sm:$0xff] }
  0xf9   :  { %4153 = vmatprep.mubr.msk.f32.mxu0 %vm65_vm2, %v1369_v11  ;;  %1331 = vst.msk [vmem:[#allocation4 + $0x160] sm:$0xff] %vm65_vm2, %v5117_v15  ;;  %v5124_v44 = vld [vmem:[#allocation2 + $0x8f] sm:$0xff]  ;;  %1332 = vst.msk [vmem:[#allocation4 + $0x178] sm:$0xff] %vm65_vm2, %v5122_v16  ;;  %v5133_v19 = vld [vmem:[#allocation2 + $0x97] sm:$0xff]  ;;  %1225 = vrot.lane.b32.xlu0 %v4887_v45, %s4409_s30 }
  0xfa   :  { %v5126_v37 = vld [vmem:[#allocation2 + $0x90] sm:$0xff]  ;;  %4154 = vmatmul.mubr.msk.f32.gmra.mxu0 %vm65_vm2, %v1372_v14  ;;  %v5135_v7 = vld [vmem:[#allocation2 + $0xa8] sm:$0xff]  ;;  %531 = vst.msk [vmem:[#allocation4 + $0x198] sm:$0xff] %vm65_vm2, %v5124_v44  ;;  %580 = vrot.lane.b32.xlu1 %v4880_v41, %s4408_s0  ;;  %532 = vst.msk [vmem:[#allocation4 + $0x1b0] sm:$0xff] %vm65_vm2, %v5133_v19 }
  0xfb   :  { %v5131_v10 = vld [vmem:[#allocation2 + $0xa9] sm:$0xff]  ;;  %933 = vst.msk [vmem:[#allocation4 + $0x188] sm:$0xff] %vm65_vm2, %v5126_v37  ;;  %936 = vst.msk [vmem:[#allocation4 + $0x1d0] sm:$0xff] %vm65_vm2, %v5135_v7  ;;  %v5151_v14 = vld [vmem:[#allocation2 + $0x99] sm:$0xff] }
  0xfc   :  { %1335 = vst.msk [vmem:[#allocation4 + $0x1c0] sm:$0xff] %vm65_vm2, %v5131_v10  ;;  %v1375_v11 = vld [vmem:[#allocation4 + $0x130] sm:$0xff]  ;;  %v5153_v30 = vld [vmem:[#allocation2 + $0xa1] sm:$0xff]  ;;  %1333 = vst.msk [vmem:[#allocation4 + $0x190] sm:$0xff] %vm65_vm2, %v5151_v14 }
  0xfd   :  { %4156 = vmatprep.mubr.msk.f32.mxu0 %vm65_vm2, %v1375_v11  ;;  %v1378_v1 = vld [vmem:[#allocation4 + $0x148] sm:$0xff]  ;;  %1334 = vst.msk [vmem:[#allocation4 + $0x1a8] sm:$0xff] %vm65_vm2, %v5153_v30  ;;  %v5160_v41 = vld [vmem:[#allocation2 + $0x9f] sm:$0xff]  ;;  %983 = vrot.lane.b32.xlu0 %v4903_v55, %s4408_s0 }
  0xfe   :  { %v5162_v52 = vld [vmem:[#allocation2 + $0xa0] sm:$0xff]  ;;  %4157 = vmatmul.mubr.msk.f32.gmra.mxu0 %vm65_vm2, %v1378_v1  ;;  %533 = vst.msk [vmem:[#allocation4 + $0x1c8] sm:$0xff] %vm65_vm2, %v5160_v41  ;;  %701 = vrot.lane.b32.xlu1 %v4867_v33, %s4410_s1 }
  0xff   :  { %935 = vst.msk [vmem:[#allocation4 + $0x1b8] sm:$0xff] %vm65_vm2, %v5162_v52 }
 0x100   :  { %v1381_v11 = vld [vmem:[#allocation4 + $0x160] sm:$0xff]  ;;  %v1384_v62 = vld [vmem:[#allocation4 + $0x178] sm:$0xff] }
 0x101   :  { %4159 = vmatprep.mubr.msk.f32.mxu0 %vm65_vm2, %v1381_v11  ;;  %1103 = vrot.lane.b32.xlu0 %v4907_v58, %s4410_s1 }
 0x102   :  { %4160 = vmatmul.mubr.msk.f32.gmra.mxu0 %vm65_vm2, %v1384_v62  ;;  %822 = vrot.lane.b32.xlu1 %v4882_v42, %s4409_s30 }
 0x103   :  { %v1387_v1 = vld [vmem:[#allocation4 + $0x190] sm:$0xff]  ;;  %v1393_v33 = vld [vmem:[#allocation4 + $0x1c0] sm:$0xff] }
 0x104   :  { %v1390_v23 = vld [vmem:[#allocation4 + $0x1a8] sm:$0xff]  ;;  %4162 = vmatprep.mubr.msk.f32.mxu0 %vm65_vm2, %v1387_v1 }
 0x105   :  { %1223 = vrot.lane.b32.xlu0 %v4917_v0, %s4409_s30 }
 0x106   :  { %4163 = vmatmul.mubr.msk.f32.gmra.mxu0 %vm65_vm2, %v1390_v23  ;;  %586 = vrot.lane.b32.xlu1 %v4887_v45, %s4408_s0 }
 0x107   :  { %4165 = vmatprep.mubr.msk.f32.mxu0 %vm65_vm2, %v1393_v33 }
 0x109   :  { %985 = vrot.lane.b32.xlu0 %v4905_v56, %s4408_s0 }
 0x10a   :  { %703 = vrot.lane.b32.xlu1 %v4903_v55, %s4410_s1 }
 0x10d   :  { %1105 = vrot.lane.b32.xlu0 %v4919_v2, %s4410_s1 }
 0x10e   :  { %824 = vrot.lane.b32.xlu1 %v4907_v58, %s4409_s30 }
 0x111   :  { %1229 = vrot.lane.b32.xlu0 %v4923_v5, %s4409_s30 }
 0x112   :  { %584 = vrot.lane.b32.xlu1 %v4917_v0, %s4408_s0 }
 0x115   :  { %987 = vrot.lane.b32.xlu0 %v4938_v18, %s4408_s0 }
 0x116   :  { %705 = vrot.lane.b32.xlu1 %v4905_v56, %s4410_s1 }
 0x119   :  { %1107 = vrot.lane.b32.xlu0 %v4948_v27, %s4410_s1 }
 0x11a   :  { %826 = vrot.lane.b32.xlu1 %v4919_v2, %s4409_s30 }
 0x11d   :  { %1227 = vrot.lane.b32.xlu0 %v4950_v29, %s4409_s30 }
 0x11e   :  { %590 = vrot.lane.b32.xlu1 %v4923_v5, %s4408_s0 }
 0x121   :  { %989 = vrot.lane.b32.xlu0 %v4946_v20, %s4408_s0 }
 0x122   :  { %707 = vrot.lane.b32.xlu1 %v4938_v18, %s4410_s1 }
 0x125   :  { %1109 = vrot.lane.b32.xlu0 %v4957_v32, %s4410_s1 }
 0x126   :  { %828 = vrot.lane.b32.xlu1 %v4948_v27, %s4409_s30 }
 0x129   :  { %1233 = vrot.lane.b32.xlu0 %v4959_v34, %s4409_s30 }
 0x12a   :  { %588 = vrot.lane.b32.xlu1 %v4950_v29, %s4408_s0 }
 0x12d   :  { %991 = vrot.lane.b32.xlu0 %v4976_v48, %s4408_s0 }
 0x12e   :  { %709 = vrot.lane.b32.xlu1 %v4946_v20, %s4410_s1 }
 0x131   :  { %1111 = vrot.lane.b32.xlu0 %v4986_v63, %s4410_s1 }
 0x132   :  { %830 = vrot.lane.b32.xlu1 %v4957_v32, %s4409_s30 }
 0x135   :  { %1231 = vrot.lane.b32.xlu0 %v4988_v3, %s4409_s30 }
 0x136   :  { %594 = vrot.lane.b32.xlu1 %v4959_v34, %s4408_s0 }
 0x139   :  { %993 = vrot.lane.b32.xlu0 %v4984_v26, %s4408_s0 }
 0x13a   :  { %711 = vrot.lane.b32.xlu1 %v4976_v48, %s4410_s1 }
 0x13d   :  { %1113 = vrot.lane.b32.xlu0 %v4993_v8, %s4410_s1 }
 0x13e   :  { %832 = vrot.lane.b32.xlu1 %v4986_v63, %s4409_s30 }
 0x141   :  { %1237 = vrot.lane.b32.xlu0 %v4995_v9, %s4409_s30 }
 0x142   :  { %592 = vrot.lane.b32.xlu1 %v4988_v3, %s4408_s0 }
 0x145   :  { %995 = vrot.lane.b32.xlu0 %v5014_v31, %s4408_s0 }
 0x146   :  { %713 = vrot.lane.b32.xlu1 %v4984_v26, %s4410_s1 }
 0x147   :  { %v579_v62 = vpop.permute.xlu1 %578  ;;  %v1218_v23 = vpop.permute.xlu0 %1217 }
 0x148   :  { %637 = vst.msk [vmem:[#allocation4 + $0x30] sm:$0xff] %vm634_vm3, %v579_v62 }
 0x149   :  { %1115 = vrot.lane.b32.xlu0 %v5026_v46, %s4410_s1 }
 0x14a   :  { %834 = vrot.lane.b32.xlu1 %v4993_v8, %s4409_s30 }
 0x14b   :  { %v696_v42 = vpop.permute.xlu1 %695  ;;  %v978_v45 = vpop.permute.xlu0 %977 }
 0x14c   :  { %756 = vst.msk [vmem:[#allocation4] sm:$0xff] %vm755_vm4, %v696_v42 }
 0x14d   :  { %1037 = vst.msk [vmem:[#allocation4 + $0x8] sm:$0xff] %vm634_vm3, %v978_v45  ;;  %1235 = vrot.lane.b32.xlu0 %v5028_v47, %s4409_s30 }
 0x14e   :  { %598 = vrot.lane.b32.xlu1 %v4995_v9, %s4408_s0 }
 0x14f   :  { %v817_v55 = vpop.permute.xlu1 %816  ;;  %v1098_v56 = vpop.permute.xlu0 %1097 }
 0x150   :  { %877 = vst.msk [vmem:[#allocation4] sm:$0xff] %vm876_vm5, %v817_v55 }
 0x151   :  { %1157 = vst.msk [vmem:[#allocation4 + $0x8] sm:$0xff] %vm755_vm4, %v1098_v56  ;;  %997 = vrot.lane.b32.xlu0 %v5016_v38, %s4408_s0 }
 0x152   :  { %1277 = vst.msk [vmem:[#allocation4 + $0x8] sm:$0xff] %vm876_vm5, %v1218_v23  ;;  %715 = vrot.lane.b32.xlu1 %v5014_v31, %s4410_s1 }
 0x153   :  { %v577_v58 = vpop.permute.xlu1 %576  ;;  %v1222_v0 = vpop.permute.xlu0 %1221 }
 0x154   :  { %636 = vst.msk [vmem:[#allocation4 + $0x18] sm:$0xff] %vm634_vm3, %v577_v58 }
 0x155   :  { %1117 = vrot.lane.b32.xlu0 %v5031_v60, %s4410_s1 }
 0x156   :  { %836 = vrot.lane.b32.xlu1 %v5026_v46, %s4409_s30 }
 0x157   :  { %v980_v5 = vpop.permute.xlu0 %979  ;;  %v1337_v20 = vld [vmem:[#allocation4] sm:$0xff] }
 0x158   :  { %v698_v2 = vpop.permute.xlu1 %697  ;;  %1038 = vst.msk [vmem:[#allocation4 + $0x20] sm:$0xff] %vm634_vm3, %v980_v5 }
 0x159   :  { %757 = vst.msk [vmem:[#allocation4 + $0x18] sm:$0xff] %vm755_vm4, %v698_v2  ;;  %v1338_v18 = vld [vmem:[#allocation4 + $0x8] sm:$0xff]  ;;  %1241 = vrot.lane.b32.xlu0 %v5033_v61, %s4409_s30 }
 0x15a   :  { %596 = vrot.lane.b32.xlu1 %v5028_v47, %s4408_s0  ;;  %1564 = vmatprep.mubr.f32.mxu1 %v1338_v18 }
 0x15b   :  { %1565 = vmatmul.mubr.f32.vlgmr.msra.gmra.mxu1 %v1337_v20  ;;  %v1100_v29 = vpop.permute.xlu0 %1099 }
 0x15c   :  { %v819_v27 = vpop.permute.xlu1 %818  ;;  %1158 = vst.msk [vmem:[#allocation4 + $0x20] sm:$0xff] %vm755_vm4, %v1100_v29 }
 0x15d   :  { %878 = vst.msk [vmem:[#allocation4 + $0x18] sm:$0xff] %vm876_vm5, %v819_v27  ;;  %999 = vrot.lane.b32.xlu0 %v5050_v21, %s4408_s0 }
 0x15e   :  { %717 = vrot.lane.b32.xlu1 %v5016_v38, %s4410_s1 }
 0x15f   :  { %v1220_v34 = vpop.permute.xlu0 %1219 }
 0x160   :  { %v583_v32 = vpop.permute.xlu1 %582  ;;  %1278 = vst.msk [vmem:[#allocation4 + $0x20] sm:$0xff] %vm876_vm5, %v1220_v34 }
 0x161   :  { %639 = vst.msk [vmem:[#allocation4 + $0x60] sm:$0xff] %vm634_vm3, %v583_v32  ;;  %1119 = vrot.lane.b32.xlu0 %v5061_v28, %s4410_s1 }
 0x162   :  { %838 = vrot.lane.b32.xlu1 %v5031_v60, %s4409_s30 }
 0x163   :  { %v982_v26 = vpop.permute.xlu0 %981 }
 0x164   :  { %v700_v48 = vpop.permute.xlu1 %699  ;;  %1039 = vst.msk [vmem:[#allocation4 + $0x38] sm:$0xff] %vm634_vm3, %v982_v26  ;;  %v1340_v9 = vld [vmem:[#allocation4 + $0x18] sm:$0xff] }
 0x165   :  { %758 = vst.msk [vmem:[#allocation4 + $0x30] sm:$0xff] %vm755_vm4, %v700_v48  ;;  %1239 = vrot.lane.b32.xlu0 %v5063_v12, %s4409_s30 }
 0x166   :  { %602 = vrot.lane.b32.xlu1 %v5033_v61, %s4408_s0 }
 0x167   :  { %v1102_v3 = vpop.permute.xlu0 %1101  ;;  %v1341_v8 = vld [vmem:[#allocation4 + $0x20] sm:$0xff] }
 0x168   :  { %v821_v63 = vpop.permute.xlu1 %820  ;;  %1159 = vst.msk [vmem:[#allocation4 + $0x38] sm:$0xff] %vm755_vm4, %v1102_v3  ;;  %1569 = vmatprep.mubr.f32.mxu1 %v1341_v8  ;;  %v1316_v3 = vld [vmem:[#allocation2 + $0xb1] sm:$0xff] }
 0x169   :  { %879 = vst.msk [vmem:[#allocation4 + $0x30] sm:$0xff] %vm876_vm5, %v821_v63  ;;  %1279 = vst.msk [vmem:[#allocation4 + $0x38] sm:$0xff] %vm876_vm5, %v1222_v0  ;;  %1001 = vrot.lane.b32.xlu0 %v5052_v25, %s4408_s0  ;;  %1570 = vmatmul.mubr.f32.gmra.mxu1 %v1340_v9 }
 0x16a   :  { %719 = vrot.lane.b32.xlu1 %v5050_v21, %s4410_s1  ;;  %1336 = vst.msk [vmem:[#allocation4 + $0x1d8] sm:$0xff] %vm65_vm2, %v1316_v3 }
 0x16b   :  { %v1226_v38 = vpop.permute.xlu0 %1225 }
 0x16c   :  { %v581_v31 = vpop.permute.xlu1 %580 }
 0x16d   :  { %638 = vst.msk [vmem:[#allocation4 + $0x48] sm:$0xff] %vm634_vm3, %v581_v31  ;;  %1121 = vrot.lane.b32.xlu0 %v5068_v53, %s4410_s1 }
 0x16e   :  { %840 = vrot.lane.b32.xlu1 %v5061_v28, %s4409_s30 }
 0x16f   :  { %v984_v47 = vpop.permute.xlu0 %983 }
 0x170   :  { %v702_v46 = vpop.permute.xlu1 %701  ;;  %1040 = vst.msk [vmem:[#allocation4 + $0x50] sm:$0xff] %vm634_vm3, %v984_v47  ;;  %v1344_v60 = vld [vmem:[#allocation4 + $0x38] sm:$0xff]  ;;  %v1343_v61 = vld [vmem:[#allocation4 + $0x30] sm:$0xff] }
 0x171   :  { %759 = vst.msk [vmem:[#allocation4 + $0x48] sm:$0xff] %vm755_vm4, %v702_v46  ;;  %1245 = vrot.lane.b32.xlu0 %v5070_v6, %s4409_s30  ;;  %1574 = vmatprep.mubr.f32.mxu1 %v1344_v60  ;;  %v1396_v46 = vld [vmem:[#allocation4 + $0x1d8] sm:$0xff] }
 0x172   :  { %600 = vrot.lane.b32.xlu1 %v5063_v12, %s4408_s0  ;;  %1575 = vmatmul.mubr.f32.gmra.mxu1 %v1343_v61 }
 0x173   :  { %v1104_v11 = vpop.permute.xlu0 %1103  ;;  %4166 = vmatmul.mubr.msk.f32.gmra.mxu0 %vm65_vm2, %v1396_v46 }
 0x174   :  { %v823_v21 = vpop.permute.xlu1 %822  ;;  %1160 = vst.msk [vmem:[#allocation4 + $0x50] sm:$0xff] %vm755_vm4, %v1104_v11 }
 0x175   :  { %880 = vst.msk [vmem:[#allocation4 + $0x48] sm:$0xff] %vm876_vm5, %v823_v21  ;;  %1003 = vrot.lane.b32.xlu0 %v5086_v40, %s4408_s0 }
 0x176   :  { %721 = vrot.lane.b32.xlu1 %v5052_v25, %s4410_s1 }
 0x177   :  { %v1224_v1 = vpop.permute.xlu0 %1223 }
 0x178   :  { %v587_v28 = vpop.permute.xlu1 %586  ;;  %1280 = vst.msk [vmem:[#allocation4 + $0x50] sm:$0xff] %vm876_vm5, %v1224_v1  ;;  %v1196_v1 = vld [vmem:[#allocation2 + $0xb0] sm:$0xff] }
 0x179   :  { %641 = vst.msk [vmem:[#allocation4 + $0x90] sm:$0xff] %vm634_vm3, %v587_v28  ;;  %1123 = vrot.lane.b32.xlu0 %v5094_v35, %s4410_s1 }
 0x17a   :  { %842 = vrot.lane.b32.xlu1 %v5068_v53, %s4409_s30 }
 0x17b   :  { %v986_v33 = vpop.permute.xlu0 %985 }
 0x17c   :  { %v704_v12 = vpop.permute.xlu1 %703  ;;  %1041 = vst.msk [vmem:[#allocation4 + $0x68] sm:$0xff] %vm634_vm3, %v986_v33  ;;  %v1346_v53 = vld [vmem:[#allocation4 + $0x48] sm:$0xff] }
 0x17d   :  { %760 = vst.msk [vmem:[#allocation4 + $0x60] sm:$0xff] %vm755_vm4, %v704_v12  ;;  %1243 = vrot.lane.b32.xlu0 %v5096_v39, %s4409_s30 }
 0x17e   :  { %606 = vrot.lane.b32.xlu1 %v5070_v6, %s4408_s0 }
 0x17f   :  { %v1106_v62 = vpop.permute.xlu0 %1105  ;;  %v1347_v23 = vld [vmem:[#allocation4 + $0x50] sm:$0xff] }
 0x180   :  { %v825_v25 = vpop.permute.xlu1 %824  ;;  %1161 = vst.msk [vmem:[#allocation4 + $0x68] sm:$0xff] %vm755_vm4, %v1106_v62  ;;  %1579 = vmatprep.mubr.f32.mxu1 %v1347_v23 }
 0x181   :  { %881 = vst.msk [vmem:[#allocation4 + $0x60] sm:$0xff] %vm876_vm5, %v825_v25  ;;  %1281 = vst.msk [vmem:[#allocation4 + $0x68] sm:$0xff] %vm876_vm5, %v1226_v38  ;;  %1005 = vrot.lane.b32.xlu0 %v5092_v22, %s4408_s0  ;;  %1580 = vmatmul.mubr.f32.gmra.mxu1 %v1346_v53  ;;  %v1075_v38 = vld [vmem:[#allocation2 + $0xa7] sm:$0xff] }
 0x182   :  { %723 = vrot.lane.b32.xlu1 %v5086_v40, %s4410_s1 }
 0x183   :  { %v1230_v42 = vpop.permute.xlu0 %1229 }
 0x184   :  { %v585_v6 = vpop.permute.xlu1 %584 }
 0x185   :  { %640 = vst.msk [vmem:[#allocation4 + $0x78] sm:$0xff] %vm634_vm3, %v585_v6  ;;  %1125 = vrot.lane.b32.xlu0 %v5101_v4, %s4410_s1 }
 0x186   :  { %844 = vrot.lane.b32.xlu1 %v5094_v35, %s4409_s30 }
 0x187   :  { %v988_v55 = vpop.permute.xlu0 %987 }
 0x188   :  { %v706_v45 = vpop.permute.xlu1 %705  ;;  %1042 = vst.msk [vmem:[#allocation4 + $0x80] sm:$0xff] %vm634_vm3, %v988_v55  ;;  %v1350_v56 = vld [vmem:[#allocation4 + $0x68] sm:$0xff]  ;;  %v1349_v40 = vld [vmem:[#allocation4 + $0x60] sm:$0xff] }
 0x189   :  { %761 = vst.msk [vmem:[#allocation4 + $0x78] sm:$0xff] %vm755_vm4, %v706_v45  ;;  %1249 = vrot.lane.b32.xlu0 %v5103_v43, %s4409_s30  ;;  %1584 = vmatprep.mubr.f32.mxu1 %v1350_v56 }
 0x18a   :  { %604 = vrot.lane.b32.xlu1 %v5096_v39, %s4408_s0  ;;  %1585 = vmatmul.mubr.f32.gmra.mxu1 %v1349_v40 }
 0x18b   :  { %v1108_v0 = vpop.permute.xlu0 %1107 }
 0x18c   :  { %v827_v58 = vpop.permute.xlu1 %826  ;;  %1162 = vst.msk [vmem:[#allocation4 + $0x80] sm:$0xff] %vm755_vm4, %v1108_v0 }
 0x18d   :  { %882 = vst.msk [vmem:[#allocation4 + $0x78] sm:$0xff] %vm876_vm5, %v827_v58  ;;  %1007 = vrot.lane.b32.xlu0 %v5117_v15, %s4408_s0 }
 0x18e   :  { %725 = vrot.lane.b32.xlu1 %v5092_v22, %s4410_s1 }
 0x18f   :  { %v1228_v2 = vpop.permute.xlu0 %1227 }
 0x190   :  { %v591_v35 = vpop.permute.xlu1 %590  ;;  %1282 = vst.msk [vmem:[#allocation4 + $0x80] sm:$0xff] %vm876_vm5, %v1228_v2 }
 0x191   :  { %643 = vst.msk [vmem:[#allocation4 + $0xc0] sm:$0xff] %vm634_vm3, %v591_v35  ;;  %1127 = vrot.lane.b32.xlu0 %v5124_v44, %s4410_s1 }
 0x192   :  { %846 = vrot.lane.b32.xlu1 %v5101_v4, %s4409_s30 }
 0x193   :  { %v990_v5 = vpop.permute.xlu0 %989 }
 0x194   :  { %v708_v39 = vpop.permute.xlu1 %707  ;;  %1043 = vst.msk [vmem:[#allocation4 + $0x98] sm:$0xff] %vm634_vm3, %v990_v5  ;;  %v1352_v4 = vld [vmem:[#allocation4 + $0x78] sm:$0xff] }
 0x195   :  { %762 = vst.msk [vmem:[#allocation4 + $0x90] sm:$0xff] %vm755_vm4, %v708_v39  ;;  %1247 = vrot.lane.b32.xlu0 %v5126_v37, %s4409_s30 }
 0x196   :  { %727 = vrot.lane.b32.xlu1 %v5117_v15, %s4410_s1  ;;  %v6863_v15 = vmov 0.0  }
 0x197   :  { %v1110_v18 = vpop.permute.xlu0 %1109  ;;  %v1353_v20 = vld [vmem:[#allocation4 + $0x80] sm:$0xff]  ;;  %71 = vst.msk [vmem:[#allocation3] sm:$0xff] %vm70_vm6, %v6863_v15  ;;  %72 = vst.msk [vmem:[#allocation3 + $0x8] sm:$0xff] %vm70_vm6, %v6863_v15 }
 0x198   :  { %v829_v22 = vpop.permute.xlu1 %828  ;;  %1163 = vst.msk [vmem:[#allocation4 + $0x98] sm:$0xff] %vm755_vm4, %v1110_v18  ;;  %1589 = vmatprep.mubr.f32.mxu1 %v1353_v20 }
 0x199   :  { %883 = vst.msk [vmem:[#allocation4 + $0x90] sm:$0xff] %vm876_vm5, %v829_v22  ;;  %1283 = vst.msk [vmem:[#allocation4 + $0x98] sm:$0xff] %vm876_vm5, %v1230_v42  ;;  %1009 = vrot.lane.b32.xlu0 %v5122_v16, %s4408_s0  ;;  %1590 = vmatmul.mubr.f32.gmra.mxu1 %v1352_v4 }
 0x19a   :  { %848 = vrot.lane.b32.xlu1 %v5124_v44, %s4409_s30  ;;  %73 = vst.msk [vmem:[#allocation3 + $0xb0] sm:$0xff] %vm70_vm6, %v6863_v15  ;;  %74 = vst.msk [vmem:[#allocation3 + $0xb8] sm:$0xff] %vm70_vm6, %v6863_v15 }
 0x19b   :  { %v1234_v44 = vpop.permute.xlu0 %1233 }
 0x19c   :  { %v589_v27 = vpop.permute.xlu1 %588 }
 0x19d   :  { %642 = vst.msk [vmem:[#allocation4 + $0xa8] sm:$0xff] %vm634_vm3, %v589_v27  ;;  %1129 = vrot.lane.b32.xlu0 %v5133_v19, %s4410_s1 }
 0x19e   :  { %608 = vrot.lane.b32.xlu1 %v5126_v37, %s4408_s0  ;;  %v1930_v12 = vld [vmem:[#allocation3 + $0x8] sm:$0xff] }
 0x19f   :  { %v992_v32 = vpop.permute.xlu0 %991 }
 0x1a0   :  { %v710_v29 = vpop.permute.xlu1 %709  ;;  %1044 = vst.msk [vmem:[#allocation4 + $0xb0] sm:$0xff] %vm634_vm3, %v992_v32  ;;  %v1356_v34 = vld [vmem:[#allocation4 + $0x98] sm:$0xff]  ;;  %v1355_v48 = vld [vmem:[#allocation4 + $0x90] sm:$0xff] }
 0x1a1   :  { %763 = vst.msk [vmem:[#allocation4 + $0xa8] sm:$0xff] %vm755_vm4, %v710_v29  ;;  %1011 = vrot.lane.b32.xlu0 %v5151_v14, %s4408_s0  ;;  %1594 = vmatprep.mubr.f32.mxu1 %v1356_v34 }
 0x1a2   :  { %729 = vrot.lane.b32.xlu1 %v5122_v16, %s4410_s1  ;;  %1595 = vmatmul.mubr.f32.gmra.mxu1 %v1355_v48 }
 0x1a3   :  { %v1112_v26 = vpop.permute.xlu0 %1111 }
 0x1a4   :  { %v831_v37 = vpop.permute.xlu1 %830  ;;  %1164 = vst.msk [vmem:[#allocation4 + $0xb0] sm:$0xff] %vm755_vm4, %v1112_v26 }
 0x1a5   :  { %884 = vst.msk [vmem:[#allocation4 + $0xa8] sm:$0xff] %vm876_vm5, %v831_v37  ;;  %1131 = vrot.lane.b32.xlu0 %v5160_v41, %s4410_s1 }
 0x1a6   :  { %850 = vrot.lane.b32.xlu1 %v5133_v19, %s4409_s30 }
 0x1a7   :  { %v1232_v16 = vpop.permute.xlu0 %1231 }
 0x1a8   :  { %v595_v63 = vpop.permute.xlu1 %594  ;;  %1284 = vst.msk [vmem:[#allocation4 + $0xb0] sm:$0xff] %vm876_vm5, %v1232_v16 }
 0x1a9   :  { %645 = vst.msk [vmem:[#allocation4 + $0xf0] sm:$0xff] %vm634_vm3, %v595_v63  ;;  %1251 = vrot.lane.b32.xlu0 %v5162_v52, %s4409_s30 }
 0x1aa   :  { %610 = vrot.lane.b32.xlu1 %v5103_v43, %s4408_s0 }
 0x1ab   :  { %v994_v9 = vpop.permute.xlu0 %993 }
 0x1ac   :  { %v712_v8 = vpop.permute.xlu1 %711  ;;  %1045 = vst.msk [vmem:[#allocation4 + $0xc8] sm:$0xff] %vm634_vm3, %v994_v9 }
 0x1ad   :  { %764 = vst.msk [vmem:[#allocation4 + $0xc0] sm:$0xff] %vm755_vm4, %v712_v8  ;;  %1013 = vrot.lane.b32.xlu0 %v5153_v30, %s4408_s0 }
 0x1ae   :  { %731 = vrot.lane.b32.xlu1 %v5151_v14, %s4410_s1  ;;  %v1358_v14 = vld [vmem:[#allocation4 + $0xa8] sm:$0xff] }
 0x1af   :  { %v1114_v43 = vpop.permute.xlu0 %1113  ;;  %v1359_v31 = vld [vmem:[#allocation4 + $0xb0] sm:$0xff] }
 0x1b0   :  { %v833_v19 = vpop.permute.xlu1 %832  ;;  %1165 = vst.msk [vmem:[#allocation4 + $0xc8] sm:$0xff] %vm755_vm4, %v1114_v43  ;;  %1599 = vmatprep.mubr.f32.mxu1 %v1359_v31  ;;  %v2685_v43 = vld [vmem:[%s6820_s5 + $0x70] sm:$0xff] }
 0x1b1   :  { %885 = vst.msk [vmem:[#allocation4 + $0xc0] sm:$0xff] %vm876_vm5, %v833_v19  ;;  %1285 = vst.msk [vmem:[#allocation4 + $0xc8] sm:$0xff] %vm876_vm5, %v1234_v44  ;;  %1133 = vrot.lane.b32.xlu0 %v1075_v38, %s4410_s1  ;;  %1600 = vmatmul.mubr.f32.gmra.mxu1 %v1358_v14  ;;  %v2686_v19 = vld [vmem:[%s6820_s5 + $0x78] sm:$0xff] }
 0x1b2   :  { %852 = vrot.lane.b32.xlu1 %v5160_v41, %s4409_s30  ;;  %2811 = vmatpush1.msra.mxu0 %v2686_v19 }
 0x1b3   :  { %v1238_v60 = vpop.permute.xlu0 %1237  ;;  %2812 = vmatprep.subr.mxu0 %v6863_v15 }
 0x1b4   :  { %v593_v47 = vpop.permute.xlu1 %592  ;;  %2813 = vmatpush1.msra.mxu0 %v2685_v43  ;;  %v2697_v43 = vld [vmem:[%s6820_s5 + $0xd0] sm:$0xff] }
 0x1b5   :  { %644 = vst.msk [vmem:[#allocation4 + $0xd8] sm:$0xff] %vm634_vm3, %v593_v47  ;;  %1253 = vrot.lane.b32.xlu0 %v5135_v7, %s4409_s30  ;;  %v1076_v7 = vld [vmem:[#allocation2 + $0xaf] sm:$0xff]  ;;  %2814 = vmatprep.subr.mxu0 %v6863_v15 }
 0x1b6   :  { %612 = vrot.lane.b32.xlu1 %v5162_v52, %s4408_s0  ;;  %v2684_v47 = vld [vmem:[%s6820_s5 + $0x68] sm:$0xff] }
 0x1b7   :  { %v996_v21 = vpop.permute.xlu0 %995  ;;  %2815 = vmatpush1.msra.mxu0 %v2684_v47  ;;  %v2696_v47 = vld [vmem:[%s6820_s5 + $0xc8] sm:$0xff] }
 0x1b8   :  { %v714_v61 = vpop.permute.xlu1 %713  ;;  %1046 = vst.msk [vmem:[#allocation4 + $0xe0] sm:$0xff] %vm634_vm3, %v996_v21  ;;  %v1362_v41 = vld [vmem:[#allocation4 + $0xc8] sm:$0xff]  ;;  %v1361_v11 = vld [vmem:[#allocation4 + $0xc0] sm:$0xff]  ;;  %2816 = vmatprep.subr.mxu0 %v6863_v15 }
 0x1b9   :  { %765 = vst.msk [vmem:[#allocation4 + $0xd8] sm:$0xff] %vm755_vm4, %v714_v61  ;;  %1015 = vrot.lane.b32.xlu0 %v5131_v10, %s4408_s0  ;;  %1604 = vmatprep.mubr.f32.mxu1 %v1362_v41  ;;  %v2682_v41 = vld [vmem:[%s6820_s5 + $0x58] sm:$0xff] }
 0x1ba   :  { %733 = vrot.lane.b32.xlu1 %v5153_v30, %s4410_s1  ;;  %1605 = vmatmul.mubr.f32.gmra.mxu1 %v1361_v11  ;;  %v2681_v11 = vld [vmem:[%s6820_s5 + $0x50] sm:$0xff] }
 0x1bb   :  { %v1116_v28 = vpop.permute.xlu0 %1115 }
 0x1bc   :  { %v835_v52 = vpop.permute.xlu1 %834  ;;  %1166 = vst.msk [vmem:[#allocation4 + $0xe0] sm:$0xff] %vm755_vm4, %v1116_v28 }
 0x1bd   :  { %886 = vst.msk [vmem:[#allocation4 + $0xd8] sm:$0xff] %vm876_vm5, %v835_v52  ;;  %1135 = vrot.lane.b32.xlu0 %v1076_v7, %s4410_s1 }
 0x1be   :  { %854 = vrot.lane.b32.xlu1 %v1075_v38, %s4409_s30 }
 0x1bf   :  { %v1236_v33 = vpop.permute.xlu0 %1235 }
 0x1c0   :  { %v599_v30 = vpop.permute.xlu1 %598  ;;  %1286 = vst.msk [vmem:[#allocation4 + $0xe0] sm:$0xff] %vm876_vm5, %v1236_v33 }
 0x1c1   :  { %647 = vst.msk [vmem:[#allocation4 + $0x120] sm:$0xff] %vm634_vm3, %v599_v30  ;;  %1255 = vrot.lane.b32.xlu0 %v1196_v1, %s4409_s30  ;;  %v2680_v1 = vld [vmem:[%s6820_s5 + $0x48] sm:$0xff]  ;;  %v2679_v30 = vld [vmem:[%s6820_s5 + $0x40] sm:$0xff] }
 0x1c2   :  { %1970 = vrot.lane.b32.xlu1 %v1930_v12, %s4410_s1 }
 0x1c3   :  { %v998_v25 = vpop.permute.xlu0 %997 }
 0x1c4   :  { %v716_v10 = vpop.permute.xlu1 %715  ;;  %1047 = vst.msk [vmem:[#allocation4 + $0xf8] sm:$0xff] %vm634_vm3, %v998_v25  ;;  %v1364_v6 = vld [vmem:[#allocation4 + $0xd8] sm:$0xff] }
 0x1c5   :  { %766 = vst.msk [vmem:[#allocation4 + $0xf0] sm:$0xff] %vm755_vm4, %v716_v10  ;;  %v2678_v25 = vld [vmem:[%s6820_s5 + $0x38] sm:$0xff] }
 0x1c7   :  { %v1118_v23 = vpop.permute.xlu0 %1117  ;;  %v1365_v53 = vld [vmem:[#allocation4 + $0xe0] sm:$0xff] }
 0x1c8   :  { %v837_v62 = vpop.permute.xlu1 %836  ;;  %1167 = vst.msk [vmem:[#allocation4 + $0xf8] sm:$0xff] %vm755_vm4, %v1118_v23  ;;  %1609 = vmatprep.mubr.f32.mxu1 %v1365_v53 }
 0x1c9   :  { %887 = vst.msk [vmem:[#allocation4 + $0xf0] sm:$0xff] %vm876_vm5, %v837_v62  ;;  %1287 = vst.msk [vmem:[#allocation4 + $0xf8] sm:$0xff] %vm876_vm5, %v1238_v60  ;;  %1610 = vmatmul.mubr.f32.gmra.mxu1 %v1364_v6  ;;  %v2683_v60 = vld [vmem:[%s6820_s5 + $0x60] sm:$0xff]  ;;  %v2677_v62 = vld [vmem:[%s6820_s5 + $0x30] sm:$0xff] }
 0x1ca   :  { %2817 = vmatpush1.msra.mxu0 %v2683_v60  ;;  %v2676_v6 = vld [vmem:[%s6820_s5 + $0x28] sm:$0xff] }
 0x1cb   :  { %v1242_v45 = vpop.permute.xlu0 %1241  ;;  %2818 = vmatprep.subr.mxu0 %v6863_v15 }
 0x1cc   :  { %v597_v42 = vpop.permute.xlu1 %596  ;;  %2819 = vmatpush1.msra.mxu0 %v2682_v41  ;;  %v2695_v41 = vld [vmem:[%s6820_s5 + $0xc0] sm:$0xff] }
 0x1cd   :  { %646 = vst.msk [vmem:[#allocation4 + $0x108] sm:$0xff] %vm634_vm3, %v597_v42  ;;  %2820 = vmatprep.subr.mxu0 %v6863_v15  ;;  %v2675_v42 = vld [vmem:[%s6820_s5 + $0x20] sm:$0xff] }
 0x1ce   :  { %2821 = vmatpush1.msra.mxu0 %v2681_v11 }
 0x1cf   :  { %v1000_v56 = vpop.permute.xlu0 %999  ;;  %2822 = vmatprep.subr.mxu0 %v6863_v15 }
 0x1d0   :  { %v718_v55 = vpop.permute.xlu1 %717  ;;  %1048 = vst.msk [vmem:[#allocation4 + $0x110] sm:$0xff] %vm634_vm3, %v1000_v56  ;;  %v1368_v40 = vld [vmem:[#allocation4 + $0xf8] sm:$0xff]  ;;  %v1367_v58 = vld [vmem:[#allocation4 + $0xf0] sm:$0xff]  ;;  %2823 = vmatpush1.msra.mxu0 %v2680_v1 }
 0x1d1   :  { %767 = vst.msk [vmem:[#allocation4 + $0x108] sm:$0xff] %vm755_vm4, %v718_v55  ;;  %1614 = vmatprep.mubr.f32.mxu1 %v1368_v40  ;;  %2824 = vmatprep.subr.mxu0 %v6863_v15  ;;  %v2674_v56 = vld [vmem:[%s6820_s5 + $0x18] sm:$0xff]  ;;  %v2673_v40 = vld [vmem:[%s6820_s5 + $0x10] sm:$0xff] }
 0x1d2   :  { %1615 = vmatmul.mubr.f32.gmra.mxu1 %v1367_v58  ;;  %2825 = vmatpush1.msra.mxu0 %v2679_v30 }
 0x1d3   :  { %v1120_v35 = vpop.permute.xlu0 %1119  ;;  %2826 = vmatprep.subr.mxu0 %v6863_v15 }
 0x1d4   :  { %v839_v0 = vpop.permute.xlu1 %838  ;;  %1168 = vst.msk [vmem:[#allocation4 + $0x110] sm:$0xff] %vm755_vm4, %v1120_v35  ;;  %2827 = vmatpush1.msra.mxu0 %v2678_v25 }
 0x1d5   :  { %888 = vst.msk [vmem:[#allocation4 + $0x108] sm:$0xff] %vm876_vm5, %v839_v0  ;;  %2828 = vmatprep.subr.mxu0 %v6863_v15 }
 0x1d6   :  { %2829 = vmatpush1.msra.mxu0 %v2677_v62  ;;  %v2691_v62 = vld [vmem:[%s6820_s5 + $0xa0] sm:$0xff] }
 0x1d7   :  { %v1240_v39 = vpop.permute.xlu0 %1239  ;;  %2830 = vmatprep.subr.mxu0 %v6863_v15 }
 0x1d8   :  { %v603_v2 = vpop.permute.xlu1 %602  ;;  %1288 = vst.msk [vmem:[#allocation4 + $0x110] sm:$0xff] %vm876_vm5, %v1240_v39  ;;  %2831 = vmatpush1.msra.mxu0 %v2676_v6  ;;  %v2672_v39 = vld [vmem:[%s6820_s5 + $0x8] sm:$0xff] }
 0x1d9   :  { %649 = vst.msk [vmem:[#allocation4 + $0x150] sm:$0xff] %vm634_vm3, %v603_v2  ;;  %2832 = vmatprep.subr.mxu0 %v6863_v15 }
 0x1da   :  { %2833 = vmatpush1.msra.mxu0 %v2675_v42 }
 0x1db   :  { %v1002_v22 = vpop.permute.xlu0 %1001  ;;  %2834 = vmatprep.subr.mxu0 %v6863_v15 }
 0x1dc   :  { %v720_v5 = vpop.permute.xlu1 %719  ;;  %1049 = vst.msk [vmem:[#allocation4 + $0x128] sm:$0xff] %vm634_vm3, %v1002_v22  ;;  %v1370_v27 = vld [vmem:[#allocation4 + $0x108] sm:$0xff]  ;;  %2835 = vmatpush1.msra.mxu0 %v2674_v56 }
 0x1dd   :  { %768 = vst.msk [vmem:[#allocation4 + $0x120] sm:$0xff] %vm755_vm4, %v720_v5  ;;  %2836 = vmatprep.subr.mxu0 %v6863_v15  ;;  %v2671_v5 = vld [vmem:[%s6820_s5] sm:$0xff] }
 0x1de   :  { %2837 = vmatpush1.msra.mxu0 %v2673_v40  ;;  %v2690_v40 = vld [vmem:[%s6820_s5 + $0x98] sm:$0xff] }
 0x1df   :  { %v1122_v20 = vpop.permute.xlu0 %1121  ;;  %v1371_v4 = vld [vmem:[#allocation4 + $0x110] sm:$0xff]  ;;  %2838 = vmatprep.subr.mxu0 %v6863_v15 }
 0x1e0   :  { %v841_v18 = vpop.permute.xlu1 %840  ;;  %1169 = vst.msk [vmem:[#allocation4 + $0x128] sm:$0xff] %vm755_vm4, %v1122_v20  ;;  %1619 = vmatprep.mubr.f32.mxu1 %v1371_v4  ;;  %2839 = vmatpush1.msra.mxu0 %v2672_v39  ;;  %v2702_v20 = vld [vmem:[%s6820_s5 + $0xf8] sm:$0xff]  ;;  %v2701_v4 = vld [vmem:[%s6820_s5 + $0xf0] sm:$0xff] }
 0x1e1   :  { %889 = vst.msk [vmem:[#allocation4 + $0x120] sm:$0xff] %vm876_vm5, %v841_v18  ;;  %1289 = vst.msk [vmem:[#allocation4 + $0x128] sm:$0xff] %vm876_vm5, %v1242_v45  ;;  %1620 = vmatmul.mubr.f32.gmra.mxu1 %v1370_v27  ;;  %2840 = vmatprep.subr.mxu0 %v6863_v15 }
 0x1e2   :  { %2841 = vmatpush1.msra.mxu0 %v2671_v5 }
 0x1e3   :  { %v1246_v29 = vpop.permute.xlu0 %1245  ;;  %2842 = vmatprep.subr.mxu0 %v6863_v15 }
 0x1e4   :  { %v601_v44 = vpop.permute.xlu1 %600  ;;  %2843 = vmatpush2.msra.mxu0 %v2702_v20  ;;  %v2688_v20 = vld [vmem:[%s6820_s5 + $0x88] sm:$0xff] }
 0x1e5   :  { %648 = vst.msk [vmem:[#allocation4 + $0x138] sm:$0xff] %vm634_vm3, %v601_v44  ;;  %2844 = vmatprep.subr.mxu0 %v6863_v15 }
 0x1e6   :  { %2845 = vmatpush2.msra.mxu0 %v2701_v4  ;;  %v5653_v4 = vld [vmem:[%s6820_s5 + $0x168] sm:$0xff] }
 0x1e7   :  { %v1004_v34 = vpop.permute.xlu0 %1003  ;;  %2846 = vmatprep.subr.mxu0 %v6863_v15 }
 0x1e8   :  { %v722_v32 = vpop.permute.xlu1 %721  ;;  %1050 = vst.msk [vmem:[#allocation4 + $0x140] sm:$0xff] %vm634_vm3, %v1004_v34  ;;  %v1374_v48 = vld [vmem:[#allocation4 + $0x128] sm:$0xff]  ;;  %v1373_v37 = vld [vmem:[#allocation4 + $0x120] sm:$0xff]  ;;  %v5560_v34 = vpop.f32.mrf.mxu0 }
 0x1e9   :  { %769 = vst.msk [vmem:[#allocation4 + $0x138] sm:$0xff] %vm755_vm4, %v722_v32  ;;  %1624 = vmatprep.mubr.f32.mxu1 %v1374_v48  ;;  %v2700_v32 = vld [vmem:[%s6820_s5 + $0xe8] sm:$0xff]  ;;  %v5565_v48 = vld [vmem:[%s6819_s4] ss:$0 sm:$0xff] }
 0x1ea   :  { %1625 = vmatmul.mubr.f32.gmra.mxu1 %v1373_v37  ;;  %2847 = vmatpush2.msra.mxu0 %v2700_v32  ;;  %v2687_v32 = vld [vmem:[%s6820_s5 + $0x80] sm:$0xff] }
 0x1eb   :  { %v1124_v63 = vpop.permute.xlu0 %1123  ;;  %2848 = vmatprep.subr.mxu0 %v6863_v15 }
 0x1ec   :  { %v843_v26 = vpop.permute.xlu1 %842  ;;  %1170 = vst.msk [vmem:[#allocation4 + $0x140] sm:$0xff] %vm755_vm4, %v1124_v63 }
 0x1ed   :  { %890 = vst.msk [vmem:[#allocation4 + $0x138] sm:$0xff] %vm876_vm5, %v843_v26  ;;  %v2699_v26 = vld [vmem:[%s6820_s5 + $0xe0] sm:$0xff] }
 0x1ee   :  { %2849 = vmatpush2.msra.mxu0 %v2699_v26 }
 0x1ef   :  { %v1244_v3 = vpop.permute.xlu0 %1243  ;;  %2850 = vmatprep.subr.mxu0 %v6863_v15 }
 0x1f0   :  { %v607_v16 = vpop.permute.xlu1 %606  ;;  %1290 = vst.msk [vmem:[#allocation4 + $0x140] sm:$0xff] %vm876_vm5, %v1244_v3  ;;  %v1890_v3 = vld [vmem:[#allocation3 + $0x7] sm:$0xff] }
 0x1f1   :  { %651 = vst.msk [vmem:[#allocation4 + $0x180] sm:$0xff] %vm634_vm3, %v607_v16 }
 0x1f2   :  { %1910 = vst.msk [vmem:[#allocation5] sm:$0xff] %vm70_vm6, %v1890_v3  ;;  %v5677_v3 = vld [vmem:[%s6820_s5 + $0x158] sm:$0xff] }
 0x1f3   :  { %v1006_v9 = vpop.permute.xlu0 %1005 }
 0x1f4   :  { %v724_v8 = vpop.permute.xlu1 %723  ;;  %1051 = vst.msk [vmem:[#allocation4 + $0x158] sm:$0xff] %vm634_vm3, %v1006_v9  ;;  %v1376_v46 = vld [vmem:[#allocation4 + $0x138] sm:$0xff] }
 0x1f5   :  { %770 = vst.msk [vmem:[#allocation4 + $0x150] sm:$0xff] %vm755_vm4, %v724_v8  ;;  %v2698_v8 = vld [vmem:[%s6820_s5 + $0xd8] sm:$0xff] }
 0x1f6   :  { %2851 = vmatpush2.msra.mxu0 %v2698_v8 }
 0x1f7   :  { %v1126_v38 = vpop.permute.xlu0 %1125  ;;  %v1377_v14 = vld [vmem:[#allocation4 + $0x140] sm:$0xff]  ;;  %2852 = vmatprep.subr.mxu0 %v6863_v15 }
 0x1f8   :  { %v845_v31 = vpop.permute.xlu1 %844  ;;  %1171 = vst.msk [vmem:[#allocation4 + $0x158] sm:$0xff] %vm755_vm4, %v1126_v38  ;;  %1629 = vmatprep.mubr.f32.mxu1 %v1377_v14  ;;  %2853 = vmatpush2.msra.mxu0 %v2697_v43  ;;  %v5686_v43 = vld [vmem:[%s6820_s5 + $0x150] sm:$0xff] }
 0x1f9   :  { %891 = vst.msk [vmem:[#allocation4 + $0x150] sm:$0xff] %vm876_vm5, %v845_v31  ;;  %1291 = vst.msk [vmem:[#allocation4 + $0x158] sm:$0xff] %vm876_vm5, %v1246_v29  ;;  %1630 = vmatmul.mubr.f32.gmra.mxu1 %v1376_v46  ;;  %v1731_v31 = vpop.f32.mrf.mxu0  ;;  %2854 = vmatprep.subr.mxu0 %v6863_v15 }
 0x1fa   :  { %2855 = vmatpush2.msra.mxu0 %v2696_v47 }
 0x1fb   :  { %v1250_v21 = vpop.permute.xlu0 %1249  ;;  %2856 = vmatprep.subr.mxu0 %v6863_v15 }
 0x1fc   :  { %v605_v61 = vpop.permute.xlu1 %604  ;;  %2857 = vmatpush2.msra.mxu0 %v2695_v41  ;;  %v5710_v41 = vld [vmem:[%s6820_s5 + $0x140] sm:$0xff] }
 0x1fd   :  { %650 = vst.msk [vmem:[#allocation4 + $0x168] sm:$0xff] %vm634_vm3, %v605_v61  ;;  %2858 = vmatprep.subr.mxu0 %v6863_v15 }
 0x1ff   :  { %v1008_v28 = vpop.permute.xlu0 %1007 }
 0x200   :  { %v726_v52 = vpop.permute.xlu1 %725  ;;  %1052 = vst.msk [vmem:[#allocation4 + $0x170] sm:$0xff] %vm634_vm3, %v1008_v28  ;;  %v1380_v7 = vld [vmem:[#allocation4 + $0x158] sm:$0xff]  ;;  %v1379_v12 = vld [vmem:[#allocation4 + $0x150] sm:$0xff] }
 0x201   :  { %771 = vst.msk [vmem:[#allocation4 + $0x168] sm:$0xff] %vm755_vm4, %v726_v52  ;;  %1634 = vmatprep.mubr.f32.mxu1 %v1380_v7  ;;  %v2694_v7 = vld [vmem:[%s6820_s5 + $0xb8] sm:$0xff] }
 0x202   :  { %1635 = vmatmul.mubr.f32.gmra.mxu1 %v1379_v12  ;;  %2859 = vmatpush2.msra.mxu0 %v2694_v7  ;;  %v2693_v12 = vld [vmem:[%s6820_s5 + $0xb0] sm:$0xff] }
 0x203   :  { %v1128_v10 = vpop.permute.xlu0 %1127  ;;  %2860 = vmatprep.subr.mxu0 %v6863_v15 }
 0x204   :  { %v847_v33 = vpop.permute.xlu1 %846  ;;  %1172 = vst.msk [vmem:[#allocation4 + $0x170] sm:$0xff] %vm755_vm4, %v1128_v10  ;;  %2861 = vmatpush2.msra.mxu0 %v2693_v12  ;;  %v2692_v10 = vld [vmem:[%s6820_s5 + $0xa8] sm:$0xff] }
 0x205   :  { %892 = vst.msk [vmem:[#allocation4 + $0x168] sm:$0xff] %vm876_vm5, %v847_v33  ;;  %2862 = vmatprep.subr.mxu0 %v6863_v15 }
 0x206   :  { %2863 = vmatpush2.msra.mxu0 %v2692_v10  ;;  %v5737_v10 = vld [vmem:[%s6820_s5 + $0x128] sm:$0xff] }
 0x207   :  { %v1248_v53 = vpop.permute.xlu0 %1247  ;;  %2864 = vmatprep.subr.mxu0 %v6863_v15 }
 0x208   :  { %v728_v23 = vpop.permute.xlu1 %727  ;;  %1292 = vst.msk [vmem:[#allocation4 + $0x170] sm:$0xff] %vm876_vm5, %v1248_v53  ;;  %2865 = vmatpush2.msra.mxu0 %v2691_v62 }
 0x209   :  { %772 = vst.msk [vmem:[#allocation4 + $0x180] sm:$0xff] %vm755_vm4, %v728_v23  ;;  %2866 = vmatprep.subr.mxu0 %v6863_v15 }
 0x20a   :  { %2867 = vmatpush2.msra.mxu0 %v2690_v40  ;;  %v5765_v40 = vld [vmem:[%s6820_s5 + $0x110] sm:$0xff] }
 0x20b   :  { %v1010_v55 = vpop.permute.xlu0 %1009  ;;  %2868 = vmatprep.subr.mxu0 %v6863_v15 }
 0x20c   :  { %v849_v45 = vpop.permute.xlu1 %848  ;;  %1053 = vst.msk [vmem:[#allocation4 + $0x188] sm:$0xff] %vm634_vm3, %v1010_v55  ;;  %v1382_v2 = vld [vmem:[#allocation4 + $0x168] sm:$0xff] }
 0x20d   :  { %893 = vst.msk [vmem:[#allocation4 + $0x180] sm:$0xff] %vm876_vm5, %v849_v45 }
 0x20f   :  { %v1130_v0 = vpop.permute.xlu0 %1129  ;;  %v1383_v35 = vld [vmem:[#allocation4 + $0x170] sm:$0xff] }
 0x210   :  { %v609_v58 = vpop.permute.xlu1 %608  ;;  %1173 = vst.msk [vmem:[#allocation4 + $0x188] sm:$0xff] %vm755_vm4, %v1130_v0  ;;  %1639 = vmatprep.mubr.f32.mxu1 %v1383_v35  ;;  %v2689_v35 = vld [vmem:[%s6820_s5 + $0x90] sm:$0xff] }
 0x211   :  { %652 = vst.msk [vmem:[#allocation4 + $0x198] sm:$0xff] %vm634_vm3, %v609_v58  ;;  %1640 = vmatmul.mubr.f32.gmra.mxu1 %v1382_v2  ;;  %v5626_v58 = vld [vmem:[%s6820_s5 + $0x178] sm:$0xff]  ;;  %v5641_v2 = vld [vmem:[%s6820_s5 + $0x170] sm:$0xff]  ;;  %2869 = vmatpush2.msra.mxu0 %v2689_v35 }
 0x212   :  { %1293 = vst.msk [vmem:[#allocation4 + $0x188] sm:$0xff] %vm876_vm5, %v1250_v21  ;;  %4308 = vmatpush1.msra.mxu1 %v5626_v58  ;;  %2870 = vmatprep.subr.mxu0 %v6863_v15 }
 0x213   :  { %v1012_v18 = vpop.permute.xlu0 %1011  ;;  %4277 = vmatprep.subr.mxu1 %v6863_v15  ;;  %2871 = vmatpush2.msra.mxu0 %v2688_v20 }
 0x214   :  { %v730_v22 = vpop.permute.xlu1 %729  ;;  %1054 = vst.msk [vmem:[#allocation4 + $0x1a0] sm:$0xff] %vm634_vm3, %v1012_v18  ;;  %v1385_v37 = vld [vmem:[#allocation4 + $0x180] sm:$0xff]  ;;  %4309 = vmatpush1.msra.mxu1 %v5641_v2  ;;  %2872 = vmatprep.subr.mxu0 %v6863_v15 }
 0x215   :  { %773 = vst.msk [vmem:[#allocation4 + $0x198] sm:$0xff] %vm755_vm4, %v730_v22  ;;  %4278 = vmatprep.subr.mxu1 %v6863_v15  ;;  %2873 = vmatpush2.msra.mxu0 %v2687_v32 }
 0x216   :  { %4310 = vmatpush1.msra.mxu1 %v5653_v4  ;;  %2975 = vmatprep.subr.mxu0 %v6863_v15 }
 0x217   :  { %v1132_v44 = vpop.permute.xlu0 %1131  ;;  %4279 = vmatprep.subr.mxu1 %v6863_v15 }
 0x218   :  { %v851_v27 = vpop.permute.xlu1 %850  ;;  %1174 = vst.msk [vmem:[#allocation4 + $0x1a0] sm:$0xff] %vm755_vm4, %v1132_v44 }
 0x219   :  { %894 = vst.msk [vmem:[#allocation4 + $0x198] sm:$0xff] %vm876_vm5, %v851_v27  ;;  %v1386_v29 = vld [vmem:[#allocation4 + $0x188] sm:$0xff]  ;;  %v5655_v27 = vpop.f32.mrf.mxu0 }
 0x21a   :  { %1644 = vmatprep.mubr.f32.mxu1 %v1386_v29 }
 0x21b   :  { %1645 = vmatmul.mubr.f32.gmra.mxu1 %v1385_v37  ;;  %v1566_v63 = vpop.f32.mrf.mxu1  ;;  %v1252_v19 = vpop.permute.xlu0 %1251 }
 0x21c   :  { %v611_v16 = vpop.permute.xlu1 %610  ;;  %v1567_v9 = vadd.f32 %v5565_v48, %v1566_v63  ;;  %1294 = vst.msk [vmem:[#allocation4 + $0x1a0] sm:$0xff] %vm876_vm5, %v1252_v19  ;;  %v1741_v8 = vpop.f32.mrf.mxu0 }
 0x21d   :  { %653 = vst.msk [vmem:[#allocation4 + $0x1b0] sm:$0xff] %vm634_vm3, %v611_v16  ;;  %v1568_v38 = vpop.f32.mrf.mxu1 }
 0x21e   :  { %v1732_v14 = vadd.f32 %v1731_v31, %v1567_v9  ;;  %v5694_v38 = vld [vmem:[%s6820_s5 + $0x148] sm:$0xff] }
 0x21f   :  { %v1014_v61 = vpop.permute.xlu0 %1013 }
 0x220   :  { %v732_v46 = vpop.permute.xlu1 %731  ;;  %v1830_v60 = vmax.f32 %v1732_v14, 0.0  ;;  %1055 = vst.msk [vmem:[#allocation4 + $0x1b8] sm:$0xff] %vm634_vm3, %v1014_v61  ;;  %v1388_v1 = vld [vmem:[#allocation4 + $0x198] sm:$0xff] }
 0x221   :  { %774 = vst.msk [vmem:[#allocation4 + $0x1b0] sm:$0xff] %vm755_vm4, %v732_v46 }
 0x222   :  { %v1850_v21 = vmul.f32 %v1830_v60, %v4744_v13 }
 0x223   :  { %v1134_v52 = vpop.permute.xlu0 %1133  ;;  %v1389_v28 = vld [vmem:[#allocation4 + $0x1a0] sm:$0xff] }
 0x224   :  { %v853_v11 = vpop.permute.xlu1 %852  ;;  %1870 = vst.msk [vmem:[#allocation3 + $0x10] sm:$0xff] %vm70_vm6, %v1850_v21  ;;  %1649 = vmatprep.mubr.f32.mxu1 %v1389_v28  ;;  %v5725_v28 = vld [vmem:[%s6820_s5 + $0x130] sm:$0xff] }
 0x225   :  { %895 = vst.msk [vmem:[#allocation4 + $0x1b0] sm:$0xff] %vm876_vm5, %v853_v11  ;;  %1650 = vmatmul.mubr.f32.gmra.mxu1 %v1388_v1  ;;  %v5717_v11 = vld [vmem:[%s6820_s5 + $0x138] sm:$0xff] }
 0x226   :  { %1175 = vst.msk [vmem:[#allocation4 + $0x1b8] sm:$0xff] %vm755_vm4, %v1134_v52 }
 0x227   :  { %v1254_v33 = vpop.permute.xlu0 %1253 }
 0x228   :  { %v613_v30 = vpop.permute.xlu1 %612  ;;  %1295 = vst.msk [vmem:[#allocation4 + $0x1b8] sm:$0xff] %vm876_vm5, %v1254_v33 }
 0x229   :  { %654 = vst.msk [vmem:[#allocation4 + $0x1c8] sm:$0xff] %vm634_vm3, %v613_v30  ;;  %v1571_v25 = vpop.f32.mrf.mxu1 }
 0x22a   :  { %v1572_v23 = vadd.f32 %v5565_v48, %v1571_v25 }
 0x22b   :  { %v1931_v6 = vld [vmem:[#allocation3 + $0x10] sm:$0xff]  ;;  %v1573_v45 = vpop.f32.mrf.mxu1  ;;  %v1016_v55 = vpop.permute.xlu0 %1015 }
 0x22c   :  { %v734_v53 = vpop.permute.xlu1 %733  ;;  %v2091_v42 = vld [vmem:[#allocation3 + $0xf] sm:$0xff]  ;;  %1972 = vrot.lane.b32.xlu1 %v1931_v6, %s4410_s1  ;;  %2231 = vst.msk [vmem:[#allocation5 + $0x10] sm:$0xff] %vm70_vm6, %v1931_v6  ;;  %v1737_v0 = vadd.f32 %v5560_v34, %v1572_v23  ;;  %v5666_v34 = vld [vmem:[%s6820_s5 + $0x160] sm:$0xff] }
 0x22d   :  { %775 = vst.msk [vmem:[#allocation4 + $0x1c8] sm:$0xff] %vm755_vm4, %v734_v53  ;;  %2131 = vrot.lane.b32.xlu0 %v2091_v42, %s4410_s1  ;;  %v2051_v56 = vld [vmem:[#allocation3 + $0x9] sm:$0xff]  ;;  %4311 = vmatpush1.msra.mxu1 %v5666_v34  ;;  %v5748_v6 = vld [vmem:[%s6820_s5 + $0x120] sm:$0xff] }
 0x22e   :  { %1911 = vst.msk [vmem:[#allocation5 + $0x28] sm:$0xff] %vm70_vm6, %v2091_v42  ;;  %2071 = vst.msk [vmem:[#allocation5 + $0x8] sm:$0xff] %vm70_vm6, %v2051_v56  ;;  %v1831_v39 = vmax.f32 %v1737_v0, 0.0  ;;  %v1391_v29 = vld [vmem:[#allocation4 + $0x1b0] sm:$0xff]  ;;  %4280 = vmatprep.subr.mxu1 %v6863_v15  ;;  %v4146_v42 = vpop.f32.mrf.mxu0 }
 0x22f   :  { %1056 = vst.msk [vmem:[#allocation4 + $0x1d0] sm:$0xff] %vm634_vm3, %v1016_v55  ;;  %v1136_v22 = vpop.permute.xlu0 %1135  ;;  %v1392_v18 = vld [vmem:[#allocation4 + $0x1b8] sm:$0xff]  ;;  %4312 = vmatpush1.msra.mxu1 %v5677_v3 }
 0x230   :  { %v855_v5 = vpop.permute.xlu1 %854  ;;  %v1851_v44 = vmul.f32 %v1831_v39, %v4757_v17  ;;  %1176 = vst.msk [vmem:[#allocation4 + $0x1d0] sm:$0xff] %vm755_vm4, %v1136_v22  ;;  %1654 = vmatprep.mubr.f32.mxu1 %v1392_v18  ;;  %4281 = vmatprep.subr.mxu1 %v6863_v15  ;;  %v5757_v55 = vld [vmem:[%s6820_s5 + $0x118] sm:$0xff]  ;;  %v1751_v35 = vpop.f32.mrf.mxu0  ;;  %v5780_v18 = vld [vmem:[%s6820_s5 + $0x100] sm:$0xff] }
 0x231   :  { %896 = vst.msk [vmem:[#allocation4 + $0x1c8] sm:$0xff] %vm876_vm5, %v855_v5  ;;  %1655 = vmatmul.mubr.f32.gmra.mxu1 %v1391_v29  ;;  %v5773_v5 = vld [vmem:[%s6820_s5 + $0x108] sm:$0xff] }
 0x232   :  { %1871 = vst.msk [vmem:[#allocation3 + $0x18] sm:$0xff] %vm70_vm6, %v1851_v44  ;;  %v1576_v37 = vpop.f32.mrf.mxu1  ;;  %4313 = vmatpush1.msra.mxu1 %v5686_v43 }
 0x233   :  { %v1577_v63 = vadd.f32 %v5565_v48, %v1576_v37  ;;  %v1256_v16 = vpop.permute.xlu0 %1255  ;;  %4282 = vmatprep.subr.mxu1 %v6863_v15 }
 0x234   :  { %v1971_v26 = vpop.permute.xlu1 %1970  ;;  %1296 = vst.msk [vmem:[#allocation4 + $0x1d0] sm:$0xff] %vm876_vm5, %v1256_v16  ;;  %v1578_v9 = vpop.f32.mrf.mxu1  ;;  %4314 = vmatpush1.msra.mxu1 %v5694_v38 }
 0x235   :  { %2031 = vst.msk [vmem:[#allocation5] sm:$0xff] %vm2030_vm7, %v1971_v26  ;;  %v1742_v19 = vadd.f32 %v1741_v8, %v1577_v63  ;;  %4283 = vmatprep.subr.mxu1 %v6863_v15  ;;  %v5803_v63 = vld [vmem:[%s6820_s5 + $0x1f0] sm:$0xff]  ;;  %v5813_v8 = vld [vmem:[%s6820_s5 + $0x1e8] sm:$0xff]  ;;  %v5820_v9 = vld [vmem:[%s6820_s5 + $0x1e0] sm:$0xff] }
 0x236   :  { %4315 = vmatpush1.msra.mxu1 %v5710_v41 }
 0x237   :  { %v1832_v31 = vmax.f32 %v1742_v19, 0.0  ;;  %4284 = vmatprep.subr.mxu1 %v6863_v15 }
 0x238   :  { %v1394_v21 = vld [vmem:[#allocation4 + $0x1c8] sm:$0xff]  ;;  %4316 = vmatpush1.msra.mxu1 %v5717_v11 }
 0x239   :  { %v1852_v14 = vmul.f32 %v1832_v31, %v4656_v49  ;;  %v1932_v46 = vld [vmem:[#allocation3 + $0x18] sm:$0xff]  ;;  %4285 = vmatprep.subr.mxu1 %v6863_v15 }
 0x23a   :  { %v2092_v47 = vld [vmem:[#allocation3 + $0x17] sm:$0xff]  ;;  %1974 = vrot.lane.b32.xlu1 %v1932_v46, %s4410_s1  ;;  %2232 = vst.msk [vmem:[#allocation5 + $0x38] sm:$0xff] %vm70_vm6, %v1932_v46  ;;  %4317 = vmatpush1.msra.mxu1 %v5725_v28 }
 0x23b   :  { %v2251_v60 = vld [vmem:[#allocation3 + $0x11] sm:$0xff]  ;;  %2133 = vrot.lane.b32.xlu0 %v2092_v47, %s4410_s1  ;;  %1912 = vst.msk [vmem:[#allocation5 + $0x50] sm:$0xff] %vm70_vm6, %v2092_v47  ;;  %2391 = vst.msk [vmem:[#allocation5 + $0x18] sm:$0xff] %vm70_vm6, %v2092_v47  ;;  %4286 = vmatprep.subr.mxu1 %v6863_v15 }
 0x23c   :  { %2072 = vst.msk [vmem:[#allocation5 + $0x30] sm:$0xff] %vm70_vm6, %v2251_v60  ;;  %1872 = vst.msk [vmem:[#allocation3 + $0x20] sm:$0xff] %vm70_vm6, %v1852_v14  ;;  %v1395_v61 = vld [vmem:[#allocation4 + $0x1d0] sm:$0xff]  ;;  %4318 = vmatpush1.msra.mxu1 %v5737_v10  ;;  %v5827_v31 = vld [vmem:[%s6820_s5 + $0x1d8] sm:$0xff] }
 0x23d   :  { %1659 = vmatprep.mubr.f32.mxu1 %v1395_v61  ;;  %4287 = vmatprep.subr.mxu1 %v6863_v15 }
 0x23e   :  { %1660 = vmatmul.mubr.f32.gmra.mxu1 %v1394_v21  ;;  %2291 = vrot.lane.b32.xlu1 %v2251_v60, %s4410_s1 }
 0x23f   :  { %2451 = vrot.lane.b32.xlu0 %v1932_v46, %s4410_s1  ;;  %4319 = vmatpush1.msra.mxu1 %v5748_v6 }
 0x240   :  { %4288 = vmatprep.subr.mxu1 %v6863_v15 }
 0x241   :  { %v1581_v52 = vpop.f32.mrf.mxu1  ;;  %4320 = vmatpush1.msra.mxu1 %v5757_v55 }
 0x242   :  { %v1582_v7 = vadd.f32 %v5565_v48, %v1581_v52  ;;  %4289 = vmatprep.subr.mxu1 %v6863_v15 }
 0x243   :  { %v1933_v1 = vld [vmem:[#allocation3 + $0x20] sm:$0xff]  ;;  %v1583_v33 = vpop.f32.mrf.mxu1  ;;  %4321 = vmatpush1.msra.mxu1 %v5765_v40 }
 0x244   :  { %v2093_v12 = vld [vmem:[#allocation3 + $0x1f] sm:$0xff]  ;;  %1976 = vrot.lane.b32.xlu1 %v1933_v1, %s4410_s1  ;;  %v1747_v23 = vadd.f32 %v5655_v27, %v1582_v7  ;;  %4290 = vmatprep.subr.mxu1 %v6863_v15  ;;  %v5843_v7 = vld [vmem:[%s6820_s5 + $0x1d0] sm:$0xff]  ;;  %v5855_v33 = vpop.f32.mrf.mxu0 }
 0x245   :  { %v2252_v30 = vld [vmem:[#allocation3 + $0x19] sm:$0xff]  ;;  %2135 = vrot.lane.b32.xlu0 %v2093_v12, %s4410_s1  ;;  %1913 = vst.msk [vmem:[#allocation5 + $0x78] sm:$0xff] %vm70_vm6, %v2093_v12  ;;  %2392 = vst.msk [vmem:[#allocation5 + $0x40] sm:$0xff] %vm70_vm6, %v2093_v12  ;;  %4322 = vmatpush1.msra.mxu1 %v5773_v5 }
 0x246   :  { %2073 = vst.msk [vmem:[#allocation5 + $0x58] sm:$0xff] %vm70_vm6, %v2252_v30  ;;  %v2213_v25 = vld [vmem:[#allocation3 + $0x20] sm:$0xff]  ;;  %v1833_v53 = vmax.f32 %v1747_v23, 0.0  ;;  %4291 = vmatprep.subr.mxu1 %v6863_v15  ;;  %v5787_v27 = vld [vmem:[%s6820_s5 + $0x1f8] sm:$0xff] }
 0x247   :  { %v2531_v62 = vld [vmem:[#allocation3 + $0x19] sm:$0xff]  ;;  %2233 = vst.msk [vmem:[#allocation5 + $0x60] sm:$0xff] %vm70_vm6, %v2213_v25  ;;  %4323 = vmatpush1.msra.mxu1 %v5780_v18 }
 0x248   :  { %2551 = vst.msk [vmem:[#allocation5 + $0x20] sm:$0xff] %vm70_vm6, %v2531_v62  ;;  %2293 = vrot.lane.b32.xlu1 %v2252_v30, %s4410_s1  ;;  %v1853_v45 = vmul.f32 %v1833_v53, %v4658_v50  ;;  %4292 = vmatprep.subr.mxu1 %v6863_v15  ;;  %v5852_v30 = vld [vmem:[%s6820_s5 + $0x1c8] sm:$0xff]  ;;  %v5862_v62 = vld [vmem:[%s6820_s5 + $0x1c0] sm:$0xff]  ;;  %v5870_v53 = vld [vmem:[%s6820_s5 + $0x1b8] sm:$0xff] }
 0x249   :  { %2453 = vrot.lane.b32.xlu0 %v1933_v1, %s4410_s1  ;;  %4324 = vmatpush2.msra.mxu1 %v5787_v27 }
 0x24a   :  { %1873 = vst.msk [vmem:[#allocation3 + $0x28] sm:$0xff] %vm70_vm6, %v1853_v45  ;;  %v1586_v56 = vpop.f32.mrf.mxu1  ;;  %4293 = vmatprep.subr.mxu1 %v6863_v15  ;;  %v1761_v45 = vpop.f32.mrf.mxu0 }
 0x24b   :  { %v1587_v0 = vadd.f32 %v5565_v48, %v1586_v56  ;;  %4325 = vmatpush2.msra.mxu1 %v5803_v63 }
 0x24c   :  { %v1588_v39 = vpop.f32.mrf.mxu1  ;;  %4294 = vmatprep.subr.mxu1 %v6863_v15 }
 0x24d   :  { %v1752_v22 = vadd.f32 %v1751_v35, %v1587_v0  ;;  %4326 = vmatpush2.msra.mxu1 %v5813_v8  ;;  %v5878_v0 = vld [vmem:[%s6820_s5 + $0x1b0] sm:$0xff]  ;;  %v5885_v39 = vld [vmem:[%s6820_s5 + $0x1a8] sm:$0xff] }
 0x24e   :  { %4295 = vmatprep.subr.mxu1 %v6863_v15 }
 0x24f   :  { %v1834_v20 = vmax.f32 %v1752_v22, 0.0  ;;  %4327 = vmatpush2.msra.mxu1 %v5820_v9 }
 0x250   :  { %4296 = vmatprep.subr.mxu1 %v6863_v15 }
 0x251   :  { %v2532_v44 = vld [vmem:[#allocation3 + $0x21] sm:$0xff]  ;;  %v1854_v29 = vmul.f32 %v1834_v20, %v4778_v24  ;;  %4328 = vmatpush2.msra.mxu1 %v5827_v31 }
 0x252   :  { %v1934_v32 = vld [vmem:[#allocation3 + $0x28] sm:$0xff]  ;;  %2552 = vst.msk [vmem:[#allocation5 + $0x48] sm:$0xff] %vm70_vm6, %v2532_v44  ;;  %2074 = vst.msk [vmem:[#allocation5 + $0x80] sm:$0xff] %vm70_vm6, %v2532_v44  ;;  %4297 = vmatprep.subr.mxu1 %v6863_v15  ;;  %v5892_v20 = vld [vmem:[%s6820_s5 + $0x1a0] sm:$0xff] }
 0x253   :  { %v2094_v37 = vld [vmem:[#allocation3 + $0x27] sm:$0xff]  ;;  %1978 = vrot.lane.b32.xlu1 %v1934_v32, %s4410_s1  ;;  %1874 = vst.msk [vmem:[#allocation3 + $0x30] sm:$0xff] %vm70_vm6, %v1854_v29  ;;  %4329 = vmatpush2.msra.mxu1 %v5843_v7 }
 0x254   :  { %2137 = vrot.lane.b32.xlu0 %v2094_v37, %s4410_s1  ;;  %1914 = vst.msk [vmem:[#allocation5 + $0xa0] sm:$0xff] %vm70_vm6, %v2094_v37  ;;  %v5796_v26 = vld [vmem:[#allocation3 + $0x28] sm:$0xff]  ;;  %4298 = vmatprep.subr.mxu1 %v6863_v15 }
 0x255   :  { %2234 = vst.msk [vmem:[#allocation5 + $0x88] sm:$0xff] %vm70_vm6, %v5796_v26  ;;  %v2373_v16 = vld [vmem:[#allocation3 + $0x27] sm:$0xff]  ;;  %4330 = vmatpush2.msra.mxu1 %v5852_v30 }
 0x256   :  { %2393 = vst.msk [vmem:[#allocation5 + $0x68] sm:$0xff] %vm70_vm6, %v2373_v16  ;;  %4299 = vmatprep.subr.mxu1 %v6863_v15 }
 0x257   :  { %4331 = vmatpush2.msra.mxu1 %v5862_v62 }
 0x258   :  { %4300 = vmatprep.subr.mxu1 %v6863_v15 }
 0x259   :  { %v1591_v19 = vpop.f32.mrf.mxu1  ;;  %4332 = vmatpush2.msra.mxu1 %v5870_v53 }
 0x25a   :  { %v1592_v14 = vadd.f32 %v5565_v48, %v1591_v19  ;;  %v1935_v46 = vld [vmem:[#allocation3 + $0x30] sm:$0xff]  ;;  %4301 = vmatprep.subr.mxu1 %v6863_v15  ;;  %v5909_v19 = vld [vmem:[%s6820_s5 + $0x198] sm:$0xff] }
 0x25b   :  { %v2095_v47 = vld [vmem:[#allocation3 + $0x2f] sm:$0xff]  ;;  %1980 = vrot.lane.b32.xlu1 %v1935_v46, %s4410_s1  ;;  %v1593_v61 = vpop.f32.mrf.mxu1  ;;  %2235 = vst.msk [vmem:[#allocation5 + $0xb0] sm:$0xff] %vm70_vm6, %v1935_v46  ;;  %4333 = vmatpush2.msra.mxu1 %v5878_v0 }
 0x25c   :  { %v5830_v60 = vld [vmem:[#allocation3 + $0x29] sm:$0xff]  ;;  %2139 = vrot.lane.b32.xlu0 %v2095_v47, %s4410_s1  ;;  %1915 = vst.msk [vmem:[#allocation5 + $0xc8] sm:$0xff] %vm70_vm6, %v2095_v47  ;;  %v1757_v52 = vadd.f32 %v4146_v42, %v1592_v14  ;;  %4302 = vmatprep.subr.mxu1 %v6863_v15 }
 0x25d   :  { %2075 = vst.msk [vmem:[#allocation5 + $0xa8] sm:$0xff] %vm70_vm6, %v5830_v60  ;;  %v2374_v21 = vld [vmem:[#allocation3 + $0x2f] sm:$0xff]  ;;  %4334 = vmatpush2.msra.mxu1 %v5885_v39 }
 0x25e   :  { %2394 = vst.msk [vmem:[#allocation5 + $0x90] sm:$0xff] %vm70_vm6, %v2374_v21  ;;  %v2533_v1 = vld [vmem:[#allocation3 + $0x29] sm:$0xff]  ;;  %v1835_v12 = vmax.f32 %v1757_v52, 0.0  ;;  %4303 = vmatprep.subr.mxu1 %v6863_v15 }
 0x25f   :  { %2553 = vst.msk [vmem:[#allocation5 + $0x70] sm:$0xff] %vm70_vm6, %v2533_v1  ;;  %4335 = vmatpush2.msra.mxu1 %v5892_v20  ;;  %v5917_v14 = vld [vmem:[%s6820_s5 + $0x190] sm:$0xff]  ;;  %v5925_v47 = vld [vmem:[%s6820_s5 + $0x188] sm:$0xff] }
 0x260   :  { %v1855_v25 = vmul.f32 %v1835_v12, %v4660_v51  ;;  %4304 = vmatprep.subr.mxu1 %v6863_v15 }
 0x261   :  { %4336 = vmatpush2.msra.mxu1 %v5909_v19 }
 0x262   :  { %1875 = vst.msk [vmem:[#allocation3 + $0x38] sm:$0xff] %vm70_vm6, %v1855_v25  ;;  %v1596_v23 = vpop.f32.mrf.mxu1  ;;  %4305 = vmatprep.subr.mxu1 %v6863_v15  ;;  %v5936_v25 = vld [vmem:[%s6820_s5 + $0x180] sm:$0xff] }
 0x263   :  { %v1597_v42 = vadd.f32 %v5565_v48, %v1596_v23  ;;  %4337 = vmatpush2.msra.mxu1 %v5917_v14 }
 0x264   :  { %v1598_v56 = vpop.f32.mrf.mxu1  ;;  %4306 = vmatprep.subr.mxu1 %v6863_v15 }
 0x265   :  { %v1762_v35 = vadd.f32 %v1761_v45, %v1597_v42  ;;  %4338 = vmatpush2.msra.mxu1 %v5925_v47  ;;  %v4152_v56 = vpop.f32.mrf.mxu0 }
 0x266   :  { %4307 = vmatprep.subr.mxu1 %v6863_v15 }
 0x267   :  { %v1836_v22 = vmax.f32 %v1762_v35, 0.0  ;;  %4339 = vmatpush2.msra.mxu1 %v5936_v25 }
 0x269   :  { %v1856_v44 = vmul.f32 %v1836_v22, %v4792_v36  ;;  %v2096_v29 = vld [vmem:[#allocation3 + $0x37] sm:$0xff] }
 0x26a   :  { %v1936_v32 = vld [vmem:[#allocation3 + $0x38] sm:$0xff]  ;;  %2141 = vrot.lane.b32.xlu0 %v2096_v29, %s4410_s1  ;;  %1916 = vst.msk [vmem:[#allocation5 + $0xf0] sm:$0xff] %vm70_vm6, %v2096_v29  ;;  %2395 = vst.msk [vmem:[#allocation5 + $0xb8] sm:$0xff] %vm70_vm6, %v2096_v29 }
 0x26b   :  { %v2255_v37 = vld [vmem:[#allocation3 + $0x31] sm:$0xff]  ;;  %1982 = vrot.lane.b32.xlu1 %v1936_v32, %s4410_s1  ;;  %2236 = vst.msk [vmem:[#allocation5 + $0xd8] sm:$0xff] %vm70_vm6, %v1936_v32  ;;  %1876 = vst.msk [vmem:[#allocation3 + $0x40] sm:$0xff] %vm70_vm6, %v1856_v44  ;;  %v1771_v44 = vpop.f32.mrf.mxu0 }
 0x26c   :  { %2076 = vst.msk [vmem:[#allocation5 + $0xd0] sm:$0xff] %vm70_vm6, %v2255_v37  ;;  %v2534_v16 = vld [vmem:[#allocation3 + $0x31] sm:$0xff] }
 0x26d   :  { %2554 = vst.msk [vmem:[#allocation5 + $0x98] sm:$0xff] %vm70_vm6, %v2534_v16 }
 0x26e   :  { %2459 = vrot.lane.b32.xlu0 %v1936_v32, %s4410_s1 }
 0x26f   :  { %2299 = vrot.lane.b32.xlu1 %v2255_v37, %s4410_s1 }
 0x271   :  { %v1601_v46 = vpop.f32.mrf.mxu1 }
 0x272   :  { %v1602_v61 = vadd.f32 %v5565_v48, %v1601_v46  ;;  %v2097_v21 = vld [vmem:[#allocation3 + $0x3f] sm:$0xff] }
 0x273   :  { %v1937_v52 = vld [vmem:[#allocation3 + $0x40] sm:$0xff]  ;;  %2143 = vrot.lane.b32.xlu0 %v2097_v21, %s4410_s1  ;;  %v1603_v12 = vpop.f32.mrf.mxu1  ;;  %1917 = vst.msk [vmem:[#allocation5 + $0x118] sm:$0xff] %vm70_vm6, %v2097_v21  ;;  %2396 = vst.msk [vmem:[#allocation5 + $0xe0] sm:$0xff] %vm70_vm6, %v2097_v21 }
 0x274   :  { %v2256_v1 = vld [vmem:[#allocation3 + $0x39] sm:$0xff]  ;;  %1984 = vrot.lane.b32.xlu1 %v1937_v52, %s4410_s1  ;;  %2237 = vst.msk [vmem:[#allocation5 + $0x100] sm:$0xff] %vm70_vm6, %v1937_v52  ;;  %v1767_v42 = vadd.f32 %v5855_v33, %v1602_v61 }
 0x275   :  { %2077 = vst.msk [vmem:[#allocation5 + $0xf8] sm:$0xff] %vm70_vm6, %v2256_v1  ;;  %v2535_v23 = vld [vmem:[#allocation3 + $0x39] sm:$0xff] }
 0x276   :  { %2555 = vst.msk [vmem:[#allocation5 + $0xc0] sm:$0xff] %vm70_vm6, %v2535_v23  ;;  %v1837_v45 = vmax.f32 %v1767_v42, 0.0 }
 0x277   :  { %2461 = vrot.lane.b32.xlu0 %v1937_v52, %s4410_s1 }
 0x278   :  { %2301 = vrot.lane.b32.xlu1 %v2256_v1, %s4410_s1  ;;  %v1857_v35 = vmul.f32 %v1837_v45, %v4668_v54 }
 0x27a   :  { %1877 = vst.msk [vmem:[#allocation3 + $0x48] sm:$0xff] %vm70_vm6, %v1857_v35  ;;  %v1606_v22 = vpop.f32.mrf.mxu1 }
 0x27b   :  { %v1607_v33 = vadd.f32 %v5565_v48, %v1606_v22 }
 0x27c   :  { %v1608_v29 = vpop.f32.mrf.mxu1 }
 0x27d   :  { %v1772_v32 = vadd.f32 %v1771_v44, %v1607_v33 }
 0x27f   :  { %v1838_v37 = vmax.f32 %v1772_v32, 0.0  ;;  %v4155_v32 = vpop.f32.mrf.mxu0 }
 0x281   :  { %v1858_v16 = vmul.f32 %v1838_v37, %v4818_v59  ;;  %v2098_v46 = vld [vmem:[#allocation3 + $0x47] sm:$0xff] }
 0x282   :  { %v1938_v61 = vld [vmem:[#allocation3 + $0x48] sm:$0xff]  ;;  %2145 = vrot.lane.b32.xlu0 %v2098_v46, %s4410_s1  ;;  %1918 = vst.msk [vmem:[#allocation5 + $0x140] sm:$0xff] %vm70_vm6, %v2098_v46  ;;  %2397 = vst.msk [vmem:[#allocation5 + $0x108] sm:$0xff] %vm70_vm6, %v2098_v46 }
 0x283   :  { %v2257_v21 = vld [vmem:[#allocation3 + $0x41] sm:$0xff]  ;;  %1986 = vrot.lane.b32.xlu1 %v1938_v61, %s4410_s1  ;;  %1878 = vst.msk [vmem:[#allocation3 + $0x50] sm:$0xff] %vm70_vm6, %v1858_v16 }
 0x284   :  { %2078 = vst.msk [vmem:[#allocation5 + $0x120] sm:$0xff] %vm70_vm6, %v2257_v21  ;;  %v2218_v52 = vld [vmem:[#allocation3 + $0x48] sm:$0xff] }
 0x285   :  { %v2536_v1 = vld [vmem:[#allocation3 + $0x41] sm:$0xff]  ;;  %2238 = vst.msk [vmem:[#allocation5 + $0x128] sm:$0xff] %vm70_vm6, %v2218_v52 }
 0x286   :  { %2556 = vst.msk [vmem:[#allocation5 + $0xe8] sm:$0xff] %vm70_vm6, %v2536_v1  ;;  %2463 = vrot.lane.b32.xlu0 %v1938_v61, %s4410_s1  ;;  %v1781_v61 = vpop.f32.mrf.mxu0 }
 0x287   :  { %2303 = vrot.lane.b32.xlu1 %v2257_v21, %s4410_s1 }
 0x289   :  { %v1611_v12 = vpop.f32.mrf.mxu1 }
 0x28a   :  { %v1612_v23 = vadd.f32 %v5565_v48, %v1611_v12  ;;  %v2099_v42 = vld [vmem:[#allocation3 + $0x4f] sm:$0xff] }
 0x28b   :  { %v5962_v45 = vld [vmem:[#allocation3 + $0x50] sm:$0xff]  ;;  %v1613_v35 = vpop.f32.mrf.mxu1  ;;  %2147 = vrot.lane.b32.xlu0 %v2099_v42, %s4410_s1  ;;  %1919 = vst.msk [vmem:[#allocation5 + $0x168] sm:$0xff] %vm70_vm6, %v2099_v42 }
 0x28c   :  { %v5964_v22 = vld [vmem:[#allocation3 + $0x49] sm:$0xff]  ;;  %v1777_v33 = vadd.f32 %v4152_v56, %v1612_v23  ;;  %1988 = vrot.lane.b32.xlu1 %v5962_v45, %s4410_s1 }
 0x28d   :  { %2079 = vst.msk [vmem:[#allocation5 + $0x148] sm:$0xff] %vm70_vm6, %v5964_v22  ;;  %v2219_v44 = vld [vmem:[#allocation3 + $0x50] sm:$0xff]  ;;  %2557 = vst.msk [vmem:[#allocation5 + $0x110] sm:$0xff] %vm70_vm6, %v5964_v22 }
 0x28e   :  { %v2378_v29 = vld [vmem:[#allocation3 + $0x4f] sm:$0xff]  ;;  %2239 = vst.msk [vmem:[#allocation5 + $0x150] sm:$0xff] %vm70_vm6, %v2219_v44  ;;  %v1839_v56 = vmax.f32 %v1777_v33, 0.0 }
 0x28f   :  { %2398 = vst.msk [vmem:[#allocation5 + $0x130] sm:$0xff] %vm70_vm6, %v2378_v29  ;;  %v6864_v12 = vld [vmem:[#allocation14_spill] sm:$0xff] }
 0x290   :  { %v1859_v37 = vmul.f32 %v1839_v56, %v4679_v57 }
 0x292   :  { %1879 = vst.msk [vmem:[#allocation3 + $0x58] sm:$0xff] %vm70_vm6, %v1859_v37  ;;  %v1616_v16 = vpop.f32.mrf.mxu1 }
 0x293   :  { %v1617_v46 = vadd.f32 %v5565_v48, %v1616_v16 }
 0x294   :  { %v1618_v21 = vpop.f32.mrf.mxu1 }
 0x295   :  { %v1782_v52 = vadd.f32 %v1781_v61, %v1617_v46 }
 0x297   :  { %v1840_v1 = vmax.f32 %v1782_v52, 0.0 }
 0x299   :  { %v1860_v23 = vmul.f32 %v1840_v1, %v6864_v12  ;;  %v2100_v42 = vld [vmem:[#allocation3 + $0x57] sm:$0xff] }
 0x29a   :  { %v5980_v35 = vld [vmem:[#allocation3 + $0x58] sm:$0xff]  ;;  %2149 = vrot.lane.b32.xlu0 %v2100_v42, %s4410_s1  ;;  %1920 = vst.msk [vmem:[#allocation5 + $0x190] sm:$0xff] %vm70_vm6, %v2100_v42 }
 0x29b   :  { %v5982_v44 = vld [vmem:[#allocation3 + $0x51] sm:$0xff]  ;;  %1990 = vrot.lane.b32.xlu1 %v5980_v35, %s4410_s1  ;;  %1880 = vst.msk [vmem:[#allocation3 + $0x60] sm:$0xff] %vm70_vm6, %v1860_v23 }
 0x29c   :  { %2080 = vst.msk [vmem:[#allocation5 + $0x170] sm:$0xff] %vm70_vm6, %v5982_v44  ;;  %v2220_v33 = vld [vmem:[#allocation3 + $0x58] sm:$0xff]  ;;  %2558 = vst.msk [vmem:[#allocation5 + $0x138] sm:$0xff] %vm70_vm6, %v5982_v44 }
 0x29d   :  { %v2379_v29 = vld [vmem:[#allocation3 + $0x57] sm:$0xff]  ;;  %2240 = vst.msk [vmem:[#allocation5 + $0x178] sm:$0xff] %vm70_vm6, %v2220_v33 }
 0x29e   :  { %2399 = vst.msk [vmem:[#allocation5 + $0x158] sm:$0xff] %vm70_vm6, %v2379_v29  ;;  %v1973_v56 = vpop.permute.xlu1 %1972  ;;  %v2571_v29 = vld [vmem:[#allocation5] sm:$0xff] }
 0x29f   :  { %v2132_v37 = vpop.permute.xlu0 %2131  ;;  %2032 = vst.msk [vmem:[#allocation5 + $0x28] sm:$0xff] %vm2030_vm7, %v1973_v56 }
 0x2a0   :  { %2191 = vst.msk [vmem:[#allocation5 + $0x8] sm:$0xff] %vm2030_vm7, %v2132_v37 }
 0x2a1   :  { %v1621_v16 = vpop.f32.mrf.mxu1 }
 0x2a2   :  { %v1622_v46 = vadd.f32 %v5565_v48, %v1621_v16  ;;  %v2101_v61 = vld [vmem:[#allocation3 + $0x5f] sm:$0xff]  ;;  %v6012_v16 = vpop.f32.mrf.mxu0 }
 0x2a3   :  { %v5998_v21 = vld [vmem:[#allocation3 + $0x60] sm:$0xff]  ;;  %2151 = vrot.lane.b32.xlu0 %v2101_v61, %s4410_s1  ;;  %v1623_v1 = vpop.f32.mrf.mxu1  ;;  %1921 = vst.msk [vmem:[#allocation5 + $0x1b8] sm:$0xff] %vm70_vm6, %v2101_v61 }
 0x2a4   :  { %v6000_v52 = vld [vmem:[#allocation3 + $0x59] sm:$0xff]  ;;  %1992 = vrot.lane.b32.xlu1 %v5998_v21, %s4410_s1  ;;  %v1787_v33 = vadd.f32 %v4155_v32, %v1622_v46  ;;  %v6865_v61 = vld [vmem:[#allocation9_spill] sm:$0xff]  ;;  %v1791_v46 = vpop.f32.mrf.mxu0 }
 0x2a5   :  { %2081 = vst.msk [vmem:[#allocation5 + $0x198] sm:$0xff] %vm70_vm6, %v6000_v52  ;;  %v2221_v23 = vld [vmem:[#allocation3 + $0x60] sm:$0xff]  ;;  %2559 = vst.msk [vmem:[#allocation5 + $0x160] sm:$0xff] %vm70_vm6, %v6000_v52 }
 0x2a6   :  { %v2380_v42 = vld [vmem:[#allocation3 + $0x5f] sm:$0xff]  ;;  %2241 = vst.msk [vmem:[#allocation5 + $0x1a0] sm:$0xff] %vm70_vm6, %v2221_v23  ;;  %v1841_v56 = vmax.f32 %v1787_v33, 0.0 }
 0x2a7   :  { %2400 = vst.msk [vmem:[#allocation5 + $0x180] sm:$0xff] %vm70_vm6, %v2380_v42  ;;  %v2572_v37 = vld [vmem:[#allocation5 + $0x8] sm:$0xff] }
 0x2a8   :  { %2874 = vmatprep.mubr.f32.mxu0 %v2572_v37  ;;  %v1861_v1 = vmul.f32 %v1841_v56, %v6865_v61 }
 0x2a9   :  { %2875 = vmatmul.mubr.f32.vlgmr.msra.gmra.mxu0 %v2571_v29 }
 0x2aa   :  { %2976 = vmatpush1.msra.mxu0 %v5626_v58  ;;  %1881 = vst.msk [vmem:[#allocation3 + $0x68] sm:$0xff] %vm70_vm6, %v1861_v1  ;;  %v1626_v12 = vpop.f32.mrf.mxu1 }
 0x2ab   :  { %2977 = vmatprep.subr.mxu0 %v6863_v15  ;;  %v1627_v32 = vadd.f32 %v5565_v48, %v1626_v12 }
 0x2ac   :  { %2978 = vmatpush1.msra.mxu0 %v5641_v2  ;;  %v1628_v23 = vpop.f32.mrf.mxu1  ;;  %v1975_v33 = vpop.permute.xlu1 %1974  ;;  %v6866_v2 = vld [vmem:[#allocation15_spill] sm:$0xff] }
 0x2ad   :  { %2979 = vmatprep.subr.mxu0 %v6863_v15  ;;  %v1792_v42 = vadd.f32 %v1791_v46, %v1627_v32  ;;  %v2134_v37 = vpop.permute.xlu0 %2133  ;;  %2033 = vst.msk [vmem:[#allocation5 + $0x50] sm:$0xff] %vm2030_vm7, %v1975_v33  ;;  %v2576_v33 = vld [vmem:[#allocation5 + $0x28] sm:$0xff] }
 0x2ae   :  { %2980 = vmatpush1.msra.mxu0 %v5653_v4  ;;  %2192 = vst.msk [vmem:[#allocation5 + $0x30] sm:$0xff] %vm2030_vm7, %v2134_v37 }
 0x2af   :  { %2981 = vmatprep.subr.mxu0 %v6863_v15  ;;  %v1842_v58 = vmax.f32 %v1792_v42, 0.0 }
 0x2b0   :  { %2982 = vmatpush1.msra.mxu0 %v5666_v34  ;;  %v2292_v29 = vpop.permute.xlu1 %2291 }
 0x2b1   :  { %2983 = vmatprep.subr.mxu0 %v6863_v15  ;;  %v1862_v12 = vmul.f32 %v1842_v58, %v6866_v2  ;;  %v2452_v56 = vpop.permute.xlu0 %2451  ;;  %v2102_v1 = vld [vmem:[#allocation3 + $0x67] sm:$0xff]  ;;  %2351 = vst.msk [vmem:[#allocation5 + $0x10] sm:$0xff] %vm2030_vm7, %v2292_v29 }
 0x2b2   :  { %v6028_v32 = vld [vmem:[#allocation3 + $0x68] sm:$0xff]  ;;  %2984 = vmatpush1.msra.mxu0 %v5677_v3  ;;  %2511 = vst.msk [vmem:[#allocation5 + $0x18] sm:$0xff] %vm2030_vm7, %v2452_v56  ;;  %2153 = vrot.lane.b32.xlu0 %v2102_v1, %s4410_s1 }
 0x2b3   :  { %v6030_v46 = vld [vmem:[#allocation3 + $0x61] sm:$0xff]  ;;  %1994 = vrot.lane.b32.xlu1 %v6028_v32, %s4410_s1  ;;  %1922 = vst.msk [vmem:[#allocation5 + $0x1e0] sm:$0xff] %vm70_vm6, %v2102_v1  ;;  %1882 = vst.msk [vmem:[#allocation3 + $0x70] sm:$0xff] %vm70_vm6, %v1862_v12  ;;  %2985 = vmatprep.subr.mxu0 %v6863_v15 }
 0x2b4   :  { %2082 = vst.msk [vmem:[#allocation5 + $0x1c0] sm:$0xff] %vm70_vm6, %v6030_v46  ;;  %v2222_v4 = vld [vmem:[#allocation3 + $0x68] sm:$0xff]  ;;  %2560 = vst.msk [vmem:[#allocation5 + $0x188] sm:$0xff] %vm70_vm6, %v6030_v46  ;;  %2986 = vmatpush1.msra.mxu0 %v5686_v43 }
 0x2b5   :  { %v2381_v34 = vld [vmem:[#allocation3 + $0x67] sm:$0xff]  ;;  %2242 = vst.msk [vmem:[#allocation5 + $0x1c8] sm:$0xff] %vm70_vm6, %v2222_v4  ;;  %v2577_v3 = vld [vmem:[#allocation5 + $0x30] sm:$0xff]  ;;  %2987 = vmatprep.subr.mxu0 %v6863_v15 }
 0x2b6   :  { %2401 = vst.msk [vmem:[#allocation5 + $0x1a8] sm:$0xff] %vm70_vm6, %v2381_v34  ;;  %v1977_v23 = vpop.permute.xlu1 %1976  ;;  %2879 = vmatprep.mubr.f32.mxu0 %v2577_v3  ;;  %2988 = vmatpush1.msra.mxu0 %v5694_v38 }
 0x2b7   :  { %v2136_v42 = vpop.permute.xlu0 %2135  ;;  %2034 = vst.msk [vmem:[#allocation5 + $0x78] sm:$0xff] %vm2030_vm7, %v1977_v23  ;;  %2880 = vmatmul.mubr.f32.gmra.mxu0 %v2576_v33  ;;  %2989 = vmatprep.subr.mxu0 %v6863_v15  ;;  %v2581_v23 = vld [vmem:[#allocation5 + $0x50] sm:$0xff] }
 0x2b8   :  { %2193 = vst.msk [vmem:[#allocation5 + $0x58] sm:$0xff] %vm2030_vm7, %v2136_v42  ;;  %2990 = vmatpush1.msra.mxu0 %v5710_v41  ;;  %v6078_v42 = vpop.f32.mrf.mxu0  ;;  %v6867_v33 = vld [vmem:[#allocation10_spill] sm:$0xff] }
 0x2b9   :  { %v1631_v37 = vpop.f32.mrf.mxu1  ;;  %2991 = vmatprep.subr.mxu0 %v6863_v15 }
 0x2ba   :  { %v2294_v43 = vpop.permute.xlu1 %2293  ;;  %v1632_v58 = vadd.f32 %v5565_v48, %v1631_v37  ;;  %v2103_v29 = vld [vmem:[#allocation3 + $0x6f] sm:$0xff]  ;;  %2992 = vmatpush1.msra.mxu0 %v5717_v11 }
 0x2bb   :  { %v2454_v12 = vpop.permute.xlu0 %2453  ;;  %v6056_v56 = vld [vmem:[#allocation3 + $0x70] sm:$0xff]  ;;  %2352 = vst.msk [vmem:[#allocation5 + $0x38] sm:$0xff] %vm2030_vm7, %v2294_v43  ;;  %2155 = vrot.lane.b32.xlu0 %v2103_v29, %s4410_s1  ;;  %v1633_v41 = vpop.f32.mrf.mxu1  ;;  %2993 = vmatprep.subr.mxu0 %v6863_v15 }
 0x2bc   :  { %v6058_v38 = vld [vmem:[#allocation3 + $0x69] sm:$0xff]  ;;  %2512 = vst.msk [vmem:[#allocation5 + $0x40] sm:$0xff] %vm2030_vm7, %v2454_v12  ;;  %1996 = vrot.lane.b32.xlu1 %v6056_v56, %s4410_s1  ;;  %v1797_v11 = vadd.f32 %v6012_v16, %v1632_v58  ;;  %2994 = vmatpush1.msra.mxu0 %v5725_v28  ;;  %v1801_v43 = vpop.f32.mrf.mxu0 }
 0x2bd   :  { %1923 = vst.msk [vmem:[#allocation5 + $0x208] sm:$0xff] %vm70_vm6, %v2103_v29  ;;  %2083 = vst.msk [vmem:[#allocation5 + $0x1e8] sm:$0xff] %vm70_vm6, %v6058_v38  ;;  %v2223_v1 = vld [vmem:[#allocation3 + $0x70] sm:$0xff]  ;;  %2995 = vmatprep.subr.mxu0 %v6863_v15 }
 0x2be   :  { %v2382_v4 = vld [vmem:[#allocation3 + $0x6f] sm:$0xff]  ;;  %2561 = vst.msk [vmem:[#allocation5 + $0x1b0] sm:$0xff] %vm70_vm6, %v6058_v38  ;;  %2243 = vst.msk [vmem:[#allocation5 + $0x1f0] sm:$0xff] %vm70_vm6, %v2223_v1  ;;  %v1843_v34 = vmax.f32 %v1797_v11, 0.0  ;;  %2996 = vmatpush1.msra.mxu0 %v5737_v10 }
 0x2bf   :  { %2402 = vst.msk [vmem:[#allocation5 + $0x1d0] sm:$0xff] %vm70_vm6, %v2382_v4  ;;  %v2582_v3 = vld [vmem:[#allocation5 + $0x58] sm:$0xff]  ;;  %2997 = vmatprep.subr.mxu0 %v6863_v15 }
 0x2c0   :  { %2884 = vmatprep.mubr.f32.mxu0 %v2582_v3  ;;  %v1863_v16 = vmul.f32 %v1843_v34, %v6867_v33  ;;  %2998 = vmatpush1.msra.mxu0 %v5748_v6  ;;  %v2586_v3 = vld [vmem:[#allocation5 + $0x78] sm:$0xff] }
 0x2c1   :  { %2885 = vmatmul.mubr.f32.gmra.mxu0 %v2581_v23  ;;  %2999 = vmatprep.subr.mxu0 %v6863_v15 }
 0x2c2   :  { %1883 = vst.msk [vmem:[#allocation3 + $0x78] sm:$0xff] %vm70_vm6, %v1863_v16  ;;  %v1636_v28 = vpop.f32.mrf.mxu1  ;;  %3000 = vmatpush1.msra.mxu0 %v5757_v55 }
 0x2c3   :  { %v1637_v37 = vadd.f32 %v5565_v48, %v1636_v28  ;;  %3001 = vmatprep.subr.mxu0 %v6863_v15  ;;  %v6868_v48 = vld [vmem:[#allocation16_spill] sm:$0xff] }
 0x2c4   :  { %v1638_v10 = vpop.f32.mrf.mxu1  ;;  %3002 = vmatpush1.msra.mxu0 %v5765_v40 }
 0x2c5   :  { %v1802_v58 = vadd.f32 %v1801_v43, %v1637_v37  ;;  %v1979_v12 = vpop.permute.xlu1 %1978  ;;  %3003 = vmatprep.subr.mxu0 %v6863_v15 }
 0x2c6   :  { %v2138_v29 = vpop.permute.xlu0 %2137  ;;  %2035 = vst.msk [vmem:[#allocation5 + $0xa0] sm:$0xff] %vm2030_vm7, %v1979_v12  ;;  %3004 = vmatpush1.msra.mxu0 %v5773_v5 }
 0x2c7   :  { %2194 = vst.msk [vmem:[#allocation5 + $0x80] sm:$0xff] %vm2030_vm7, %v2138_v29  ;;  %v1844_v6 = vmax.f32 %v1802_v58, 0.0  ;;  %3005 = vmatprep.subr.mxu0 %v6863_v15 }
 0x2c8   :  { %3006 = vmatpush1.msra.mxu0 %v5780_v18 }
 0x2c9   :  { %v1864_v55 = vmul.f32 %v1844_v6, %v6868_v48  ;;  %v2104_v41 = vld [vmem:[#allocation3 + $0x77] sm:$0xff]  ;;  %3007 = vmatprep.subr.mxu0 %v6863_v15  ;;  %v4164_v6 = vpop.f32.mrf.mxu0 }
 0x2ca   :  { %v6095_v1 = vld [vmem:[#allocation3 + $0x78] sm:$0xff]  ;;  %2157 = vrot.lane.b32.xlu0 %v2104_v41, %s4410_s1  ;;  %1924 = vst.msk [vmem:[#allocation5 + $0x230] sm:$0xff] %vm70_vm6, %v2104_v41  ;;  %3008 = vmatpush2.msra.mxu0 %v5787_v27  ;;  %v6123_v27 = vld [vmem:[%s6819_s4] ss:$0 sm:$0xff]  ;;  %s4412_s4 = smov [#allocation6]  }
 0x2cb   :  { %v6097_v4 = vld [vmem:[#allocation3 + $0x71] sm:$0xff]  ;;  %1998 = vrot.lane.b32.xlu1 %v6095_v1, %s4410_s1  ;;  %1884 = vst.msk [vmem:[#allocation3 + $0x80] sm:$0xff] %vm70_vm6, %v1864_v55  ;;  %3009 = vmatprep.subr.mxu0 %v6863_v15 }
 0x2cc   :  { %2084 = vst.msk [vmem:[#allocation5 + $0x210] sm:$0xff] %vm70_vm6, %v6097_v4  ;;  %v2224_v40 = vld [vmem:[#allocation3 + $0x78] sm:$0xff]  ;;  %2562 = vst.msk [vmem:[#allocation5 + $0x1d8] sm:$0xff] %vm70_vm6, %v6097_v4  ;;  %3010 = vmatpush2.msra.mxu0 %v5803_v63 }
 0x2cd   :  { %v2383_v5 = vld [vmem:[#allocation3 + $0x77] sm:$0xff]  ;;  %2244 = vst.msk [vmem:[#allocation5 + $0x218] sm:$0xff] %vm70_vm6, %v2224_v40  ;;  %v1981_v11 = vpop.permute.xlu1 %1980  ;;  %3011 = vmatprep.subr.mxu0 %v6863_v15  ;;  %v2591_v29 = vld [vmem:[#allocation5 + $0xa0] sm:$0xff]  ;;  %v1811_v40 = vpop.f32.mrf.mxu0 }
 0x2ce   :  { %2403 = vst.msk [vmem:[#allocation5 + $0x1f8] sm:$0xff] %vm70_vm6, %v2383_v5  ;;  %v2587_v18 = vld [vmem:[#allocation5 + $0x80] sm:$0xff]  ;;  %v2140_v34 = vpop.permute.xlu0 %2139  ;;  %3012 = vmatpush2.msra.mxu0 %v5813_v8  ;;  %v6869_v55 = vld [vmem:[#allocation11_spill] sm:$0xff] }
 0x2cf   :  { %2889 = vmatprep.mubr.f32.mxu0 %v2587_v18  ;;  %2036 = vst.msk [vmem:[#allocation5 + $0xc8] sm:$0xff] %vm2030_vm7, %v1981_v11  ;;  %2195 = vst.msk [vmem:[#allocation5 + $0xa8] sm:$0xff] %vm2030_vm7, %v2140_v34  ;;  %3013 = vmatprep.subr.mxu0 %v6863_v15 }
 0x2d0   :  { %2890 = vmatmul.mubr.f32.gmra.mxu0 %v2586_v3 }
 0x2d1   :  { %v1641_v23 = vpop.f32.mrf.mxu1  ;;  %3014 = vmatpush2.msra.mxu0 %v5820_v9 }
 0x2d2   :  { %v1642_v16 = vadd.f32 %v6123_v27, %v1641_v23  ;;  %v2105_v63 = vld [vmem:[#allocation3 + $0x7f] sm:$0xff]  ;;  %3015 = vmatprep.subr.mxu0 %v6863_v15 }
 0x2d3   :  { %v6126_v28 = vld [vmem:[#allocation3 + $0x80] sm:$0xff]  ;;  %2159 = vrot.lane.b32.xlu0 %v2105_v63, %s4410_s1  ;;  %v1643_v8 = vpop.f32.mrf.mxu1  ;;  %1925 = vst.msk [vmem:[#allocation5 + $0x258] sm:$0xff] %vm70_vm6, %v2105_v63  ;;  %3016 = vmatpush2.msra.mxu0 %v5827_v31 }
 0x2d4   :  { %v6128_v37 = vld [vmem:[#allocation3 + $0x79] sm:$0xff]  ;;  %2000 = vrot.lane.b32.xlu1 %v6126_v28, %s4410_s1  ;;  %v1807_v58 = vadd.f32 %v6078_v42, %v1642_v16  ;;  %3017 = vmatprep.subr.mxu0 %v6863_v15 }
 0x2d5   :  { %2085 = vst.msk [vmem:[#allocation5 + $0x238] sm:$0xff] %vm70_vm6, %v6128_v37  ;;  %v2225_v43 = vld [vmem:[#allocation3 + $0x80] sm:$0xff]  ;;  %2563 = vst.msk [vmem:[#allocation5 + $0x200] sm:$0xff] %vm70_vm6, %v6128_v37  ;;  %3018 = vmatpush2.msra.mxu0 %v5843_v7 }
 0x2d6   :  { %v2384_v10 = vld [vmem:[#allocation3 + $0x7f] sm:$0xff]  ;;  %2245 = vst.msk [vmem:[#allocation5 + $0x240] sm:$0xff] %vm70_vm6, %v2225_v43  ;;  %v1845_v9 = vmax.f32 %v1807_v58, 0.0  ;;  %v2592_v12 = vld [vmem:[#allocation5 + $0xa8] sm:$0xff]  ;;  %3019 = vmatprep.subr.mxu0 %v6863_v15 }
 0x2d7   :  { %2404 = vst.msk [vmem:[#allocation5 + $0x220] sm:$0xff] %vm70_vm6, %v2384_v10  ;;  %2894 = vmatprep.mubr.f32.mxu0 %v2592_v12  ;;  %3020 = vmatpush2.msra.mxu0 %v5852_v30  ;;  %v2596_v58 = vld [vmem:[#allocation5 + $0xc8] sm:$0xff] }
 0x2d8   :  { %v1865_v41 = vmul.f32 %v1845_v9, %v6869_v55  ;;  %2895 = vmatmul.mubr.f32.gmra.mxu0 %v2591_v29  ;;  %3021 = vmatprep.subr.mxu0 %v6863_v15 }
 0x2d9   :  { %3022 = vmatpush2.msra.mxu0 %v5862_v62  ;;  %v6870_v62 = vld [vmem:[#allocation17_spill] sm:$0xff] }
 0x2da   :  { %1885 = vst.msk [vmem:[#allocation3 + $0x88] sm:$0xff] %vm70_vm6, %v1865_v41  ;;  %3023 = vmatprep.subr.mxu0 %v6863_v15 }
 0x2db   :  { %v1646_v42 = vpop.f32.mrf.mxu1  ;;  %3024 = vmatpush2.msra.mxu0 %v5870_v53 }
 0x2dc   :  { %v1647_v31 = vadd.f32 %v6123_v27, %v1646_v42  ;;  %v2142_v11 = vpop.permute.xlu0 %2141  ;;  %3025 = vmatprep.subr.mxu0 %v6863_v15 }
 0x2dd   :  { %v1648_v5 = vpop.f32.mrf.mxu1  ;;  %v1983_v18 = vpop.permute.xlu1 %1982  ;;  %2196 = vst.msk [vmem:[#allocation5 + $0xd0] sm:$0xff] %vm2030_vm7, %v2142_v11  ;;  %3026 = vmatpush2.msra.mxu0 %v5878_v0 }
 0x2de   :  { %v1812_v7 = vadd.f32 %v1811_v40, %v1647_v31  ;;  %2037 = vst.msk [vmem:[#allocation5 + $0xf0] sm:$0xff] %vm2030_vm7, %v1983_v18  ;;  %3027 = vmatprep.subr.mxu0 %v6863_v15  ;;  %v4167_v11 = vpop.f32.mrf.mxu0 }
 0x2df   :  { %3028 = vmatpush2.msra.mxu0 %v5885_v39 }
 0x2e0   :  { %v1846_v30 = vmax.f32 %v1812_v7, 0.0  ;;  %v2460_v23 = vpop.permute.xlu0 %2459  ;;  %3029 = vmatprep.subr.mxu0 %v6863_v15 }
 0x2e1   :  { %v2300_v3 = vpop.permute.xlu1 %2299  ;;  %v2106_v16 = vld [vmem:[#allocation3 + $0x87] sm:$0xff]  ;;  %2515 = vst.msk [vmem:[#allocation5 + $0xb8] sm:$0xff] %vm2030_vm7, %v2460_v23  ;;  %3030 = vmatpush2.msra.mxu0 %v5892_v20  ;;  %v1821_v23 = vpop.f32.mrf.mxu0 }
 0x2e2   :  { %v1866_v34 = vmul.f32 %v1846_v30, %v6870_v62  ;;  %v6161_v63 = vld [vmem:[#allocation3 + $0x88] sm:$0xff]  ;;  %2355 = vst.msk [vmem:[#allocation5 + $0xb0] sm:$0xff] %vm2030_vm7, %v2300_v3  ;;  %2161 = vrot.lane.b32.xlu0 %v2106_v16, %s4410_s1  ;;  %3031 = vmatprep.subr.mxu0 %v6863_v15 }
 0x2e3   :  { %v6163_v8 = vld [vmem:[#allocation3 + $0x81] sm:$0xff]  ;;  %2002 = vrot.lane.b32.xlu1 %v6161_v63, %s4410_s1  ;;  %1926 = vst.msk [vmem:[#allocation5 + $0x280] sm:$0xff] %vm70_vm6, %v2106_v16  ;;  %3032 = vmatpush2.msra.mxu0 %v5909_v19 }
 0x2e4   :  { %2086 = vst.msk [vmem:[#allocation5 + $0x260] sm:$0xff] %vm70_vm6, %v6163_v8  ;;  %v2226_v53 = vld [vmem:[#allocation3 + $0x88] sm:$0xff]  ;;  %2564 = vst.msk [vmem:[#allocation5 + $0x228] sm:$0xff] %vm70_vm6, %v6163_v8  ;;  %v2597_v39 = vld [vmem:[#allocation5 + $0xd0] sm:$0xff]  ;;  %3033 = vmatprep.subr.mxu0 %v6863_v15 }
 0x2e5   :  { %v2385_v0 = vld [vmem:[#allocation3 + $0x87] sm:$0xff]  ;;  %1886 = vst.msk [vmem:[#allocation3 + $0x90] sm:$0xff] %vm70_vm6, %v1866_v34  ;;  %2246 = vst.msk [vmem:[#allocation5 + $0x268] sm:$0xff] %vm70_vm6, %v2226_v53  ;;  %v1651_v10 = vpop.f32.mrf.mxu1  ;;  %2899 = vmatprep.mubr.f32.mxu0 %v2597_v39  ;;  %v2144_v12 = vpop.permute.xlu0 %2143  ;;  %3034 = vmatpush2.msra.mxu0 %v5917_v14  ;;  %v2601_v34 = vld [vmem:[#allocation5 + $0xf0] sm:$0xff] }
 0x2e6   :  { %2405 = vst.msk [vmem:[#allocation5 + $0x248] sm:$0xff] %vm70_vm6, %v2385_v0  ;;  %v1985_v43 = vpop.permute.xlu1 %1984  ;;  %v1652_v9 = vadd.f32 %v6123_v27, %v1651_v10  ;;  %2900 = vmatmul.mubr.f32.gmra.mxu0 %v2596_v58  ;;  %3035 = vmatprep.subr.mxu0 %v6863_v15 }
 0x2e7   :  { %2038 = vst.msk [vmem:[#allocation5 + $0x118] sm:$0xff] %vm2030_vm7, %v1985_v43  ;;  %2197 = vst.msk [vmem:[#allocation5 + $0xf8] sm:$0xff] %vm2030_vm7, %v2144_v12  ;;  %v1653_v20 = vpop.f32.mrf.mxu1  ;;  %3036 = vmatpush2.msra.mxu0 %v5925_v47  ;;  %v6871_v47 = vld [vmem:[#allocation12_spill] sm:$0xff] }
 0x2e8   :  { %v1817_v29 = vadd.f32 %v4164_v6, %v1652_v9  ;;  %v2594_v41 = vld [vmem:[#allocation5 + $0xb8] sm:$0xff]  ;;  %3037 = vmatprep.subr.mxu0 %v6863_v15 }
 0x2e9   :  { %v2593_v42 = vld [vmem:[#allocation5 + $0xb0] sm:$0xff]  ;;  %3059 = vmatprep.mubr.f32.mxu1 %v2594_v41  ;;  %v2462_v18 = vpop.permute.xlu0 %2461  ;;  %3038 = vmatpush2.msra.mxu0 %v5936_v25 }
 0x2ea   :  { %v2302_v31 = vpop.permute.xlu1 %2301  ;;  %v1847_v7 = vmax.f32 %v1817_v29, 0.0  ;;  %3060 = vmatmul.mubr.f32.vlgmr.msra.gmra.mxu1 %v2593_v42  ;;  %2516 = vst.msk [vmem:[#allocation5 + $0xe0] sm:$0xff] %vm2030_vm7, %v2462_v18  ;;  %v6872_v29 = vld [vmem:[#allocation18_spill] sm:$0xff] }
 0x2eb   :  { %2356 = vst.msk [vmem:[#allocation5 + $0xd8] sm:$0xff] %vm2030_vm7, %v2302_v31 }
 0x2ec   :  { %v2107_v19 = vld [vmem:[#allocation3 + $0x8f] sm:$0xff]  ;;  %v1867_v6 = vmul.f32 %v1847_v7, %v6871_v47 }
 0x2ed   :  { %v6189_v40 = vld [vmem:[#allocation3 + $0x90] sm:$0xff]  ;;  %2163 = vrot.lane.b32.xlu0 %v2107_v19, %s4410_s1  ;;  %1927 = vst.msk [vmem:[#allocation5 + $0x2a8] sm:$0xff] %vm70_vm6, %v2107_v19 }
 0x2ee   :  { %v6191_v5 = vld [vmem:[#allocation3 + $0x89] sm:$0xff]  ;;  %2247 = vst.msk [vmem:[#allocation5 + $0x290] sm:$0xff] %vm70_vm6, %v6189_v40  ;;  %2004 = vrot.lane.b32.xlu1 %v6189_v40, %s4410_s1  ;;  %1887 = vst.msk [vmem:[#allocation3 + $0x98] sm:$0xff] %vm70_vm6, %v1867_v6  ;;  %v2602_v30 = vld [vmem:[#allocation5 + $0xf8] sm:$0xff] }
 0x2ef   :  { %2087 = vst.msk [vmem:[#allocation5 + $0x288] sm:$0xff] %vm70_vm6, %v6191_v5  ;;  %v2386_v14 = vld [vmem:[#allocation3 + $0x8f] sm:$0xff]  ;;  %2565 = vst.msk [vmem:[#allocation5 + $0x250] sm:$0xff] %vm70_vm6, %v6191_v5  ;;  %2904 = vmatprep.mubr.f32.mxu0 %v2602_v30 }
 0x2f0   :  { %2406 = vst.msk [vmem:[#allocation5 + $0x270] sm:$0xff] %vm70_vm6, %v2386_v14  ;;  %2905 = vmatmul.mubr.f32.gmra.mxu0 %v2601_v34  ;;  %v2606_v14 = vld [vmem:[#allocation5 + $0x118] sm:$0xff] }
 0x2f1   :  { %v1656_v3 = vpop.f32.mrf.mxu1  ;;  %v2599_v0 = vld [vmem:[#allocation5 + $0xe0] sm:$0xff] }
 0x2f2   :  { %v2598_v16 = vld [vmem:[#allocation5 + $0xd8] sm:$0xff]  ;;  %v1657_v53 = vadd.f32 %v6123_v27, %v1656_v3  ;;  %3064 = vmatprep.mubr.f32.mxu1 %v2599_v0 }
 0x2f3   :  { %v1658_v15 = vpop.f32.mrf.mxu1  ;;  %3065 = vmatmul.mubr.f32.gmra.mxu1 %v2598_v16 }
 0x2f4   :  { %v1822_v39 = vadd.f32 %v1821_v23, %v1657_v53  ;;  %v2146_v10 = vpop.permute.xlu0 %2145 }
 0x2f5   :  { %v1987_v43 = vpop.permute.xlu1 %1986  ;;  %2198 = vst.msk [vmem:[#allocation5 + $0x120] sm:$0xff] %vm2030_vm7, %v2146_v10  ;;  %v2108_v25 = vld [vmem:[#allocation3 + $0x97] sm:$0xff] }
 0x2f6   :  { %2039 = vst.msk [vmem:[#allocation5 + $0x140] sm:$0xff] %vm2030_vm7, %v1987_v43  ;;  %v6214_v58 = vld [vmem:[#allocation3 + $0x98] sm:$0xff]  ;;  %v1848_v12 = vmax.f32 %v1822_v39, 0.0  ;;  %2165 = vrot.lane.b32.xlu0 %v2108_v25, %s4410_s1 }
 0x2f7   :  { %v6216_v9 = vld [vmem:[#allocation3 + $0x91] sm:$0xff]  ;;  %2006 = vrot.lane.b32.xlu1 %v6214_v58, %s4410_s1  ;;  %1928 = vst.msk [vmem:[#allocation5 + $0x2d0] sm:$0xff] %vm70_vm6, %v2108_v25  ;;  %2248 = vst.msk [vmem:[#allocation5 + $0x2b8] sm:$0xff] %vm70_vm6, %v6214_v58 }
 0x2f8   :  { %2088 = vst.msk [vmem:[#allocation5 + $0x2b0] sm:$0xff] %vm70_vm6, %v6216_v9  ;;  %v2387_v20 = vld [vmem:[#allocation3 + $0x97] sm:$0xff]  ;;  %2566 = vst.msk [vmem:[#allocation5 + $0x278] sm:$0xff] %vm70_vm6, %v6216_v9  ;;  %v1868_v41 = vmul.f32 %v1848_v12, %v6872_v29  ;;  %v2464_v31 = vpop.permute.xlu0 %2463  ;;  %v2253_v12 = vld [vmem:[#allocation3 + $0x21] sm:$0xff] }
 0x2f9   :  { %2407 = vst.msk [vmem:[#allocation5 + $0x298] sm:$0xff] %vm70_vm6, %v2387_v20  ;;  %v2304_v42 = vpop.permute.xlu1 %2303 }
 0x2fa   :  { %2357 = vst.msk [vmem:[#allocation5 + $0x100] sm:$0xff] %vm2030_vm7, %v2304_v42  ;;  %2517 = vst.msk [vmem:[#allocation5 + $0x108] sm:$0xff] %vm2030_vm7, %v2464_v31 }
 0x2fb   :  { %1888 = vst.msk [vmem:[#allocation3 + $0xa0] sm:$0xff] %vm70_vm6, %v1868_v41 }
 0x2fc   :  { %v2607_v19 = vld [vmem:[#allocation5 + $0x120] sm:$0xff] }
 0x2fd   :  { %2909 = vmatprep.mubr.f32.mxu0 %v2607_v19  ;;  %v2148_v30 = vpop.permute.xlu0 %2147  ;;  %v2611_v25 = vld [vmem:[#allocation5 + $0x140] sm:$0xff] }
 0x2fe   :  { %v1989_v7 = vpop.permute.xlu1 %1988  ;;  %v1661_v18 = vpop.f32.mrf.mxu1  ;;  %2910 = vmatmul.mubr.f32.gmra.mxu0 %v2606_v14  ;;  %2199 = vst.msk [vmem:[#allocation5 + $0x148] sm:$0xff] %vm2030_vm7, %v2148_v30 }
 0x2ff   :  { %2040 = vst.msk [vmem:[#allocation5 + $0x168] sm:$0xff] %vm2030_vm7, %v1989_v7  ;;  %v1662_v6 = vadd.f32 %v6123_v27, %v1661_v18  ;;  %v6272_v7 = vld [vmem:[%s6820_s5 + $0x238] sm:$0xff] }
 0x300   :  { %v1663_v34 = vpop.f32.mrf.mxu1  ;;  %4168 = vmatprep.subr.mxu0 %v6272_v7 }
 0x301   :  { %v1827_v3 = vadd.f32 %v4167_v11, %v1662_v6  ;;  %v2604_v23 = vld [vmem:[#allocation5 + $0x108] sm:$0xff]  ;;  %v2603_v16 = vld [vmem:[#allocation5 + $0x100] sm:$0xff] }
 0x302   :  { %3069 = vmatprep.mubr.f32.mxu1 %v2604_v23  ;;  %v2109_v53 = vld [vmem:[#allocation3 + $0x9f] sm:$0xff] }
 0x303   :  { %v6236_v0 = vld [vmem:[#allocation3 + $0xa0] sm:$0xff]  ;;  %v1849_v39 = vmax.f32 %v1827_v3, 0.0  ;;  %2167 = vrot.lane.b32.xlu0 %v2109_v53, %s4410_s1  ;;  %1929 = vst.msk [vmem:[#allocation5 + $0x2f8] sm:$0xff] %vm70_vm6, %v2109_v53  ;;  %3070 = vmatmul.mubr.f32.gmra.mxu1 %v2603_v16 }
 0x304   :  { %v6238_v15 = vld [vmem:[#allocation3 + $0x99] sm:$0xff]  ;;  %2008 = vrot.lane.b32.xlu1 %v6236_v0, %s4410_s1  ;;  %2249 = vst.msk [vmem:[#allocation5 + $0x2e0] sm:$0xff] %vm70_vm6, %v6236_v0  ;;  %v6873_v11 = vld [vmem:[#allocation13_spill] sm:$0xff] }
 0x305   :  { %2089 = vst.msk [vmem:[#allocation5 + $0x2d8] sm:$0xff] %vm70_vm6, %v6238_v15  ;;  %v2388_v27 = vld [vmem:[#allocation3 + $0x9f] sm:$0xff]  ;;  %2567 = vst.msk [vmem:[#allocation5 + $0x2a0] sm:$0xff] %vm70_vm6, %v6238_v15  ;;  %v1869_v43 = vmul.f32 %v1849_v39, %v6873_v11  ;;  %v2612_v10 = vld [vmem:[#allocation5 + $0x148] sm:$0xff] }
 0x306   :  { %2408 = vst.msk [vmem:[#allocation5 + $0x2c0] sm:$0xff] %vm70_vm6, %v2388_v27  ;;  %2914 = vmatprep.mubr.f32.mxu0 %v2612_v10  ;;  %v2616_v34 = vld [vmem:[#allocation5 + $0x168] sm:$0xff] }
 0x307   :  { %1889 = vst.msk [vmem:[#allocation3 + $0xa8] sm:$0xff] %vm70_vm6, %v1869_v43  ;;  %2915 = vmatmul.mubr.f32.gmra.mxu0 %v2611_v25 }
 0x308   :  { %2305 = vrot.lane.b32.xlu1 %v5964_v22, %s4410_s1 }
 0x30c   :  { %2295 = vrot.lane.b32.xlu1 %v2253_v12, %s4410_s1  ;;  %v2150_v41 = vpop.permute.xlu0 %2149 }
 0x30d   :  { %v1991_v20 = vpop.permute.xlu1 %1990  ;;  %2200 = vst.msk [vmem:[#allocation5 + $0x170] sm:$0xff] %vm2030_vm7, %v2150_v41 }
 0x30e   :  { %2041 = vst.msk [vmem:[#allocation5 + $0x190] sm:$0xff] %vm2030_vm7, %v1991_v20  ;;  %v2110_v42 = vld [vmem:[#allocation3 + $0xa7] sm:$0xff] }
 0x30f   :  { %v6258_v31 = vld [vmem:[#allocation3 + $0xa1] sm:$0xff]  ;;  %v6260_v19 = vld [vmem:[#allocation3 + $0xa9] sm:$0xff]  ;;  %2169 = vrot.lane.b32.xlu0 %v2110_v42, %s4410_s1 }
 0x310   :  { %2307 = vrot.lane.b32.xlu1 %v5982_v44, %s4410_s1  ;;  %v6265_v22 = vld [vmem:[#allocation3 + $0xa8] sm:$0xff]  ;;  %2090 = vst.msk [vmem:[#allocation5 + $0x300] sm:$0xff] %vm70_vm6, %v6258_v31  ;;  %2568 = vst.msk [vmem:[#allocation5 + $0x2c8] sm:$0xff] %vm70_vm6, %v6258_v31 }
 0x311   :  { %v2389_v18 = vld [vmem:[#allocation3 + $0xa7] sm:$0xff]  ;;  %2569 = vst.msk [vmem:[#allocation5 + $0x2f0] sm:$0xff] %vm70_vm6, %v6260_v19  ;;  %2250 = vst.msk [vmem:[#allocation5 + $0x308] sm:$0xff] %vm70_vm6, %v6265_v22  ;;  %v2390_v44 = vld [vmem:[#allocation3 + $0xaf] sm:$0xff] }
 0x312   :  { %2409 = vst.msk [vmem:[#allocation5 + $0x2e8] sm:$0xff] %vm70_vm6, %v2389_v18  ;;  %2410 = vst.msk [vmem:[#allocation5 + $0x310] sm:$0xff] %vm70_vm6, %v2390_v44 }
 0x313   :  { %2465 = vrot.lane.b32.xlu0 %v5962_v45, %s4410_s1  ;;  %v2414_v45 = vld [vmem:[#allocation3 + $0x30] sm:$0xff] }
 0x314   :  { %2297 = vrot.lane.b32.xlu1 %v5830_v60, %s4410_s1  ;;  %v2617_v14 = vld [vmem:[#allocation5 + $0x170] sm:$0xff] }
 0x315   :  { %2919 = vmatprep.mubr.f32.mxu0 %v2617_v14  ;;  %v2152_v30 = vpop.permute.xlu0 %2151  ;;  %v2621_v3 = vld [vmem:[#allocation5 + $0x190] sm:$0xff] }
 0x316   :  { %v1993_v6 = vpop.permute.xlu1 %1992  ;;  %2201 = vst.msk [vmem:[#allocation5 + $0x198] sm:$0xff] %vm2030_vm7, %v2152_v30  ;;  %2920 = vmatmul.mubr.f32.gmra.mxu0 %v2616_v34 }
 0x317   :  { %2042 = vst.msk [vmem:[#allocation5 + $0x1b8] sm:$0xff] %vm2030_vm7, %v1993_v6  ;;  %2455 = vrot.lane.b32.xlu0 %v5796_v26, %s4410_s1 }
 0x318   :  { %2309 = vrot.lane.b32.xlu1 %v6000_v52, %s4410_s1 }
 0x31b   :  { %2467 = vrot.lane.b32.xlu0 %v5980_v35, %s4410_s1 }
 0x31c   :  { %2311 = vrot.lane.b32.xlu1 %v6030_v46, %s4410_s1 }
 0x31d   :  { %v2622_v60 = vld [vmem:[#allocation5 + $0x198] sm:$0xff] }
 0x31e   :  { %2924 = vmatprep.mubr.f32.mxu0 %v2622_v60 }
 0x31f   :  { %2457 = vrot.lane.b32.xlu0 %v2414_v45, %s4410_s1  ;;  %2925 = vmatmul.mubr.f32.gmra.mxu0 %v2621_v3 }
 0x320   :  { %2313 = vrot.lane.b32.xlu1 %v6058_v38, %s4410_s1  ;;  %v2626_v38 = vld [vmem:[#allocation5 + $0x1b8] sm:$0xff] }
 0x323   :  { %2469 = vrot.lane.b32.xlu0 %v5998_v21, %s4410_s1 }
 0x324   :  { %2315 = vrot.lane.b32.xlu1 %v6097_v4, %s4410_s1  ;;  %v2154_v52 = vpop.permute.xlu0 %2153 }
 0x325   :  { %v1995_v26 = vpop.permute.xlu1 %1994  ;;  %2202 = vst.msk [vmem:[#allocation5 + $0x1c0] sm:$0xff] %vm2030_vm7, %v2154_v52 }
 0x326   :  { %2043 = vst.msk [vmem:[#allocation5 + $0x1e0] sm:$0xff] %vm2030_vm7, %v1995_v26 }
 0x327   :  { %2471 = vrot.lane.b32.xlu0 %v6028_v32, %s4410_s1 }
 0x328   :  { %2317 = vrot.lane.b32.xlu1 %v6128_v37, %s4410_s1  ;;  %v2550_v37 = vld [vmem:[#allocation3 + $0xb1] sm:$0xff] }
 0x329   :  { %2570 = vst.msk [vmem:[#allocation5 + $0x318] sm:$0xff] %vm70_vm6, %v2550_v37  ;;  %v2573_v37 = vld [vmem:[#allocation5 + $0x10] sm:$0xff] }
 0x32b   :  { %2473 = vrot.lane.b32.xlu0 %v6056_v56, %s4410_s1 }
 0x32c   :  { %2319 = vrot.lane.b32.xlu1 %v6163_v8, %s4410_s1  ;;  %v2627_v35 = vld [vmem:[#allocation5 + $0x1c0] sm:$0xff] }
 0x32d   :  { %2929 = vmatprep.mubr.f32.mxu0 %v2627_v35  ;;  %v2156_v46 = vpop.permute.xlu0 %2155  ;;  %v2631_v56 = vld [vmem:[#allocation5 + $0x1e0] sm:$0xff] }
 0x32e   :  { %v1997_v21 = vpop.permute.xlu1 %1996  ;;  %2203 = vst.msk [vmem:[#allocation5 + $0x1e8] sm:$0xff] %vm2030_vm7, %v2156_v46  ;;  %2930 = vmatmul.mubr.f32.gmra.mxu0 %v2626_v38 }
 0x32f   :  { %2044 = vst.msk [vmem:[#allocation5 + $0x208] sm:$0xff] %vm2030_vm7, %v1997_v21  ;;  %2475 = vrot.lane.b32.xlu0 %v6095_v1, %s4410_s1 }
 0x330   :  { %2321 = vrot.lane.b32.xlu1 %v6191_v5, %s4410_s1  ;;  %v2430_v5 = vld [vmem:[#allocation3 + $0xb0] sm:$0xff] }
 0x333   :  { %2477 = vrot.lane.b32.xlu0 %v6126_v28, %s4410_s1 }
 0x334   :  { %2323 = vrot.lane.b32.xlu1 %v6216_v9, %s4410_s1 }
 0x335   :  { %v2632_v32 = vld [vmem:[#allocation5 + $0x1e8] sm:$0xff] }
 0x336   :  { %2934 = vmatprep.mubr.f32.mxu0 %v2632_v32  ;;  %v2574_v32 = vld [vmem:[#allocation5 + $0x18] sm:$0xff] }
 0x337   :  { %2479 = vrot.lane.b32.xlu0 %v6161_v63, %s4410_s1  ;;  %2935 = vmatmul.mubr.f32.gmra.mxu0 %v2631_v56 }
 0x338   :  { %2325 = vrot.lane.b32.xlu1 %v6238_v15, %s4410_s1 }
 0x33b   :  { %2481 = vrot.lane.b32.xlu0 %v6189_v40, %s4410_s1  ;;  %v2636_v40 = vld [vmem:[#allocation5 + $0x208] sm:$0xff] }
 0x33c   :  { %2327 = vrot.lane.b32.xlu1 %v6258_v31, %s4410_s1  ;;  %v2158_v4 = vpop.permute.xlu0 %2157 }
 0x33d   :  { %v1999_v1 = vpop.permute.xlu1 %1998  ;;  %2204 = vst.msk [vmem:[#allocation5 + $0x210] sm:$0xff] %vm2030_vm7, %v2158_v4 }
 0x33e   :  { %2045 = vst.msk [vmem:[#allocation5 + $0x230] sm:$0xff] %vm2030_vm7, %v1999_v1 }
 0x33f   :  { %2483 = vrot.lane.b32.xlu0 %v6214_v58, %s4410_s1 }
 0x340   :  { %2329 = vrot.lane.b32.xlu1 %v6260_v19, %s4410_s1 }
 0x343   :  { %2485 = vrot.lane.b32.xlu0 %v6236_v0, %s4410_s1 }
 0x344   :  { %v2637_v28 = vld [vmem:[#allocation5 + $0x210] sm:$0xff] }
 0x345   :  { %2939 = vmatprep.mubr.f32.mxu0 %v2637_v28  ;;  %v2160_v8 = vpop.permute.xlu0 %2159  ;;  %v2641_v9 = vld [vmem:[#allocation5 + $0x230] sm:$0xff] }
 0x346   :  { %v2001_v63 = vpop.permute.xlu1 %2000  ;;  %2205 = vst.msk [vmem:[#allocation5 + $0x238] sm:$0xff] %vm2030_vm7, %v2160_v8  ;;  %2940 = vmatmul.mubr.f32.gmra.mxu0 %v2636_v40  ;;  %v2579_v40 = vld [vmem:[#allocation5 + $0x40] sm:$0xff] }
 0x347   :  { %2046 = vst.msk [vmem:[#allocation5 + $0x258] sm:$0xff] %vm2030_vm7, %v2001_v63  ;;  %2487 = vrot.lane.b32.xlu0 %v6265_v22, %s4410_s1  ;;  %v2741_v63 = vld [vmem:[%s6820_s5 + $0x230] sm:$0xff] }
 0x34b   :  { %2489 = vrot.lane.b32.xlu0 %v2430_v5, %s4410_s1  ;;  %v2740_v5 = vld [vmem:[%s6820_s5 + $0x228] sm:$0xff] }
 0x34d   :  { %v2642_v58 = vld [vmem:[#allocation5 + $0x238] sm:$0xff] }
 0x34e   :  { %2944 = vmatprep.mubr.f32.mxu0 %v2642_v58  ;;  %v2646_v15 = vld [vmem:[#allocation5 + $0x258] sm:$0xff] }
 0x34f   :  { %2945 = vmatmul.mubr.f32.gmra.mxu0 %v2641_v9 }
 0x354   :  { %v2162_v16 = vpop.permute.xlu0 %2161 }
 0x355   :  { %v2003_v23 = vpop.permute.xlu1 %2002  ;;  %2206 = vst.msk [vmem:[#allocation5 + $0x260] sm:$0xff] %vm2030_vm7, %v2162_v16  ;;  %v2578_v16 = vld [vmem:[#allocation5 + $0x38] sm:$0xff] }
 0x356   :  { %2047 = vst.msk [vmem:[#allocation5 + $0x280] sm:$0xff] %vm2030_vm7, %v2003_v23 }
 0x35c   :  { %v2647_v53 = vld [vmem:[#allocation5 + $0x260] sm:$0xff] }
 0x35d   :  { %2949 = vmatprep.mubr.f32.mxu0 %v2647_v53  ;;  %v2651_v43 = vld [vmem:[#allocation5 + $0x280] sm:$0xff] }
 0x35e   :  { %2950 = vmatmul.mubr.f32.gmra.mxu0 %v2646_v15  ;;  %v2739_v53 = vld [vmem:[%s6820_s5 + $0x220] sm:$0xff] }
 0x35f   :  { %v2164_v0 = vpop.permute.xlu0 %2163 }
 0x360   :  { %v2005_v39 = vpop.permute.xlu1 %2004  ;;  %2207 = vst.msk [vmem:[#allocation5 + $0x288] sm:$0xff] %vm2030_vm7, %v2164_v0  ;;  %v2738_v0 = vld [vmem:[%s6820_s5 + $0x218] sm:$0xff] }
 0x361   :  { %2048 = vst.msk [vmem:[#allocation5 + $0x2a8] sm:$0xff] %vm2030_vm7, %v2005_v39 }
 0x367   :  { %v2652_v27 = vld [vmem:[#allocation5 + $0x288] sm:$0xff] }
 0x368   :  { %2954 = vmatprep.mubr.f32.mxu0 %v2652_v27  ;;  %v2166_v12 = vpop.permute.xlu0 %2165  ;;  %v2656_v42 = vld [vmem:[#allocation5 + $0x2a8] sm:$0xff] }
 0x369   :  { %2955 = vmatmul.mubr.f32.gmra.mxu0 %v2651_v43  ;;  %v6350_v10 = vpop.f32.mrf.mxu0  ;;  %v2007_v25 = vpop.permute.xlu1 %2006  ;;  %2208 = vst.msk [vmem:[#allocation5 + $0x2b0] sm:$0xff] %vm2030_vm7, %v2166_v12 }
 0x36a   :  { %2049 = vst.msk [vmem:[#allocation5 + $0x2d0] sm:$0xff] %vm2030_vm7, %v2007_v25  ;;  %v2737_v25 = vld [vmem:[%s6820_s5 + $0x210] sm:$0xff] }
 0x36b   :  { %v2878_v20 = vpop.f32.mrf.mxu0 }
 0x370   :  { %v2657_v41 = vld [vmem:[#allocation5 + $0x2b0] sm:$0xff] }
 0x371   :  { %2959 = vmatprep.mubr.f32.mxu0 %v2657_v41  ;;  %v2661_v30 = vld [vmem:[#allocation5 + $0x2d0] sm:$0xff]  ;;  %v2736_v41 = vld [vmem:[%s6820_s5 + $0x208] sm:$0xff] }
 0x372   :  { %2960 = vmatmul.mubr.f32.gmra.mxu0 %v2656_v42 }
 0x375   :  { %v2168_v19 = vpop.permute.xlu0 %2167 }
 0x376   :  { %v2009_v31 = vpop.permute.xlu1 %2008  ;;  %2209 = vst.msk [vmem:[#allocation5 + $0x2d8] sm:$0xff] %vm2030_vm7, %v2168_v19 }
 0x377   :  { %2050 = vst.msk [vmem:[#allocation5 + $0x2f8] sm:$0xff] %vm2030_vm7, %v2009_v31  ;;  %v6356_v22 = vpop.f32.mrf.mxu0 }
 0x379   :  { %v2883_v44 = vpop.f32.mrf.mxu0 }
 0x37a   :  { %v2306_v18 = vpop.permute.xlu1 %2305 }
 0x37b   :  { %2358 = vst.msk [vmem:[#allocation5 + $0x128] sm:$0xff] %vm2030_vm7, %v2306_v18 }
 0x37d   :  { %v2662_v6 = vld [vmem:[#allocation5 + $0x2d8] sm:$0xff] }
 0x37e   :  { %v2296_v14 = vpop.permute.xlu1 %2295  ;;  %2964 = vmatprep.mubr.f32.mxu0 %v2662_v6  ;;  %v2666_v38 = vld [vmem:[#allocation5 + $0x2f8] sm:$0xff]  ;;  %v2575_v6 = vld [vmem:[#allocation5 + $0x20] sm:$0xff] }
 0x37f   :  { %2353 = vst.msk [vmem:[#allocation5 + $0x60] sm:$0xff] %vm2030_vm7, %v2296_v14  ;;  %2965 = vmatmul.mubr.f32.gmra.mxu0 %v2661_v30  ;;  %v2735_v14 = vld [vmem:[%s6820_s5 + $0x200] sm:$0xff] }
 0x381   :  { %v6360_v34 = vpop.f32.mrf.mxu0  ;;  %v2170_v45 = vpop.permute.xlu0 %2169 }
 0x382   :  { %v2308_v60 = vpop.permute.xlu1 %2307  ;;  %2210 = vst.msk [vmem:[#allocation5 + $0x300] sm:$0xff] %vm2030_vm7, %v2170_v45  ;;  %v2608_v28 = vld [vmem:[#allocation5 + $0x128] sm:$0xff] }
 0x383   :  { %2359 = vst.msk [vmem:[#allocation5 + $0x150] sm:$0xff] %vm2030_vm7, %v2308_v60  ;;  %v2888_v3 = vpop.f32.mrf.mxu0 }
 0x385   :  { %v2466_v52 = vpop.permute.xlu0 %2465 }
 0x386   :  { %v2298_v26 = vpop.permute.xlu1 %2297  ;;  %2518 = vst.msk [vmem:[#allocation5 + $0x130] sm:$0xff] %vm2030_vm7, %v2466_v52  ;;  %v2583_v43 = vld [vmem:[#allocation5 + $0x60] sm:$0xff]  ;;  %v2585_v52 = vld [vmem:[#allocation5 + $0x70] sm:$0xff] }
 0x387   :  { %2354 = vst.msk [vmem:[#allocation5 + $0x88] sm:$0xff] %vm2030_vm7, %v2298_v26  ;;  %v2580_v26 = vld [vmem:[#allocation5 + $0x48] sm:$0xff] }
 0x389   :  { %v2456_v21 = vpop.permute.xlu0 %2455  ;;  %v2667_v46 = vld [vmem:[#allocation5 + $0x300] sm:$0xff] }
 0x38a   :  { %v2310_v35 = vpop.permute.xlu1 %2309  ;;  %2513 = vst.msk [vmem:[#allocation5 + $0x68] sm:$0xff] %vm2030_vm7, %v2456_v21  ;;  %2969 = vmatprep.mubr.f32.mxu0 %v2667_v46  ;;  %v2613_v12 = vld [vmem:[#allocation5 + $0x150] sm:$0xff] }
 0x38b   :  { %2360 = vst.msk [vmem:[#allocation5 + $0x178] sm:$0xff] %vm2030_vm7, %v2310_v35  ;;  %2970 = vmatmul.mubr.f32.gmra.mxu0 %v2666_v38  ;;  %v3340_v35 = vld [vmem:[%s6822_s7 + $0x78] sm:$0xff] }
 0x38c   :  { %3039 = vmatprep.mubr.f32.mxu0 %v2574_v32  ;;  %4214 = vmatprep.subr.mxu1 %v3340_v35 }
 0x38d   :  { %v2468_v1 = vpop.permute.xlu0 %2467  ;;  %v2609_v4 = vld [vmem:[#allocation5 + $0x130] sm:$0xff]  ;;  %4215 = vmatpush3.msra.mxu1 %v3340_v35  ;;  %v2630_v35 = vld [vmem:[#allocation5 + $0x1d8] sm:$0xff] }
 0x38e   :  { %v2312_v56 = vpop.permute.xlu1 %2311  ;;  %2519 = vst.msk [vmem:[#allocation5 + $0x158] sm:$0xff] %vm2030_vm7, %v2468_v1  ;;  %3074 = vmatprep.mubr.f32.mxu1 %v2609_v4  ;;  %v2588_v44 = vld [vmem:[#allocation5 + $0x88] sm:$0xff]  ;;  %v2595_v1 = vld [vmem:[#allocation5 + $0xc0] sm:$0xff] }
 0x38f   :  { %2361 = vst.msk [vmem:[#allocation5 + $0x1a0] sm:$0xff] %vm2030_vm7, %v2312_v56  ;;  %3040 = vmatmul.mubr.f32.vlgmr.msra.gmra.mxu0 %v2573_v37  ;;  %3075 = vmatmul.mubr.f32.gmra.mxu1 %v2608_v28  ;;  %v2590_v56 = vld [vmem:[#allocation5 + $0x98] sm:$0xff] }
 0x390   :  { %v6373_v8 = vpop.f32.mrf.mxu0  ;;  %4169 = vmatpush3.msra.mxu0 %v6272_v7  ;;  %3044 = vmatprep.mubr.f32.mxu0 %v2579_v40 }
 0x391   :  { %4170 = vmatprep.subr.mxu0 %v2741_v63  ;;  %v2458_v23 = vpop.permute.xlu0 %2457  ;;  %v2584_v7 = vld [vmem:[#allocation5 + $0x68] sm:$0xff] }
 0x392   :  { %v2314_v58 = vpop.permute.xlu1 %2313  ;;  %v2893_v9 = vpop.f32.mrf.mxu0  ;;  %4171 = vmatpush3.msra.mxu0 %v2741_v63  ;;  %2514 = vst.msk [vmem:[#allocation5 + $0x90] sm:$0xff] %vm2030_vm7, %v2458_v23  ;;  %v2618_v3 = vld [vmem:[#allocation5 + $0x178] sm:$0xff] }
 0x393   :  { %2362 = vst.msk [vmem:[#allocation5 + $0x1c8] sm:$0xff] %vm2030_vm7, %v2314_v58  ;;  %4172 = vmatprep.subr.mxu0 %v2740_v5  ;;  %3045 = vmatmul.mubr.f32.gmra.mxu0 %v2578_v16  ;;  %v2605_v58 = vld [vmem:[#allocation5 + $0x110] sm:$0xff]  ;;  %v6420_v9 = vld [vmem:[%s6821_s6] ss:$0 sm:$0xff] }
 0x394   :  { %4173 = vmatpush3.msra.mxu0 %v2740_v5  ;;  %3049 = vmatprep.mubr.f32.mxu0 %v2584_v7  ;;  %v2600_v5 = vld [vmem:[#allocation5 + $0xe8] sm:$0xff] }
 0x395   :  { %4174 = vmatprep.subr.mxu0 %v2739_v53  ;;  %v2614_v39 = vld [vmem:[#allocation5 + $0x158] sm:$0xff]  ;;  %v2470_v27 = vpop.permute.xlu0 %2469 }
 0x396   :  { %v2316_v15 = vpop.permute.xlu1 %2315  ;;  %4175 = vmatpush3.msra.mxu0 %v2739_v53  ;;  %3079 = vmatprep.mubr.f32.mxu1 %v2614_v39  ;;  %2520 = vst.msk [vmem:[#allocation5 + $0x180] sm:$0xff] %vm2030_vm7, %v2470_v27  ;;  %v2623_v32 = vld [vmem:[#allocation5 + $0x1a0] sm:$0xff]  ;;  %v3339_v53 = vld [vmem:[%s6822_s7 + $0x70] sm:$0xff]  ;;  %v3338_v39 = vld [vmem:[%s6822_s7 + $0x68] sm:$0xff] }
 0x397   :  { %2363 = vst.msk [vmem:[#allocation5 + $0x1f0] sm:$0xff] %vm2030_vm7, %v2316_v15  ;;  %4176 = vmatprep.subr.mxu0 %v2738_v0  ;;  %3050 = vmatmul.mubr.f32.gmra.mxu0 %v2583_v43 }
 0x398   :  { %3080 = vmatmul.mubr.f32.gmra.mxu1 %v2613_v12  ;;  %4177 = vmatpush3.msra.mxu0 %v2738_v0  ;;  %v6392_v20 = vpop.f32.mrf.mxu0 }
 0x399   :  { %4178 = vmatprep.subr.mxu0 %v2737_v25  ;;  %v2472_v31 = vpop.permute.xlu0 %2471  ;;  %v2589_v18 = vld [vmem:[#allocation5 + $0x90] sm:$0xff]  ;;  %v2897_v7 = vadd.f32 %v6420_v9, %v6392_v20  ;;  %4216 = vmatprep.subr.mxu1 %v3339_v53  ;;  %v2615_v20 = vld [vmem:[#allocation5 + $0x160] sm:$0xff] }
 0x39a   :  { %v2318_v42 = vpop.permute.xlu1 %2317  ;;  %4179 = vmatpush3.msra.mxu0 %v2737_v25  ;;  %v2898_v19 = vpop.f32.mrf.mxu0  ;;  %2521 = vst.msk [vmem:[#allocation5 + $0x1a8] sm:$0xff] %vm2030_vm7, %v2472_v31  ;;  %3054 = vmatprep.mubr.f32.mxu0 %v2589_v18  ;;  %v2628_v40 = vld [vmem:[#allocation5 + $0x1c8] sm:$0xff]  ;;  %v2610_v25 = vld [vmem:[#allocation5 + $0x138] sm:$0xff] }
 0x39b   :  { %2364 = vst.msk [vmem:[#allocation5 + $0x218] sm:$0xff] %vm2030_vm7, %v2318_v42  ;;  %4180 = vmatprep.subr.mxu0 %v2736_v41  ;;  %3055 = vmatmul.mubr.f32.gmra.mxu0 %v2588_v44 }
 0x39c   :  { %4181 = vmatpush3.msra.mxu0 %v2736_v41  ;;  %4184 = vmatprep.mubr.msk.f32.mxu0 %vm70_vm6, %v2575_v6  ;;  %v3337_v41 = vld [vmem:[%s6822_s7 + $0x60] sm:$0xff]  ;;  %v2625_v6 = vld [vmem:[#allocation5 + $0x1b0] sm:$0xff] }
 0x39d   :  { %4182 = vmatprep.subr.mxu0 %v2735_v14  ;;  %v2474_v60 = vpop.permute.xlu0 %2473  ;;  %v2619_v45 = vld [vmem:[#allocation5 + $0x180] sm:$0xff]  ;;  %4217 = vmatpush3.msra.mxu1 %v3339_v53 }
 0x39e   :  { %v2320_v30 = vpop.permute.xlu1 %2319  ;;  %4183 = vmatpush3.msra.mxu0 %v2735_v14  ;;  %2522 = vst.msk [vmem:[#allocation5 + $0x1d0] sm:$0xff] %vm2030_vm7, %v2474_v60  ;;  %3084 = vmatprep.mubr.f32.mxu1 %v2619_v45  ;;  %v2633_v43 = vld [vmem:[#allocation5 + $0x1f0] sm:$0xff]  ;;  %v2620_v14 = vld [vmem:[#allocation5 + $0x188] sm:$0xff] }
 0x39f   :  { %2365 = vst.msk [vmem:[#allocation5 + $0x240] sm:$0xff] %vm2030_vm7, %v2320_v30  ;;  %3085 = vmatmul.mubr.f32.gmra.mxu1 %v2618_v3  ;;  %4185 = vmatmul.mubr.msk.f32.vlgmr.msra.gmra.mxu0 %vm70_vm6, %v2580_v26 }
 0x3a0   :  { %4187 = vmatprep.mubr.msk.f32.mxu0 %vm70_vm6, %v2585_v52  ;;  %4218 = vmatprep.subr.mxu1 %v3338_v39 }
 0x3a1   :  { %v2476_v46 = vpop.permute.xlu0 %2475  ;;  %v2624_v38 = vld [vmem:[#allocation5 + $0x1a8] sm:$0xff]  ;;  %4219 = vmatpush3.msra.mxu1 %v3338_v39 }
 0x3a2   :  { %v2322_v21 = vpop.permute.xlu1 %2321  ;;  %2523 = vst.msk [vmem:[#allocation5 + $0x1f8] sm:$0xff] %vm2030_vm7, %v2476_v46  ;;  %3089 = vmatprep.mubr.f32.mxu1 %v2624_v38  ;;  %v2638_v44 = vld [vmem:[#allocation5 + $0x218] sm:$0xff]  ;;  %4220 = vmatprep.subr.mxu1 %v3337_v41  ;;  %v2635_v46 = vld [vmem:[#allocation5 + $0x200] sm:$0xff] }
 0x3a3   :  { %2366 = vst.msk [vmem:[#allocation5 + $0x268] sm:$0xff] %vm2030_vm7, %v2322_v21  ;;  %3090 = vmatmul.mubr.f32.gmra.mxu1 %v2623_v32  ;;  %4188 = vmatmul.mubr.msk.f32.gmra.mxu0 %vm70_vm6, %v2590_v56  ;;  %v3336_v32 = vld [vmem:[%s6822_s7 + $0x58] sm:$0xff] }
 0x3a4   :  { %4190 = vmatprep.mubr.msk.f32.mxu0 %vm70_vm6, %v2595_v1  ;;  %4221 = vmatpush3.msra.mxu1 %v3337_v41 }
 0x3a5   :  { %v2478_v37 = vpop.permute.xlu0 %2477  ;;  %v2629_v28 = vld [vmem:[#allocation5 + $0x1d0] sm:$0xff]  ;;  %4222 = vmatprep.subr.mxu1 %v3336_v32 }
 0x3a6   :  { %v2324_v4 = vpop.permute.xlu1 %2323  ;;  %2524 = vst.msk [vmem:[#allocation5 + $0x220] sm:$0xff] %vm2030_vm7, %v2478_v37  ;;  %3094 = vmatprep.mubr.f32.mxu1 %v2629_v28  ;;  %v2901_v63 = vpop.f32.mrf.mxu0  ;;  %v2643_v52 = vld [vmem:[#allocation5 + $0x240] sm:$0xff]  ;;  %v3335_v37 = vld [vmem:[%s6822_s7 + $0x50] sm:$0xff]  ;;  %4223 = vmatpush3.msra.mxu1 %v3336_v32 }
 0x3a7   :  { %2367 = vst.msk [vmem:[#allocation5 + $0x290] sm:$0xff] %vm2030_vm7, %v2324_v4  ;;  %3095 = vmatmul.mubr.f32.gmra.mxu1 %v2628_v40  ;;  %4191 = vmatmul.mubr.msk.f32.gmra.mxu0 %vm70_vm6, %v2600_v5  ;;  %v2902_v21 = vadd.f32 %v6420_v9, %v2901_v63  ;;  %v2640_v40 = vld [vmem:[#allocation5 + $0x228] sm:$0xff]  ;;  %v2645_v5 = vld [vmem:[#allocation5 + $0x250] sm:$0xff] }
 0x3a8   :  { %4193 = vmatprep.mubr.msk.f32.mxu0 %vm70_vm6, %v2605_v58  ;;  %v2903_v16 = vpop.f32.mrf.mxu0  ;;  %v3334_v58 = vld [vmem:[%s6822_s7 + $0x48] sm:$0xff]  ;;  %4224 = vmatprep.subr.mxu1 %v3335_v37 }
 0x3a9   :  { %v2480_v0 = vpop.permute.xlu0 %2479  ;;  %v2634_v15 = vld [vmem:[#allocation5 + $0x1f8] sm:$0xff]  ;;  %4225 = vmatpush3.msra.mxu1 %v3335_v37  ;;  %v3326_v37 = vld [vmem:[%s6822_s7 + $0x8] sm:$0xff] }
 0x3aa   :  { %v2326_v23 = vpop.permute.xlu1 %2325  ;;  %2525 = vst.msk [vmem:[#allocation5 + $0x248] sm:$0xff] %vm2030_vm7, %v2480_v0  ;;  %3099 = vmatprep.mubr.f32.mxu1 %v2634_v15  ;;  %v3061_v27 = vpop.f32.mrf.mxu1  ;;  %v2648_v63 = vld [vmem:[#allocation5 + $0x268] sm:$0xff]  ;;  %4226 = vmatprep.subr.mxu1 %v3334_v58  ;;  %v2655_v0 = vld [vmem:[#allocation5 + $0x2a0] sm:$0xff] }
 0x3ab   :  { %2368 = vst.msk [vmem:[#allocation5 + $0x2b8] sm:$0xff] %vm2030_vm7, %v2326_v23  ;;  %v6433_v12 = vadd.f32 %v3061_v27, %v2897_v7  ;;  %3100 = vmatmul.mubr.f32.gmra.mxu1 %v2633_v43  ;;  %4194 = vmatmul.mubr.msk.f32.gmra.mxu0 %vm70_vm6, %v2610_v25  ;;  %v2650_v7 = vld [vmem:[#allocation5 + $0x278] sm:$0xff]  ;;  %v2660_v25 = vld [vmem:[#allocation5 + $0x2c8] sm:$0xff] }
 0x3ac   :  { %4196 = vmatprep.mubr.msk.f32.mxu0 %vm70_vm6, %v2615_v20  ;;  %v3063_v31 = vpop.f32.mrf.mxu1  ;;  %4227 = vmatpush3.msra.mxu1 %v3334_v58  ;;  %v2665_v20 = vld [vmem:[#allocation5 + $0x2f0] sm:$0xff] }
 0x3ad   :  { %v2482_v19 = vpop.permute.xlu0 %2481  ;;  %v2639_v18 = vld [vmem:[#allocation5 + $0x220] sm:$0xff] }
 0x3ae   :  { %v2328_v42 = vpop.permute.xlu1 %2327  ;;  %2526 = vst.msk [vmem:[#allocation5 + $0x270] sm:$0xff] %vm2030_vm7, %v2482_v19  ;;  %3104 = vmatprep.mubr.f32.mxu1 %v2639_v18  ;;  %v2653_v53 = vld [vmem:[#allocation5 + $0x290] sm:$0xff]  ;;  %v3333_v31 = vld [vmem:[%s6822_s7 + $0x40] sm:$0xff]  ;;  %v3332_v18 = vld [vmem:[%s6822_s7 + $0x38] sm:$0xff] }
 0x3af   :  { %2369 = vst.msk [vmem:[#allocation5 + $0x2e0] sm:$0xff] %vm2030_vm7, %v2328_v42  ;;  %3105 = vmatmul.mubr.f32.gmra.mxu1 %v2638_v44  ;;  %4197 = vmatmul.mubr.msk.f32.gmra.mxu0 %vm70_vm6, %v2620_v14  ;;  %v2670_v42 = vld [vmem:[#allocation5 + $0x318] sm:$0xff] }
 0x3b0   :  { %v6443_v30 = vpop.f32.mrf.mxu0  ;;  %4199 = vmatprep.mubr.msk.f32.mxu0 %vm70_vm6, %v2625_v6  ;;  %4228 = vmatprep.subr.mxu1 %v3333_v31 }
 0x3b1   :  { %v2484_v45 = vpop.permute.xlu0 %2483  ;;  %v2644_v3 = vld [vmem:[#allocation5 + $0x248] sm:$0xff]  ;;  %v2907_v44 = vadd.f32 %v6420_v9, %v6443_v30  ;;  %4229 = vmatpush3.msra.mxu1 %v3333_v31 }
 0x3b2   :  { %v2330_v60 = vpop.permute.xlu1 %2329  ;;  %2527 = vst.msk [vmem:[#allocation5 + $0x298] sm:$0xff] %vm2030_vm7, %v2484_v45  ;;  %v2908_v26 = vpop.f32.mrf.mxu0  ;;  %3109 = vmatprep.mubr.f32.mxu1 %v2644_v3  ;;  %v2658_v43 = vld [vmem:[#allocation5 + $0x2b8] sm:$0xff]  ;;  %4230 = vmatprep.subr.mxu1 %v3332_v18 }
 0x3b3   :  { %2370 = vst.msk [vmem:[#allocation5 + $0x308] sm:$0xff] %vm2030_vm7, %v2330_v60  ;;  %3110 = vmatmul.mubr.f32.gmra.mxu1 %v2643_v52  ;;  %4200 = vmatmul.mubr.msk.f32.gmra.mxu0 %vm70_vm6, %v2630_v35  ;;  %v3066_v38 = vpop.f32.mrf.mxu1  ;;  %v3331_v60 = vld [vmem:[%s6822_s7 + $0x30] sm:$0xff] }
 0x3b4   :  { %4202 = vmatprep.mubr.msk.f32.mxu0 %vm70_vm6, %v2635_v46  ;;  %v6454_v56 = vadd.f32 %v3066_v38, %v2902_v21  ;;  %4231 = vmatpush3.msra.mxu1 %v3332_v18  ;;  %v3330_v21 = vld [vmem:[%s6822_s7 + $0x28] sm:$0xff]  ;;  %v3329_v46 = vld [vmem:[%s6822_s7 + $0x20] sm:$0xff]  ;;  %v3328_v38 = vld [vmem:[%s6822_s7 + $0x18] sm:$0xff] }
 0x3b5   :  { %v2486_v1 = vpop.permute.xlu0 %2485  ;;  %v2649_v4 = vld [vmem:[#allocation5 + $0x270] sm:$0xff]  ;;  %v3068_v28 = vpop.f32.mrf.mxu1  ;;  %4232 = vmatprep.subr.mxu1 %v3331_v60 }
 0x3b6   :  { %2528 = vst.msk [vmem:[#allocation5 + $0x2c0] sm:$0xff] %vm2030_vm7, %v2486_v1  ;;  %3114 = vmatprep.mubr.f32.mxu1 %v2649_v4  ;;  %v2663_v14 = vld [vmem:[#allocation5 + $0x2e0] sm:$0xff]  ;;  %4233 = vmatpush3.msra.mxu1 %v3331_v60  ;;  %v3327_v4 = vld [vmem:[%s6822_s7 + $0x10] sm:$0xff] }
 0x3b7   :  { %3115 = vmatmul.mubr.f32.gmra.mxu1 %v2648_v63  ;;  %4203 = vmatmul.mubr.msk.f32.gmra.mxu0 %vm70_vm6, %v2640_v40  ;;  %v3325_v40 = vld [vmem:[%s6822_s7] sm:$0xff] }
 0x3b8   :  { %4205 = vmatprep.mubr.msk.f32.mxu0 %vm70_vm6, %v2645_v5  ;;  %4234 = vmatprep.subr.mxu1 %v3330_v21 }
 0x3b9   :  { %v2488_v23 = vpop.permute.xlu0 %2487  ;;  %v2654_v16 = vld [vmem:[#allocation5 + $0x298] sm:$0xff]  ;;  %4235 = vmatpush3.msra.mxu1 %v3330_v21 }
 0x3ba   :  { %2529 = vst.msk [vmem:[#allocation5 + $0x2e8] sm:$0xff] %vm2030_vm7, %v2488_v23  ;;  %3119 = vmatprep.mubr.f32.mxu1 %v2654_v16  ;;  %v2668_v52 = vld [vmem:[#allocation5 + $0x308] sm:$0xff]  ;;  %4236 = vmatprep.subr.mxu1 %v3329_v46 }
 0x3bb   :  { %3120 = vmatmul.mubr.f32.gmra.mxu1 %v2653_v53  ;;  %4206 = vmatmul.mubr.msk.f32.gmra.mxu0 %vm70_vm6, %v2650_v7 }
 0x3bc   :  { %4208 = vmatprep.mubr.msk.f32.mxu0 %vm70_vm6, %v2655_v0  ;;  %4237 = vmatpush3.msra.mxu1 %v3329_v46 }
 0x3bd   :  { %v2490_v15 = vpop.permute.xlu0 %2489  ;;  %v2659_v39 = vld [vmem:[#allocation5 + $0x2c0] sm:$0xff]  ;;  %4238 = vmatprep.subr.mxu1 %v3328_v38 }
 0x3be   :  { %2530 = vst.msk [vmem:[#allocation5 + $0x310] sm:$0xff] %vm2030_vm7, %v2490_v15  ;;  %3124 = vmatprep.mubr.f32.mxu1 %v2659_v39  ;;  %v6469_v27 = vpop.f32.mrf.mxu0  ;;  %4239 = vmatpush3.msra.mxu1 %v3328_v38 }
 0x3bf   :  { %3125 = vmatmul.mubr.f32.gmra.mxu1 %v2658_v43  ;;  %4209 = vmatmul.mubr.msk.f32.gmra.mxu0 %vm70_vm6, %v2660_v25 }
 0x3c0   :  { %4211 = vmatprep.mubr.msk.f32.mxu0 %vm70_vm6, %v2665_v20  ;;  %v2913_v41 = vpop.f32.mrf.mxu0  ;;  %4240 = vmatprep.subr.mxu1 %v3327_v4 }
 0x3c1   :  { %v2664_v19 = vld [vmem:[#allocation5 + $0x2e8] sm:$0xff]  ;;  %4241 = vmatpush3.msra.mxu1 %v3327_v4  ;;  %v2882_v4 = vadd.f32 %v6420_v9, %v6356_v22 }
 0x3c2   :  { %3129 = vmatprep.mubr.f32.mxu1 %v2664_v19  ;;  %4242 = vmatprep.subr.mxu1 %v3326_v37 }
 0x3c3   :  { %v3071_v6 = vpop.f32.mrf.mxu1  ;;  %3130 = vmatmul.mubr.f32.gmra.mxu1 %v2663_v14  ;;  %4212 = vmatmul.mubr.msk.f32.gmra.mxu0 %vm70_vm6, %v2670_v42 }
 0x3c4   :  { %v6485_v45 = vadd.f32 %v3071_v6, %v2907_v44  ;;  %4243 = vmatpush3.msra.mxu1 %v3326_v37 }
 0x3c5   :  { %v3073_v3 = vpop.f32.mrf.mxu1  ;;  %v2669_v26 = vld [vmem:[#allocation5 + $0x310] sm:$0xff]  ;;  %4244 = vmatprep.subr.mxu1 %v3325_v40 }
 0x3c6   :  { %3134 = vmatprep.mubr.f32.mxu1 %v2669_v26  ;;  %4245 = vmatpush3.msra.mxu1 %v3325_v40 }
 0x3c7   :  { %3135 = vmatmul.mubr.f32.gmra.mxu1 %v2668_v52  ;;  %v6487_v30 = vpop.f32.mrf.mxu0 }
 0x3c9   :  { %v2918_v35 = vpop.f32.mrf.mxu0 }
 0x3d6   :  { %v6498_v32 = vpop.f32.mrf.mxu0 }
 0x3d8   :  { %v2923_v1 = vpop.f32.mrf.mxu0 }
 0x3df   :  { %v6506_v28 = vpop.f32.mrf.mxu0 }
 0x3e1   :  { %v2928_v63 = vpop.f32.mrf.mxu0 }
 0x3e2   :  { %v2877_v63 = vadd.f32 %v6420_v9, %v6350_v10 }
 0x3ee   :  { %v6511_v5 = vpop.f32.mrf.mxu0 }
 0x3f0   :  { %v2933_v58 = vpop.f32.mrf.mxu0 }
 0x3f7   :  { %v6513_v23 = vpop.f32.mrf.mxu0 }
 0x3f9   :  { %v2938_v16 = vpop.f32.mrf.mxu0 }
 0x406   :  { %v6515_v53 = vpop.f32.mrf.mxu0 }
 0x408   :  { %v2943_v7 = vpop.f32.mrf.mxu0 }
 0x40f   :  { %v6517_v0 = vpop.f32.mrf.mxu0 }
 0x411   :  { %v2948_v15 = vpop.f32.mrf.mxu0 }
 0x412   :  { %v2892_v15 = vadd.f32 %v6420_v9, %v6373_v8 }
 0x41e   :  { %v6519_v39 = vpop.f32.mrf.mxu0 }
 0x420   :  { %v2953_v43 = vpop.f32.mrf.mxu0 }
 0x429   :  { %v6521_v25 = vpop.f32.mrf.mxu0 }
 0x42b   :  { %v2958_v20 = vpop.f32.mrf.mxu0 }
 0x432   :  { %v6523_v41 = vpop.f32.mrf.mxu0 }
 0x434   :  { %v2963_v42 = vpop.f32.mrf.mxu0 }
 0x43f   :  { %v6525_v31 = vpop.f32.mrf.mxu0 }
 0x441   :  { %v2968_v19 = vpop.f32.mrf.mxu0 }
 0x442   :  { %v2887_v19 = vadd.f32 %v6420_v9, %v6360_v34 }
 0x44b   :  { %v6527_v18 = vpop.f32.mrf.mxu0 }
 0x44d   :  { %v2973_v44 = vpop.f32.mrf.mxu0 }
 0x44f   :  { %v3041_v14 = vpop.f32.mrf.mxu0  ;;  %v3076_v6 = vpop.f32.mrf.mxu1 }
 0x450   :  { %v3042_v7 = vadd.f32 %v3041_v14, %v2877_v63 }
 0x451   :  { %v3043_v60 = vpop.f32.mrf.mxu0  ;;  %v3078_v3 = vpop.f32.mrf.mxu1 }
 0x453   :  { %v3046_v26 = vpop.f32.mrf.mxu0 }
 0x454   :  { %v3047_v40 = vadd.f32 %v3046_v26, %v2882_v4 }
 0x455   :  { %v3048_v52 = vpop.f32.mrf.mxu0 }
 0x457   :  { %v3051_v35 = vpop.f32.mrf.mxu0 }
 0x458   :  { %v3081_v21 = vpop.f32.mrf.mxu1  ;;  %v3052_v52 = vadd.f32 %v3051_v35, %v2887_v19  ;;  %v2922_v19 = vadd.f32 %v6420_v9, %v6498_v32 }
 0x459   :  { %v3053_v46 = vpop.f32.mrf.mxu0 }
 0x45a   :  { %v3083_v38 = vpop.f32.mrf.mxu1 }
 0x45b   :  { %v3056_v1 = vpop.f32.mrf.mxu0 }
 0x45c   :  { %v3057_v60 = vadd.f32 %v3056_v1, %v2892_v15 }
 0x45d   :  { %v3058_v37 = vpop.f32.mrf.mxu0 }
 0x45f   :  { %v3086_v58 = vpop.f32.mrf.mxu1  ;;  %v4186_v16 = vpop.f32.mrf.mxu0 }
 0x460   :  { %v3212_v43 = vadd.f32 %v4186_v16, %v3047_v40  ;;  %v2912_v40 = vadd.f32 %v6420_v9, %v6469_v27 }
 0x461   :  { %v3088_v20 = vpop.f32.mrf.mxu1  ;;  %v3206_v42 = vpop.f32.mrf.mxu0 }
 0x462   :  { %v3207_v44 = vadd.f32 %v3206_v42, %v3042_v7  ;;  %v3306_v10 = vmax.f32 %v3212_v43, 0.0  ;;  %v3077_v15 = vadd.f32 %v3076_v6, %v2912_v40 }
 0x463   :  { %v3091_v22 = vpop.f32.mrf.mxu1  ;;  %v4189_v3 = vpop.f32.mrf.mxu0 }
 0x464   :  { %v3305_v46 = vmax.f32 %v3207_v44, 0.0  ;;  %v3222_v26 = vadd.f32 %v4189_v3, %v3057_v60 }
 0x465   :  { %v3093_v38 = vpop.f32.mrf.mxu1  ;;  %v3216_v4 = vpop.f32.mrf.mxu0 }
 0x466   :  { %v3217_v14 = vadd.f32 %v3216_v4, %v3052_v52  ;;  %4246 = vmatprep.mubr.f32.mxu1 %v3305_v46  ;;  %v3308_v34 = vmax.f32 %v3222_v26, 0.0  ;;  %v2932_v38 = vadd.f32 %v6420_v9, %v6511_v5 }
 0x467   :  { %v3096_v37 = vpop.f32.mrf.mxu1  ;;  %v4192_v8 = vpop.f32.mrf.mxu0  ;;  %4247 = vmatmul.mubr.f32.vlgmr.msra.gmra.mxu1 %v3306_v10 }
 0x468   :  { %v3307_v63 = vmax.f32 %v3217_v14, 0.0  ;;  %v3232_v1 = vadd.f32 %v4192_v8, %v6454_v56  ;;  %v2917_v56 = vadd.f32 %v6420_v9, %v6487_v30 }
 0x469   :  { %v3098_v16 = vpop.f32.mrf.mxu1  ;;  %v3226_v7 = vpop.f32.mrf.mxu0 }
 0x46a   :  { %v3227_v35 = vadd.f32 %v3226_v7, %v6433_v12  ;;  %4249 = vmatprep.mubr.f32.mxu1 %v3307_v63  ;;  %v3310_v44 = vmax.f32 %v3232_v1, 0.0  ;;  %v3087_v12 = vadd.f32 %v3086_v58, %v2922_v19  ;;  %v3082_v10 = vadd.f32 %v3081_v21, %v2917_v56 }
 0x46b   :  { %v3101_v43 = vpop.f32.mrf.mxu1  ;;  %v4195_v20 = vpop.f32.mrf.mxu0  ;;  %4250 = vmatmul.mubr.f32.gmra.mxu1 %v3308_v34  ;;  %v2927_v63 = vadd.f32 %v6420_v9, %v6506_v28  ;;  %v2942_v21 = vadd.f32 %v6420_v9, %v6515_v53  ;;  %v2947_v56 = vadd.f32 %v6420_v9, %v6517_v0 }
 0x46c   :  { %v3309_v42 = vmax.f32 %v3227_v35, 0.0  ;;  %v3242_v60 = vadd.f32 %v4195_v20, %v3077_v15  ;;  %v2937_v15 = vadd.f32 %v6420_v9, %v6513_v23 }
 0x46d   :  { %v3103_v3 = vpop.f32.mrf.mxu1  ;;  %v3236_v27 = vpop.f32.mrf.mxu0  ;;  %v3092_v34 = vadd.f32 %v3091_v22, %v2927_v63  ;;  %v2952_v22 = vadd.f32 %v6420_v9, %v6519_v39  ;;  %v2957_v39 = vadd.f32 %v6420_v9, %v6521_v25 }
 0x46e   :  { %v3237_v52 = vadd.f32 %v3236_v27, %v6485_v45  ;;  %4252 = vmatprep.mubr.f32.mxu1 %v3309_v42  ;;  %v3312_v32 = vmax.f32 %v3242_v60, 0.0  ;;  %v3097_v45 = vadd.f32 %v3096_v37, %v2932_v38  ;;  %v3102_v19 = vadd.f32 %v3101_v43, %v2937_v15 }
 0x46f   :  { %v3106_v46 = vpop.f32.mrf.mxu1  ;;  %v4198_v6 = vpop.f32.mrf.mxu0  ;;  %4253 = vmatmul.mubr.f32.gmra.mxu1 %v3310_v44 }
 0x470   :  { %v3311_v26 = vmax.f32 %v3237_v52, 0.0  ;;  %v3252_v4 = vadd.f32 %v4198_v6, %v3087_v12  ;;  %v3107_v28 = vadd.f32 %v3106_v46, %v2942_v21 }
 0x471   :  { %v3108_v14 = vpop.f32.mrf.mxu1  ;;  %v3246_v8 = vpop.f32.mrf.mxu0 }
 0x472   :  { %v3247_v30 = vadd.f32 %v3246_v8, %v3082_v10  ;;  %4255 = vmatprep.mubr.f32.mxu1 %v3311_v26  ;;  %v3314_v16 = vmax.f32 %v3252_v4, 0.0  ;;  %v2962_v4 = vadd.f32 %v6420_v9, %v6523_v41 }
 0x473   :  { %v3111_v40 = vpop.f32.mrf.mxu1  ;;  %v4201_v58 = vpop.f32.mrf.mxu0  ;;  %4256 = vmatmul.mubr.f32.gmra.mxu1 %v3312_v32 }
 0x474   :  { %v3313_v1 = vmax.f32 %v3247_v30, 0.0  ;;  %v3262_v5 = vadd.f32 %v4201_v58, %v3097_v45  ;;  %v3112_v6 = vadd.f32 %v3111_v40, %v2947_v56 }
 0x475   :  { %v3113_v7 = vpop.f32.mrf.mxu1  ;;  %v3256_v35 = vpop.f32.mrf.mxu0 }
 0x476   :  { %v3257_v20 = vadd.f32 %v3256_v35, %v3092_v34  ;;  %4258 = vmatprep.mubr.f32.mxu1 %v3313_v1  ;;  %v3316_v60 = vmax.f32 %v3262_v5, 0.0  ;;  %v2967_v1 = vadd.f32 %v6420_v9, %v6525_v31 }
 0x477   :  { %v3116_v42 = vpop.f32.mrf.mxu1  ;;  %v4204_v37 = vpop.f32.mrf.mxu0  ;;  %4259 = vmatmul.mubr.f32.gmra.mxu1 %v3314_v16 }
 0x478   :  { %v3315_v44 = vmax.f32 %v3257_v20, 0.0  ;;  %v3272_v53 = vadd.f32 %v4204_v37, %v3107_v28  ;;  %v3117_v23 = vadd.f32 %v3116_v42, %v2952_v22  ;;  %v2972_v28 = vadd.f32 %v6420_v9, %v6527_v18 }
 0x479   :  { %v3118_v3 = vpop.f32.mrf.mxu1  ;;  %v3266_v27 = vpop.f32.mrf.mxu0 }
 0x47a   :  { %v3267_v52 = vadd.f32 %v3266_v27, %v3102_v19  ;;  %4261 = vmatprep.mubr.f32.mxu1 %v3315_v44  ;;  %v3318_v43 = vmax.f32 %v3272_v53, 0.0  ;;  %v6569_v53 = vld [vmem:[%s6823_s8] ss:$0 sm:$0xff]  ;;  %s3912_s8 = sshll.u32 %s4412_s4, 4  ;;  %s3913_s8 = int_to_ptr.vmem [resolvable:$true] %s3912_s8 }
 0x47b   :  { %v3121_v12 = vpop.f32.mrf.mxu1  ;;  %v4207_v46 = vpop.f32.mrf.mxu0  ;;  %4262 = vmatmul.mubr.f32.gmra.mxu1 %v3316_v60  ;;  %p4389_p1 = scmp.lt.s32.totalorder %s3913_s8, %s3913_s8 }
 0x47c   :  { %v3317_v10 = vmax.f32 %v3267_v52, 0.0  ;;  %v3282_v26 = vadd.f32 %v4207_v46, %v3117_v23  ;;  %v3122_v63 = vadd.f32 %v3121_v12, %v2957_v39  ;;  %v4411_v39 = vmov 1  }
 0x47d   :  { %v3123_v38 = vpop.f32.mrf.mxu1  ;;  %v3276_v32 = vpop.f32.mrf.mxu0 }
 0x47e   :  { %v3277_v14 = vadd.f32 %v3276_v32, %v3112_v6  ;;  %4264 = vmatprep.mubr.f32.mxu1 %v3317_v10  ;;  %v3320_v40 = vmax.f32 %v3282_v26, 0.0 }
 0x47f   :  { %v3126_v0 = vpop.f32.mrf.mxu1  ;;  %v4210_v8 = vpop.f32.mrf.mxu0  ;;  %4265 = vmatmul.mubr.f32.gmra.mxu1 %v3318_v43 }
 0x480   :  { %v3319_v30 = vmax.f32 %v3277_v14, 0.0  ;;  %v3127_v45 = vadd.f32 %v3126_v0, %v2962_v4  ;;  %v6874_v0 = vmov 0  }
 0x481   :  { %v3128_v58 = vpop.f32.mrf.mxu1  ;;  %v3286_v34 = vpop.f32.mrf.mxu0 }
 0x482   :  { %v3292_v21 = vadd.f32 %v4210_v8, %v3127_v45  ;;  %v3287_v16 = vadd.f32 %v3286_v34, %v3122_v63  ;;  %4267 = vmatprep.mubr.f32.mxu1 %v3319_v30 }
 0x483   :  { %v3131_v25 = vpop.f32.mrf.mxu1  ;;  %v4213_v5 = vpop.f32.mrf.mxu0  ;;  %4268 = vmatmul.mubr.f32.gmra.mxu1 %v3320_v40 }
 0x484   :  { %v3322_v41 = vmax.f32 %v3292_v21, 0.0  ;;  %v3321_v7 = vmax.f32 %v3287_v16, 0.0  ;;  %v3132_v35 = vadd.f32 %v3131_v25, %v2967_v1 }
 0x485   :  { %v3133_v15 = vpop.f32.mrf.mxu1  ;;  %v3296_v20 = vpop.f32.mrf.mxu0 }
 0x486   :  { %v3297_v42 = vadd.f32 %v3296_v20, %v3132_v35  ;;  %4270 = vmatprep.mubr.f32.mxu1 %v3321_v7 }
 0x487   :  { %v3136_v37 = vpop.f32.mrf.mxu1  ;;  %4271 = vmatmul.mubr.f32.gmra.mxu1 %v3322_v41 }
 0x488   :  { %v3323_v19 = vmax.f32 %v3297_v42, 0.0  ;;  %v3137_v31 = vadd.f32 %v3136_v37, %v2972_v28 }
 0x489   :  { %v3138_v44 = vpop.f32.mrf.mxu1 }
 0x48a   :  { %v3302_v22 = vadd.f32 %v4213_v5, %v3137_v31  ;;  %4273 = vmatprep.mubr.f32.mxu1 %v3323_v19 }
 0x48c   :  { %v3324_v60 = vmax.f32 %v3302_v22, 0.0 }
 0x48e   :  { %4274 = vmatmul.mubr.f32.gmra.mxu1 %v3324_v60 }
 0x527   :  { %v4248_v3 = vpop.f32.mrf.mxu1 }
 0x528   :  { %v3420_v27 = vadd.f32 %v4248_v3, %v6569_v53 }
 0x529   :  { %v3414_v9 = vpop.f32.mrf.mxu1 }
 0x52a   :  { %v3514_v18 = vmax.f32 %v3420_v27, 0.0  ;;  %v3415_v56 = vadd.f32 %v6569_v53, %v3414_v9  ;;  %v6875_v9 = vld [vmem:[#allocation14_spill] sm:$0xff] }
 0x52b   :  { %v4251_v52 = vpop.f32.mrf.mxu1 }
 0x52c   :  { %v3534_v23 = vmul.f32 %v3514_v18, %v4757_v17  ;;  %v3513_v12 = vmax.f32 %v3415_v56, 0.0  ;;  %v3430_v26 = vadd.f32 %v4251_v52, %v6569_v53 }
 0x52d   :  { %v3424_v46 = vpop.f32.mrf.mxu1 }
 0x52e   :  { %v3533_v6 = vmul.f32 %v3513_v12, %v4744_v13  ;;  %v3425_v10 = vadd.f32 %v6569_v53, %v3424_v46  ;;  %3580 = vperm.xlu1 %4348, %v3534_v23   ;;  %v3516_v14 = vmax.f32 %v3430_v26, 0.0 }
 0x52f   :  { %v4254_v43 = vpop.f32.mrf.mxu1 }
 0x530   :  { %3575 = vperm.xlu0 %4347, %v3533_v6   ;;  %v3515_v32 = vmax.f32 %v3425_v10, 0.0  ;;  %v3536_v8 = vmul.f32 %v3516_v14, %v4658_v50  ;;  %v3440_v30 = vadd.f32 %v4254_v43, %v6569_v53 }
 0x531   :  { %v3434_v38 = vpop.f32.mrf.mxu1 }
 0x532   :  { %4349 = vset.pattern.permute.xlu1 %v4411_v39  ;;  %v3535_v13 = vmul.f32 %v3515_v32, %v4656_v49  ;;  %v3435_v63 = vadd.f32 %v6569_v53, %v3434_v38  ;;  %v3518_v58 = vmax.f32 %v3440_v30, 0.0 }
 0x533   :  { %3718 = vperm.xlu1 %4349, %v3534_v23   ;;  %v4257_v4 = vpop.f32.mrf.mxu1 }
 0x534   :  { %4350 = vset.pattern.permute.xlu0 %v4411_v39  ;;  %v3517_v40 = vmax.f32 %v3435_v63, 0.0  ;;  %v3538_v34 = vmul.f32 %v3518_v58, %v4660_v51  ;;  %v3450_v16 = vadd.f32 %v4257_v4, %v6569_v53 }
 0x535   :  { %3714 = vperm.xlu0 %4350, %v3533_v6   ;;  %v3444_v17 = vpop.f32.mrf.mxu1 }
 0x536   :  { %v3537_v50 = vmul.f32 %v3517_v40, %v4778_v24  ;;  %v3445_v1 = vadd.f32 %v6569_v53, %v3444_v17  ;;  %v3520_v41 = vmax.f32 %v3450_v16, 0.0  ;;  %v3694_v40 = vld [vmem:[%s6825_s10 + $0x8] sm:$0xff] }
 0x537   :  { %4353 = vset.pattern.permute.xlu1 %v6874_v0  ;;  %v4260_v45 = vpop.f32.mrf.mxu1 }
 0x538   :  { %3585 = vperm.xlu1 %4353, %v3535_v13   ;;  %v3519_v25 = vmax.f32 %v3445_v1, 0.0  ;;  %v3540_v7 = vmul.f32 %v3520_v41, %v4668_v54  ;;  %v3460_v15 = vadd.f32 %v4260_v45, %v6569_v53  ;;  %v3555_v41 = vld [vmem:[%s6824_s9 + $0x10] sm:$0xff] }
 0x539   :  { %4351 = vset.pattern.permute.xlu0 %v6874_v0  ;;  %v3454_v49 = vpop.f32.mrf.mxu1 }
 0x53a   :  { %3590 = vperm.xlu0 %4351, %v3536_v8   ;;  %v3539_v51 = vmul.f32 %v3519_v25, %v4792_v36  ;;  %v3455_v35 = vadd.f32 %v6569_v53, %v3454_v49  ;;  %v3522_v42 = vmax.f32 %v3460_v15, 0.0 }
 0x53b   :  { %v4263_v21 = vpop.f32.mrf.mxu1 }
 0x53c   :  { %4354 = vset.pattern.permute.xlu1 %v4411_v39  ;;  %v3521_v28 = vmax.f32 %v3455_v35, 0.0  ;;  %v3470_v36 = vadd.f32 %v4263_v21, %v6569_v53  ;;  %v3542_v19 = vmul.f32 %v3522_v42, %v4679_v57 }
 0x53d   :  { %3722 = vperm.xlu1 %4354, %v3535_v13   ;;  %v3464_v5 = vpop.f32.mrf.mxu1 }
 0x53e   :  { %4352 = vset.pattern.permute.xlu0 %v4411_v39  ;;  %v3541_v54 = vmul.f32 %v3521_v28, %v4818_v59  ;;  %v3524_v31 = vmax.f32 %v3470_v36, 0.0  ;;  %v3465_v22 = vadd.f32 %v6569_v53, %v3464_v5  ;;  %v3556_v28 = vld [vmem:[%s6824_s9 + $0x18] sm:$0xff] }
 0x53f   :  { %3726 = vperm.xlu0 %4352, %v3536_v8   ;;  %v4266_v24 = vpop.f32.mrf.mxu1 }
 0x540   :  { %v3544_v60 = vmul.f32 %v3524_v31, %v6865_v61  ;;  %v3523_v27 = vmax.f32 %v3465_v22, 0.0  ;;  %v3480_v56 = vadd.f32 %v4266_v24, %v6569_v53 }
 0x541   :  { %4357 = vset.pattern.permute.xlu1 %v6874_v0  ;;  %v3474_v20 = vpop.f32.mrf.mxu1 }
 0x542   :  { %3595 = vperm.xlu1 %4357, %v3537_v50   ;;  %v3475_v59 = vadd.f32 %v6569_v53, %v3474_v20  ;;  %v3543_v18 = vmul.f32 %v3523_v27, %v6875_v9  ;;  %v3526_v12 = vmax.f32 %v3480_v56, 0.0  ;;  %v3557_v27 = vld [vmem:[%s6824_s9 + $0x20] sm:$0xff] }
 0x543   :  { %4355 = vset.pattern.permute.xlu0 %v6874_v0  ;;  %v4269_v37 = vpop.f32.mrf.mxu1 }
 0x544   :  { %3600 = vperm.xlu0 %4355, %v3538_v34   ;;  %v3525_v52 = vmax.f32 %v3475_v59, 0.0  ;;  %v3546_v26 = vmul.f32 %v3526_v12, %v6867_v33  ;;  %v3490_v13 = vadd.f32 %v4269_v37, %v6569_v53  ;;  %v3697_v59 = vld [vmem:[%s6825_s10 + $0x20] sm:$0xff] }
 0x545   :  { %v3484_v44 = vpop.f32.mrf.mxu1 }
 0x546   :  { %4358 = vset.pattern.permute.xlu1 %v4411_v39  ;;  %v3485_v23 = vadd.f32 %v6569_v53, %v3484_v44  ;;  %v3545_v46 = vmul.f32 %v3525_v52, %v6866_v2  ;;  %v3528_v17 = vmax.f32 %v3490_v13, 0.0 }
 0x547   :  { %3730 = vperm.xlu1 %4358, %v3537_v50   ;;  %v4272_v3 = vpop.f32.mrf.mxu1 }
 0x548   :  { %4356 = vset.pattern.permute.xlu0 %v4411_v39  ;;  %v3527_v6 = vmax.f32 %v3485_v23, 0.0 }
 0x549   :  { %3734 = vperm.xlu0 %4356, %v3538_v34   ;;  %v3494_v57 = vpop.f32.mrf.mxu1 }
 0x54a   :  { %v3495_v10 = vadd.f32 %v6569_v53, %v3494_v57  ;;  %v3547_v38 = vmul.f32 %v3527_v6, %v6868_v48  ;;  %v3548_v48 = vmul.f32 %v3528_v17, %v6869_v55 }
 0x54b   :  { %4361 = vset.pattern.permute.xlu1 %v6874_v0 }
 0x54c   :  { %3605 = vperm.xlu1 %4361, %v3539_v51   ;;  %v3529_v32 = vmax.f32 %v3495_v10, 0.0 }
 0x54d   :  { %4359 = vset.pattern.permute.xlu0 %v6874_v0 }
 0x54e   :  { %3610 = vperm.xlu0 %4359, %v3540_v7   ;;  %v4275_v61 = vpop.f32.mrf.mxu1  ;;  %v3549_v2 = vmul.f32 %v3529_v32, %v6870_v62  ;;  %v3500_v62 = vadd.f32 %v4272_v3, %v6569_v53 }
 0x54f   :  { %v3510_v55 = vadd.f32 %v4275_v61, %v6569_v53 }
 0x550   :  { %4362 = vset.pattern.permute.xlu1 %v4411_v39  ;;  %v3504_v43 = vpop.f32.mrf.mxu1  ;;  %v3530_v8 = vmax.f32 %v3500_v62, 0.0 }
 0x551   :  { %3738 = vperm.xlu1 %4362, %v3539_v51   ;;  %v3505_v4 = vadd.f32 %v6569_v53, %v3504_v43  ;;  %v3532_v63 = vmax.f32 %v3510_v55, 0.0  ;;  %v3554_v53 = vld [vmem:[%s6824_s9 + $0x8] sm:$0xff]  ;;  %v3695_v51 = vld [vmem:[%s6825_s10 + $0x10] sm:$0xff] }
 0x552   :  { %4360 = vset.pattern.permute.xlu0 %v4411_v39 }
 0x553   :  { %3742 = vperm.xlu0 %4360, %v3540_v7   ;;  %v3531_v14 = vmax.f32 %v3505_v4, 0.0  ;;  %v3552_v30 = vmul.f32 %v3532_v63, %v6873_v11  ;;  %v3693_v11 = vld [vmem:[%s6825_s10] sm:$0xff]  ;;  %v3696_v7 = vld [vmem:[%s6825_s10 + $0x18] sm:$0xff] }
 0x555   :  { %4364 = vset.pattern.permute.xlu1 %v6874_v0  ;;  %v3551_v33 = vmul.f32 %v3531_v14, %v6872_v29  ;;  %v3550_v29 = vmul.f32 %v3530_v8, %v6871_v47 }
 0x556   :  { %3615 = vperm.xlu1 %4364, %v3541_v54  }
 0x557   :  { %4363 = vset.pattern.permute.xlu0 %v6874_v0 }
 0x558   :  { %3620 = vperm.xlu0 %4363, %v3542_v19  }
 0x55a   :  { %4365 = vset.pattern.permute.xlu1 %v4411_v39 }
 0x55b   :  { %3746 = vperm.xlu1 %4365, %v3541_v54  }
 0x55c   :  { %4367 = vset.pattern.permute.xlu0 %v4411_v39 }
 0x55d   :  { %3758 = vperm.xlu0 %4367, %v3544_v60  }
 0x55f   :  { %4366 = vset.pattern.permute.xlu1 %v6874_v0 }
 0x560   :  { %3630 = vperm.xlu1 %4366, %v3544_v60  }
 0x561   :  { %4368 = vset.pattern.permute.xlu0 %v6874_v0 }
 0x562   :  { %3625 = vperm.xlu0 %4368, %v3543_v18  }
 0x564   :  { %4369 = vset.pattern.permute.xlu1 %v4411_v39 }
 0x565   :  { %3754 = vperm.xlu1 %4369, %v3543_v18  }
 0x566   :  { %3635 = vperm.xlu0 %4368, %v3545_v46  }
 0x569   :  { %4370 = vset.pattern.permute.xlu1 %v6874_v0 }
 0x56a   :  { %3640 = vperm.xlu1 %4370, %v3546_v26   ;;  %3645 = vperm.xlu0 %4368, %v3547_v38  }
 0x56e   :  { %4371 = vset.pattern.permute.xlu1 %v4411_v39  ;;  %3655 = vperm.xlu0 %4368, %v3549_v2  }
 0x56f   :  { %3766 = vperm.xlu1 %4371, %v3546_v26  }
 0x572   :  { %3665 = vperm.xlu0 %4368, %v3551_v33  }
 0x573   :  { %3762 = vperm.xlu1 %4371, %v3545_v46  }
 0x576   :  { %4377 = vset.pattern.permute.xlu0 %v4411_v39 }
 0x577   :  { %4372 = vset.pattern.permute.xlu1 %v6874_v0  ;;  %3750 = vperm.xlu0 %4377, %v3542_v19  }
 0x578   :  { %3650 = vperm.xlu1 %4372, %v3548_v48  }
 0x57c   :  { %4373 = vset.pattern.permute.xlu1 %v4411_v39 }
 0x57d   :  { %3774 = vperm.xlu1 %4373, %v3548_v48  }
 0x581   :  { %3770 = vperm.xlu1 %4373, %v3547_v38  }
 0x585   :  { %4374 = vset.pattern.permute.xlu1 %v6874_v0 }
 0x586   :  { %3660 = vperm.xlu1 %4374, %v3550_v29  }
 0x58a   :  { %4375 = vset.pattern.permute.xlu1 %v4411_v39 }
 0x58b   :  { %3782 = vperm.xlu1 %4375, %v3550_v29  }
 0x58f   :  { %3778 = vperm.xlu1 %4375, %v3549_v2  }
 0x593   :  { %4376 = vset.pattern.permute.xlu1 %v6874_v0 }
 0x594   :  { %3670 = vperm.xlu1 %4376, %v3552_v30  }
 0x598   :  { %4378 = vset.pattern.permute.xlu1 %v4411_v39  ;;  %v3553_v39 = vld [vmem:[%s6824_s9] sm:$0xff] }
 0x599   :  { %3786 = vperm.xlu1 %4378, %v3551_v33  }
 0x59d   :  { %3790 = vperm.xlu1 %4378, %v3552_v30  }
 0x5a9   :  { %v3581_v47 = vpop.permute.xlu1 %3580 }
 0x5aa   :  { %v3674_v0 = vmul.f32 %v3581_v47, %v3554_v53  ;;  %v3703_v53 = vld [vmem:[%s6825_s10 + $0x50] sm:$0xff] }
 0x5ab   :  { %v3576_v45 = vpop.permute.xlu0 %3575 }
 0x5ac   :  { %v3673_v21 = vmul.f32 %v3576_v45, %v3553_v39  ;;  %v3698_v45 = vld [vmem:[%s6825_s10 + $0x28] sm:$0xff] }
 0x5ae   :  { %v3719_v58 = vpop.permute.xlu1 %3718 }
 0x5af   :  { %v3794_v49 = vmul.f32 %v3719_v58, %v3694_v40  ;;  %v3699_v40 = vld [vmem:[%s6825_s10 + $0x30] sm:$0xff]  ;;  %v3564_v58 = vld [vmem:[%s6824_s9 + $0x58] sm:$0xff] }
 0x5b0   :  { %v3715_v50 = vpop.permute.xlu0 %3714 }
 0x5b1   :  { %v3814_v34 = vadd.f32 %v3794_v49, %v3674_v0  ;;  %v3793_v1 = vmul.f32 %v3715_v50, %v3693_v11  ;;  %v3558_v11 = vld [vmem:[%s6824_s9 + $0x28] sm:$0xff]  ;;  %v3563_v0 = vld [vmem:[%s6824_s9 + $0x50] sm:$0xff]  ;;  %v3705_v49 = vld [vmem:[%s6825_s10 + $0x60] sm:$0xff] }
 0x5b3   :  { %v3586_v16 = vpop.permute.xlu1 %3585  ;;  %v3813_v25 = vadd.f32 %v3793_v1, %v3673_v21  ;;  %v3835_v36 = vsel %vm3833_vm8, %v3814_v34, 0.0  ;;  %v3559_v34 = vld [vmem:[%s6824_s9 + $0x30] sm:$0xff]  ;;  %v3704_v1 = vld [vmem:[%s6825_s10 + $0x58] sm:$0xff] }
 0x5b4   :  { %v3675_v15 = vmul.f32 %v3586_v16, %v3555_v41 }
 0x5b5   :  { %v3591_v5 = vpop.permute.xlu0 %3590  ;;  %v3834_v35 = vsel %vm3833_vm8, %v3813_v25, 0.0 }
 0x5b6   :  { %v3836_v19 = vadd.f32 %v3835_v36, %v3834_v35  ;;  %v3676_v31 = vmul.f32 %v3591_v5, %v3556_v28  ;;  %v3565_v5 = vld [vmem:[%s6824_s9 + $0x60] sm:$0xff] }
 0x5b7   :  { %v3701_v36 = vld [vmem:[%s6825_s10 + $0x40] sm:$0xff] }
 0x5b8   :  { %v3723_v24 = vpop.permute.xlu1 %3722 }
 0x5b9   :  { %v3795_v20 = vmul.f32 %v3723_v24, %v3695_v51  ;;  %v3700_v24 = vld [vmem:[%s6825_s10 + $0x38] sm:$0xff] }
 0x5ba   :  { %v3727_v42 = vpop.permute.xlu0 %3726 }
 0x5bb   :  { %v3815_v37 = vadd.f32 %v3795_v20, %v3675_v15  ;;  %v3796_v54 = vmul.f32 %v3727_v42, %v3696_v7  ;;  %v3560_v42 = vld [vmem:[%s6824_s9 + $0x38] sm:$0xff] }
 0x5bd   :  { %v3837_v44 = vsel %vm3833_vm8, %v3815_v37, 0.0  ;;  %v3596_v22 = vpop.permute.xlu1 %3595  ;;  %v3816_v3 = vadd.f32 %v3796_v54, %v3676_v31 }
 0x5be   :  { %v3838_v60 = vadd.f32 %v3837_v44, %v3836_v19  ;;  %v3677_v56 = vmul.f32 %v3596_v22, %v3557_v27  ;;  %v3561_v27 = vld [vmem:[%s6824_s9 + $0x40] sm:$0xff] }
 0x5bf   :  { %v3601_v57 = vpop.permute.xlu0 %3600  ;;  %v3839_v18 = vsel %vm3833_vm8, %v3816_v3, 0.0  ;;  %v3707_v3 = vld [vmem:[%s6825_s10 + $0x70] sm:$0xff] }
 0x5c0   :  { %v3840_v61 = vadd.f32 %v3839_v18, %v3838_v60  ;;  %v3678_v51 = vmul.f32 %v3601_v57, %v3558_v11  ;;  %v3706_v60 = vld [vmem:[%s6825_s10 + $0x68] sm:$0xff] }
 0x5c1   :  { %v3566_v18 = vld [vmem:[%s6824_s9 + $0x68] sm:$0xff] }
 0x5c2   :  { %v3731_v9 = vpop.permute.xlu1 %3730 }
 0x5c3   :  { %v3797_v52 = vmul.f32 %v3731_v9, %v3697_v59 }
 0x5c4   :  { %v3735_v10 = vpop.permute.xlu0 %3734 }
 0x5c5   :  { %v3817_v23 = vadd.f32 %v3797_v52, %v3677_v56  ;;  %v3798_v50 = vmul.f32 %v3735_v10, %v3698_v45  ;;  %v3567_v56 = vld [vmem:[%s6824_s9 + $0x70] sm:$0xff]  ;;  %v3702_v52 = vld [vmem:[%s6825_s10 + $0x48] sm:$0xff] }
 0x5c7   :  { %v3841_v12 = vsel %vm3833_vm8, %v3817_v23, 0.0  ;;  %v3606_v46 = vpop.permute.xlu1 %3605  ;;  %v3818_v28 = vadd.f32 %v3798_v50, %v3678_v51 }
 0x5c8   :  { %v6676_v6 = vadd.f32 %v3841_v12, %v3840_v61  ;;  %v3679_v15 = vmul.f32 %v3606_v46, %v3559_v34 }
 0x5c9   :  { %v3611_v26 = vpop.permute.xlu0 %3610  ;;  %v3843_v61 = vsel %vm3833_vm8, %v3818_v28, 0.0 }
 0x5ca   :  { %v3680_v57 = vmul.f32 %v3611_v26, %v3560_v42 }
 0x5cc   :  { %v3739_v43 = vpop.permute.xlu1 %3738 }
 0x5cd   :  { %v3799_v16 = vmul.f32 %v3739_v43, %v3699_v40  ;;  %v3709_v40 = vld [vmem:[%s6825_s10 + $0x80] sm:$0xff] }
 0x5ce   :  { %v3743_v32 = vpop.permute.xlu0 %3742 }
 0x5cf   :  { %v3819_v31 = vadd.f32 %v3799_v16, %v3679_v15  ;;  %v3800_v44 = vmul.f32 %v3743_v32, %v3700_v24 }
 0x5d1   :  { %v6678_v38 = vpop.permute.xlu1 %3615  ;;  %v3845_v43 = vsel %vm3833_vm8, %v3819_v31, 0.0  ;;  %v3820_v26 = vadd.f32 %v3800_v44, %v3680_v57  ;;  %v3711_v31 = vld [vmem:[%s6825_s10 + $0x90] sm:$0xff] }
 0x5d2   :  { %v3681_v32 = vmul.f32 %v6678_v38, %v3561_v27  ;;  %v3708_v38 = vld [vmem:[%s6825_s10 + $0x78] sm:$0xff] }
 0x5d3   :  { %v6680_v2 = vpop.permute.xlu0 %3620  ;;  %v3847_v50 = vsel %vm3833_vm8, %v3820_v26, 0.0 }
 0x5d6   :  { %v3747_v4 = vpop.permute.xlu1 %3746 }
 0x5d7   :  { %v3801_v9 = vmul.f32 %v3747_v4, %v3701_v36  ;;  %v3562_v4 = vld [vmem:[%s6824_s9 + $0x48] sm:$0xff] }
 0x5d8   :  { %v3759_v13 = vpop.permute.xlu0 %3758 }
 0x5d9   :  { %v3804_v20 = vmul.f32 %v3759_v13, %v3704_v1  ;;  %v3821_v45 = vadd.f32 %v3801_v9, %v3681_v32 }
 0x5db   :  { %v3631_v14 = vpop.permute.xlu1 %3630 }
 0x5dc   :  { %v3684_v25 = vmul.f32 %v3631_v14, %v3564_v58  ;;  %v3682_v58 = vmul.f32 %v6680_v2, %v3562_v4  ;;  %v3849_v2 = vsel %vm3833_vm8, %v3821_v45, 0.0 }
 0x5dd   :  { %v3626_v48 = vpop.permute.xlu0 %3625 }
 0x5de   :  { %v3683_v7 = vmul.f32 %v3626_v48, %v3563_v0  ;;  %v3824_v22 = vadd.f32 %v3804_v20, %v3684_v25  ;;  %v3569_v0 = vld [vmem:[%s6824_s9 + $0x80] sm:$0xff] }
 0x5e0   :  { %v3755_v33 = vpop.permute.xlu1 %3754  ;;  %v3860_v14 = vsel %vm3833_vm8, %v3824_v22, 0.0 }
 0x5e1   :  { %v3636_v8 = vpop.permute.xlu0 %3635  ;;  %v3803_v21 = vmul.f32 %v3755_v33, %v3703_v53 }
 0x5e2   :  { %v3685_v54 = vmul.f32 %v3636_v8, %v3565_v5 }
 0x5e3   :  { %v3823_v37 = vadd.f32 %v3803_v21, %v3683_v7 }
 0x5e5   :  { %v3641_v17 = vpop.permute.xlu1 %3640  ;;  %v3646_v55 = vpop.permute.xlu0 %3645  ;;  %v3859_v12 = vsel %vm3833_vm8, %v3823_v37, 0.0  ;;  %v3571_v37 = vld [vmem:[%s6824_s9 + $0x90] sm:$0xff] }
 0x5e6   :  { %v3686_v33 = vmul.f32 %v3641_v17, %v3566_v18  ;;  %v3687_v48 = vmul.f32 %v3646_v55, %v3567_v56  ;;  %v3861_v53 = vadd.f32 %v3860_v14, %v3859_v12 }
 0x5e9   :  { %v6684_v30 = vpop.permute.xlu0 %3655 }
 0x5ea   :  { %v3767_v62 = vpop.permute.xlu1 %3766  ;;  %v3689_v16 = vmul.f32 %v6684_v30, %v3569_v0  ;;  %v3570_v30 = vld [vmem:[%s6824_s9 + $0x88] sm:$0xff] }
 0x5eb   :  { %v3806_v46 = vmul.f32 %v3767_v62, %v3706_v60  ;;  %v3844_v62 = vadd.f32 %v3843_v61, %v6676_v6 }
 0x5ed   :  { %v6718_v41 = vpop.permute.xlu0 %3665  ;;  %v3826_v11 = vadd.f32 %v3806_v46, %v3686_v33  ;;  %v3846_v55 = vadd.f32 %v3845_v43, %v3844_v62 }
 0x5ee   :  { %v3763_v29 = vpop.permute.xlu1 %3762 }
 0x5ef   :  { %v3805_v35 = vmul.f32 %v3763_v29, %v3705_v49  ;;  %v3568_v49 = vld [vmem:[%s6824_s9 + $0x78] sm:$0xff]  ;;  %v3864_v25 = vsel %vm3833_vm8, %v3826_v11, 0.0  ;;  %v3848_v24 = vadd.f32 %v3847_v50, %v3846_v55  ;;  %v3985_v11 = vld [vmem:[%s6826_s11] ss:$0 sm:$0xff]  ;;  %s4384_s11 = scalar_lea.vmem %s3913_s8, 32 }
 0x5f0   :  { %p4385_p0 = scmp.ne.s32.totalorder %s3913_s8, %s4384_s11  ;;  %p4390_p2 = scmp.lt.s32.totalorder %s4384_s11, %s4384_s11 }
 0x5f1   :  { %v3825_v59 = vadd.f32 %v3805_v35, %v3685_v54  ;;  %v3710_v35 = vld [vmem:[%s6825_s10 + $0x88] sm:$0xff]  ;;  %v3850_v42 = vadd.f32 %v3849_v2, %v3848_v24 }
 0x5f2   :  { %v3751_v23 = vpop.permute.xlu0 %3750  ;;  %p4391_p3 = por %p4390_p2, %p4389_p1 }
 0x5f3   :  { %v6682_v63 = vpop.permute.xlu1 %3650  ;;  %v3862_v8 = vsel %vm3833_vm8, %v3825_v59, 0.0  ;;  %v3802_v29 = vmul.f32 %v3751_v23, %v3702_v52  ;;  %v3691_v59 = vmul.f32 %v6718_v41, %v3571_v37  ;;  %v3572_v52 = vld [vmem:[%s6824_s9 + $0x98] sm:$0xff] }
 0x5f4   :  { %v3863_v6 = vadd.f32 %v3862_v8, %v3861_v53  ;;  %v3688_v5 = vmul.f32 %v6682_v63, %v3568_v49  ;;  %v3712_v23 = vld [vmem:[%s6825_s10 + $0x98] sm:$0xff]  ;;  %p4392_p4 = pnand %p4391_p3, %p4385_p0 }
 0x5f5   :  { %v3822_v34 = vadd.f32 %v3802_v29, %v3682_v58 }
 0x5f6   :  { %v3865_v7 = vadd.f32 %v3864_v25, %v3863_v6 }
 0x5f7   :  { %v3851_v15 = vsel %vm3833_vm8, %v3822_v34, 0.0 }
 0x5f8   :  { %v6686_v47 = vpop.permute.xlu1 %3774  ;;  %v3852_v54 = vadd.f32 %v3851_v15, %v3850_v42 }
 0x5f9   :  { %v3808_v1 = vmul.f32 %v6686_v47, %v3708_v38 }
 0x5fa   :  { %v3853_v18 = vrot.slane %v3852_v54, 4 }
 0x5fb   :  { %v3828_v47 = vadd.f32 %v3808_v1, %v3688_v5 }
 0x5fc   :  { %v3771_v39 = vpop.permute.xlu1 %3770  ;;  %v3854_v43 = vadd.f32 %v3853_v18, %v3852_v54 }
 0x5fd   :  { %v3807_v10 = vmul.f32 %v3771_v39, %v3707_v3  ;;  %v3868_v44 = vsel %vm3833_vm8, %v3828_v47, 0.0 }
 0x5ff   :  { %v3827_v17 = vadd.f32 %v3807_v10, %v3687_v48 }
 0x601   :  { %v6729_v19 = vpop.permute.xlu1 %3660  ;;  %v3866_v51 = vsel %vm3833_vm8, %v3827_v17, 0.0 }
 0x602   :  { %v3867_v36 = vadd.f32 %v3866_v51, %v3865_v7  ;;  %v3690_v22 = vmul.f32 %v6729_v19, %v3570_v30 }
 0x604   :  { %v3869_v3 = vadd.f32 %v3868_v44, %v3867_v36 }
 0x606   :  { %v3783_v13 = vpop.permute.xlu1 %3782 }
 0x607   :  { %v3810_v63 = vmul.f32 %v3783_v13, %v3710_v35  ;;  %v3855_v13 = vrot.slane %v3854_v43, 2 }
 0x609   :  { %v3830_v57 = vadd.f32 %v3810_v63, %v3690_v22  ;;  %v3856_v8 = vadd.f32 %v3855_v13, %v3854_v43 }
 0x60a   :  { %v3779_v39 = vpop.permute.xlu1 %3778 }
 0x60b   :  { %v3809_v21 = vmul.f32 %v3779_v39, %v3709_v40  ;;  %v3872_v12 = vsel %vm3833_vm8, %v3830_v57, 0.0  ;;  %v3857_v53 = vrot.slane %v3856_v8, 1 }
 0x60d   :  { %v3829_v20 = vadd.f32 %v3809_v21, %v3689_v16  ;;  %v3858_v40 = vadd.f32 %v3857_v53, %v3856_v8 }
 0x60f   :  { %v3671_v28 = vpop.permute.xlu1 %3670  ;;  %v3870_v60 = vsel %vm3833_vm8, %v3829_v20, 0.0 }
 0x610   :  { %v3871_v56 = vadd.f32 %v3870_v60, %v3869_v3  ;;  %v3692_v46 = vmul.f32 %v3671_v28, %v3572_v52 }
 0x612   :  { %v3873_v26 = vadd.f32 %v3872_v12, %v3871_v56 }
 0x614   :  { %v3787_v27 = vpop.permute.xlu1 %3786 }
 0x615   :  { %v3811_v9 = vmul.f32 %v3787_v27, %v3711_v31 }
 0x617   :  { %v3831_v61 = vadd.f32 %v3811_v9, %v3691_v59 }
 0x618   :  { %v3791_v19 = vpop.permute.xlu1 %3790 }
 0x619   :  { %v3874_v10 = vsel %vm3833_vm8, %v3831_v61, 0.0  ;;  %v3812_v41 = vmul.f32 %v3791_v19, %v3712_v23 }
 0x61a   :  { %v3875_v4 = vadd.f32 %v3874_v10, %v3873_v26 }
 0x61b   :  { %v3832_v32 = vadd.f32 %v3812_v41, %v3692_v46 }
 0x61d   :  { %v3876_v14 = vsel %vm3833_vm8, %v3832_v32, 0.0 }
 0x61e   :  { %v3877_v33 = vadd.f32 %v3876_v14, %v3875_v4 }
 0x620   :  { %v3878_v48 = vrot.slane %v3877_v33, 4 }
 0x622   :  { %v3879_v29 = vadd.f32 %v3878_v48, %v3877_v33 }
 0x624   :  { %v3880_v62 = vrot.slane %v3879_v29, 2 }
 0x626   :  { %v3881_v45 = vadd.f32 %v3880_v62, %v3879_v29 }
 0x628   :  { %v3882_v38 = vrot.slane %v3881_v45, 1 }
 0x62a   :  { %v3883_v58 = vadd.f32 %v3882_v38, %v3881_v45 }
 0x62c   :  { %v3884_v17 = vsel %vm165_vm0, %v3858_v40, %v3883_v58 }
 0x62d   :  { %v3892_v55 = vadd.f32 %v3985_v11, %v3884_v17 }
 0x62f   :  { %v3894_v0 = vsel %vm3893_vm9, %v3892_v55, -inf }
 0x630   :  { %3895 = vmax.xlane.f32.xlu1 %v3894_v0 }
 0x6b9   :  { %v3896_v6 = vpop.xlane.xlu1 %3895 }
 0x6ba   :  { %v3897_v49 = vsub.f32 %v3892_v55, %v3896_v6 }
 0x6bc   :  { %v3898_v39 = vmul.f32 1.442695, %v3897_v49 }
 0x6be   :  { %4379 = vpow2.f32 %v3898_v39 }
 0x6cb   :  { %v4380_v50 = vpop.eup %4379 }
 0x6cc   :  { %v3900_v34 = vsel %vm3893_vm9, %v4380_v50, 0.0 }
 0x6cd   :  { %3901 = vadd.xlane.f32.xlu0 %v3900_v34 }
 0x756   :  { %v3902_v1 = vpop.xlane.xlu0 %3901 }
 0x757   :  { %4381 = vrcp.f32 %v3902_v1 }
 0x764   :  { %v4382_v21 = vpop.eup %4381 }
 0x765   :  { %v3904_v2 = vmul.f32 %v4382_v21, %v4380_v50 }
 0x767   :  { %3905 = vst.msk [vmem:[#allocation6] sm:$0x3] %vm3893_vm9, %v3904_v2 }
 0x768   :  { %4395 = shalt.err (!%p4392_p4)
}
 0x769   :  { %3915 = dma.vmem_to_hbm [thread:$0]  %s3913_s8, 32, %s6828_s13, [#allocation7]  }
 0x76a   :  { %4404 = dma.done.wait [#allocation7], 32  }
 0x76b   :  { %4405 = vsyncadd [#allocation7], 4294967264 }
 0x76c   :  { %3919 = vsyncpa [#allocation7], 1 }

</bundles_post_ra>
